<compile_context>
chip_gen: v6e
topology: v6e:2x2x1
jax: 0.10.0
libtpu: 0.0.40
codegen_flags: <defaults>
</compile_context>

<pallas_src>
import math
import numpy as np
import jax
import jax.numpy as jnp
from jax.experimental import pallas as pl
from jax.experimental.pallas import tpu as pltpu


# --------------------------------------------------------------------------
# Shared LSTM cell math (used by the Pallas kernel and the pure-JAX reference)
# --------------------------------------------------------------------------
def _lstm_cell(gates, c_prev, H):
    """gates: (B, 4H) f32 in PyTorch (i,f,g,o) order; c_prev: (B, H) f32."""
    if_ = jax.nn.sigmoid(gates[:, :2 * H])        # i and f in one EUP pass
    i = if_[:, :H]
    f = if_[:, H:]
    g = jnp.tanh(gates[:, 2 * H:3 * H])
    o = jax.nn.sigmoid(gates[:, 3 * H:])
    c = f * c_prev + i * g                        # cell state stays f32
    h = o * jnp.tanh(c)
    return h, c


def _pick_tile(n, target, align):
    """Largest divisor of n that is <= target and a multiple of align; else n."""
    for d in range(min(n, target), 0, -1):
        if n % d == 0 and d % align == 0:
            return d
    return n


# --------------------------------------------------------------------------
# Fused 2-layer LSTM kernel.
#   grid = (B//Bt, T//Tt); batch axis "parallel" (megacore), time "arbitrary".
#   Each grid step runs an unrolled inner loop over Tt timesteps; the four
#   recurrent states live in VMEM scratch and are carried as f32 loop values
#   inside the chunk.  Layer-1's x-projection (x @ W_ih1) is precomputed
#   outside (xproj).  Layer-2 uses two accumulating dots (no concat).
# --------------------------------------------------------------------------
def _fused_lstm_kernel(xproj_ref, whh1_ref, wih2_ref, whh2_ref,
                       h10_ref, c10_ref, h20_ref, c20_ref,
                       out2_ref, h1n_ref, c1n_ref, h2n_ref, c2n_ref,
                       h1_scr, c1_scr, h2_scr, c2_scr):
    s = pl.program_id(1)                       # time-chunk index (inner axis)

    @pl.when(s == 0)
    def _():                                   # start of this batch block's sweep
        h1_scr[...] = h10_ref[...]
        c1_scr[...] = c10_ref[...]
        h2_scr[...] = h20_ref[...]
        c2_scr[...] = c20_ref[...]

    H = h1_scr.shape[1]
    Tt = xproj_ref.shape[0]
    bf16 = jnp.bfloat16
    f32 = jnp.float32

    def step(i, carry):
        h1, c1, h2, c2 = carry
        # ---- layer 1: gates = xproj[t] + h1_prev @ W_hh1 --------------------
        g1 = xproj_ref[i] + jnp.dot(h1.astype(bf16), whh1_ref[...],
                                    preferred_element_type=f32)
        h1, c1 = _lstm_cell(g1, c1, H)
        # ---- layer 2: gates = h1 @ W_ih2 + h2_prev @ W_hh2 ------------------
        g2 = (jnp.dot(h1.astype(bf16), wih2_ref[...],
                      preferred_element_type=f32)
              + jnp.dot(h2.astype(bf16), whh2_ref[...],
                        preferred_element_type=f32))
        h2, c2 = _lstm_cell(g2, c2, H)
        out2_ref[i] = h2.astype(out2_ref.dtype)          # bf16 writeback
        return (h1, c1, h2, c2)

    carry = (h1_scr[...], c1_scr[...], h2_scr[...], c2_scr[...])
    h1, c1, h2, c2 = jax.lax.fori_loop(0, Tt, step, carry, unroll=True)

    # Persist states for the next time-chunk of this batch block.
    h1_scr[...] = h1
    c1_scr[...] = c1
    h2_scr[...] = h2
    c2_scr[...] = c2

    @pl.when(s == pl.num_programs(1) - 1)
    def _():
        h1n_ref[...] = h1
        c1n_ref[...] = c1
        h2n_ref[...] = h2
        c2n_ref[...] = c2


def fused_lstm_pallas(xproj, w_hh1, w_ih2, w_hh2, h1, c1, h2, c2):
    """xproj: (T,B,4H) f32; w_*: (H,4H) bf16; h*/c*: (B,H) f32.
    Returns (out2 (T,B,H) bf16, h1_n, c1_n, h2_n, c2_n)."""
    T, B, G = xproj.shape
    H = w_hh1.shape[0]
    f32 = jnp.float32

    # Time-chunk size (unrolled inner loop); batch shard for v7x megacore.
    Tt = _pick_tile(T, 8, 1)
    Bt = B
    if B >= 16 and B % 2 == 0 and (B // 2) % 8 == 0:
        Bt = B // 2                            # 2 batch shards -> 2 TensorCores

    wmap = lambda b, s: (0, 0)                 # resident weights
    bmap = lambda b, s: (b, 0)                 # per-batch-block states
    tmap = lambda b, s: (s, b, 0)              # time-chunked activations

    out_shapes = (
        jax.ShapeDtypeStruct((T, B, H), jnp.bfloat16),
        jax.ShapeDtypeStruct((B, H), f32),
        jax.ShapeDtypeStruct((B, H), f32),
        jax.ShapeDtypeStruct((B, H), f32),
        jax.ShapeDtypeStruct((B, H), f32),
    )
    return pl.pallas_call(
        _fused_lstm_kernel,
        out_shape=out_shapes,
        grid=(B // Bt, T // Tt),
        in_specs=[
            pl.BlockSpec((Tt, Bt, G), tmap),   # xproj chunk
            pl.BlockSpec((H, G), wmap),        # W_hh1 (resident)
            pl.BlockSpec((H, G), wmap),        # W_ih2 (resident)
            pl.BlockSpec((H, G), wmap),        # W_hh2 (resident)
            pl.BlockSpec((Bt, H), bmap),       # h1_0
            pl.BlockSpec((Bt, H), bmap),       # c1_0
            pl.BlockSpec((Bt, H), bmap),       # h2_0
            pl.BlockSpec((Bt, H), bmap),       # c2_0
        ],
        out_specs=[
            pl.BlockSpec((Tt, Bt, H), tmap),   # out2 chunk (bf16)
            pl.BlockSpec((Bt, H), bmap),       # h1_n
            pl.BlockSpec((Bt, H), bmap),       # c1_n
            pl.BlockSpec((Bt, H), bmap),       # h2_n
            pl.BlockSpec((Bt, H), bmap),       # c2_n
        ],
        scratch_shapes=[pltpu.VMEM((Bt, H), f32) for _ in range(4)],
        compiler_params=pltpu.CompilerParams(
            dimension_semantics=("parallel", "arbitrary"),
            # NOTE(v7x): at H~650 the three resident bf16 weights are ~10 MiB;
            # 48 MiB keeps double-buffered chunks comfortably inside 64 MiB/TC.
            vmem_limit_bytes=48 * 1024 * 1024),
    )(xproj, w_hh1, w_ih2, w_hh2, h1, c1, h2, c2)


# --------------------------------------------------------------------------
# Hoisted layer-1 input projection: (T*B, E) bf16 @ (E, 4H) bf16 -> f32.
# --------------------------------------------------------------------------
def _xproj_kernel(x_ref, w_ref, o_ref):
    o_ref[...] = jnp.dot(x_ref[...], w_ref[...],
                         preferred_element_type=jnp.float32)


def xproj_pallas(x2d, w_ih_t):
    N, E = x2d.shape
    G = w_ih_t.shape[1]
    Nt = _pick_tile(N, 1024, 8)
    return pl.pallas_call(
        _xproj_kernel,
        out_shape=jax.ShapeDtypeStruct((N, G), jnp.float32),
        grid=(N // Nt,),
        in_specs=[
            pl.BlockSpec((Nt, E), lambda i: (i, 0)),
            pl.BlockSpec((E, G), lambda i: (0, 0)),
        ],
        out_specs=pl.BlockSpec((Nt, G), lambda i: (i, 0)),
        compiler_params=pltpu.CompilerParams(
            dimension_semantics=("parallel",),
            vmem_limit_bytes=48 * 1024 * 1024),
    )(x2d, w_ih_t)


# --------------------------------------------------------------------------
# Output projection (tied weights): logits = h @ W_emb^T.
# Grid is (V//Vt, N//Nt) so the vocab-sized weight is the SLOW axis and is
# streamed from HBM exactly once; the small activation is the one re-read.
# --------------------------------------------------------------------------
def _fc_kernel(x_ref, w_ref, o_ref):
    o_ref[...] = jnp.dot(x_ref[...].astype(jnp.bfloat16), w_ref[...],
                         preferred_element_type=jnp.float32)


def fc_pallas(x_nh, w_hv):
    N, H = x_nh.shape
    V = w_hv.shape[1]
    Nt = _pick_tile(N, 1024, 8)
    Vt = _pick_tile(V, 1024, 128)     # lane-dense, multiple-of-128 output tiles
    return pl.pallas_call(
        _fc_kernel,
        out_shape=jax.ShapeDtypeStruct((N, V), jnp.float32),
        grid=(V // Vt, N // Nt),
        in_specs=[
            pl.BlockSpec((Nt, H), lambda j, i: (i, 0)),
            pl.BlockSpec((H, Vt), lambda j, i: (0, j)),   # constant on inner axis
        ],
        out_specs=pl.BlockSpec((Nt, Vt), lambda j, i: (i, j)),
        compiler_params=pltpu.CompilerParams(
            dimension_semantics=("parallel", "parallel"),
            vmem_limit_bytes=48 * 1024 * 1024),
    )(x_nh, w_hv)


# --------------------------------------------------------------------------
# Full model forward
# --------------------------------------------------------------------------
def my_lstm_forward(params, inputs, hidden1_prev, hidden2_prev):
    """inputs: (B, T) int32; hidden*_prev: (h, c) each (B, H).
    Returns (logits (B,T,V), hidden1_next, hidden2_next)."""
    emb_w = params["emb_w"]                       # (V, E) f32
    B, T = inputs.shape
    E = emb_w.shape[1]
    V = emb_w.shape[0]
    H = params["w_hh1_t"].shape[0]

    # Transpose the cheap int ids, not the activations -> time-major gather.
    # TODO(synk): embedding gather (data-dependent) stays as plain-JAX glue.
    x_tbe = jnp.take(emb_w, inputs.T, axis=0).astype(jnp.bfloat16)  # (T, B, E)
    # drop1/drop2/drop3: eval-mode dropout == identity.

    # Hoisted layer-1 input projection: one big matmul over all T*B rows.
    xproj = xproj_pallas(x_tbe.reshape(T * B, E),
                         params["w_ih1_t"]).reshape(T, B, 4 * H)

    h1, c1 = hidden1_prev
    h2, c2 = hidden2_prev
    out2, h1n, c1n, h2n, c2n = fused_lstm_pallas(
        xproj, params["w_hh1_t"], params["w_ih2_t"], params["w_hh2_t"],
        h1, c1, h2, c2)

    # Batch-first transpose on the SMALL bf16 (T,B,H) tensor, then fc emits
    # logits directly in (B,T,V) order — no transpose on the big logits.
    out_bth = jnp.transpose(out2, (1, 0, 2)).reshape(B * T, H)
    logits = fc_pallas(out_bth, params["fc_w_t"]).reshape(B, T, V)
    return logits, (h1n, c1n), (h2n, c2n)


# --------------------------------------------------------------------------
# Pure-JAX reference (same effective weights; f32 math throughout)
# --------------------------------------------------------------------------
def my_lstm_forward_ref(params, inputs, hidden1_prev, hidden2_prev):
    emb_w = params["emb_w"]
    B, T = inputs.shape
    H = params["w_hh1_t"].shape[0]
    x_tbe = jnp.take(emb_w, inputs.T, axis=0)     # (T, B, E) f32

    w_ih1 = params["w_ih1_t"].astype(jnp.float32)
    w_hh1 = params["w_hh1_t"].astype(jnp.float32)
    w_ih2 = params["w_ih2_t"].astype(jnp.float32)
    w_hh2 = params["w_hh2_t"].astype(jnp.float32)

    def step(carry, x_t):
        h1, c1, h2, c2 = carry
        g1 = x_t @ w_ih1 + h1 @ w_hh1
        h1n, c1n = _lstm_cell(g1, c1, H)
        g2 = h1n @ w_ih2 + h2 @ w_hh2
        h2n, c2n = _lstm_cell(g2, c2, H)
        return (h1n, c1n, h2n, c2n), h2n

    carry0 = (hidden1_prev[0], hidden1_prev[1], hidden2_prev[0], hidden2_prev[1])
    (h1n, c1n, h2n, c2n), out2 = jax.lax.scan(step, carry0, x_tbe)

    logits = out2.reshape(T * B, H) @ params["fc_w_t"].astype(jnp.float32)
    logits = jnp.transpose(logits.reshape(T, B, -1), (1, 0, 2))
    return logits, (h1n, c1n), (h2n, c2n)


# --------------------------------------------------------------------------
# Parameter construction (deterministic, mirrors the PyTorch __init__)
# LSTM biases and fc.bias are zero-initialized in the module -> dropped.
# --------------------------------------------------------------------------
def init_params(key, vocab_size, embedding_dim, hidden_size):
    assert embedding_dim == hidden_size, "weight tying needs E == H"
    E, H, V = embedding_dim, hidden_size, vocab_size
    ks = jax.random.split(key, 5)
    emb_w = 0.01 * jax.random.normal(ks[0], (V, E), jnp.float32)
    # PyTorch weight_ih_l0: (4H, E); weight_hh_l0: (4H, H). Stored transposed.
    w_ih1 = (1.0 / math.sqrt(E)) * jax.random.normal(ks[1], (4 * H, E), jnp.float32)
    w_hh1 = (1.0 / math.sqrt(H)) * jax.random.normal(ks[2], (4 * H, H), jnp.float32)
    w_ih2 = (1.0 / math.sqrt(E)) * jax.random.normal(ks[3], (4 * H, H), jnp.float32)
    w_hh2 = (1.0 / math.sqrt(H)) * jax.random.normal(ks[4], (4 * H, H), jnp.float32)
    return {
        "emb_w": emb_w,                                   # f32 (gather table)
        "w_ih1_t": w_ih1.T.astype(jnp.bfloat16),          # (E, 4H)
        "w_hh1_t": w_hh1.T.astype(jnp.bfloat16),          # (H, 4H)
        "w_ih2_t": w_ih2.T.astype(jnp.bfloat16),          # (H, 4H)
        "w_hh2_t": w_hh2.T.astype(jnp.bfloat16),          # (H, 4H)
        "fc_w_t": emb_w.T.astype(jnp.bfloat16),           # tied weights (H, V)
    }


if __name__ == "__main__":
    # Small shapes consistent with the module (vocab, embed==hidden, batch, seq).
    V, E, H, B, T = 512, 128, 128, 8, 8

    key = jax.random.PRNGKey(0)
    k_param, k_tok, k_h1, k_c1, k_h2, k_c2 = jax.random.split(key, 6)

    params = init_params(k_param, V, E, H)
    inputs = jax.random.randint(k_tok, (B, T), 0, V, dtype=jnp.int32)
    hidden1 = (0.1 * jax.random.normal(k_h1, (B, H), jnp.float32),
               0.1 * jax.random.normal(k_c1, (B, H), jnp.float32))
    hidden2 = (0.1 * jax.random.normal(k_h2, (B, H), jnp.float32),
               0.1 * jax.random.normal(k_c2, (B, H), jnp.float32))

    fwd = jax.jit(my_lstm_forward)
    logits, hid1, hid2 = jax.block_until_ready(
        fwd(params, inputs, hidden1, hidden2))

    # Correctness check against the pure-JAX reference (same bf16 weights,
    # f32 math; kernel additionally casts matmul activations to bf16 and
    # stores out2 in bf16).
    ref_logits, ref_hid1, ref_hid2 = my_lstm_forward_ref(
        params, inputs, hidden1, hidden2)
    np.testing.assert_allclose(np.asarray(logits), np.asarray(ref_logits),
                               rtol=2e-2, atol=2e-2)
    np.testing.assert_allclose(np.asarray(hid1[0]), np.asarray(ref_hid1[0]),
                               rtol=2e-2, atol=2e-2)
    np.testing.assert_allclose(np.asarray(hid1[1]), np.asarray(ref_hid1[1]),
                               rtol=2e-2, atol=2e-2)
    np.testing.assert_allclose(np.asarray(hid2[0]), np.asarray(ref_hid2[0]),
                               rtol=2e-2, atol=2e-2)
    np.testing.assert_allclose(np.asarray(hid2[1]), np.asarray(ref_hid2[1]),
                               rtol=2e-2, atol=2e-2)

    assert logits.shape == (B, T, V)
    print("KERNEL_OK")
</pallas_src>

<mosaic_0001>
module attributes {stable_mosaic.version = 11 : i64} {
  func.func @_xproj_kernel(%arg0: i32, %arg1: memref<64x128xbf16, #tpu.memory_space<vmem>>, %arg2: memref<128x512xbf16, #tpu.memory_space<vmem>>, %arg3: memref<64x512xf32, #tpu.memory_space<vmem>>) attributes {dimension_semantics = [#tpu.dimension_semantics<parallel>], iteration_bounds = array<i64: 1>, scalar_prefetch = 0 : i64, scratch_operands = 0 : i64, tpu.core_type = #tpu.core_type<tc>, window_params = [{transform_indices = @transform_0, window_bounds = array<i64: 64, 128>}, {pipeline_mode = #tpu.pipeline_mode<synchronous>, transform_indices = @transform_1, window_bounds = array<i64: 128, 512>}, {transform_indices = @transform_2, window_bounds = array<i64: 64, 512>}]} {
    %c0 = arith.constant 0 : index
    %c0_0 = arith.constant 0 : index
    %0 = vector.load %arg1[%c0, %c0_0] : memref<64x128xbf16, #tpu.memory_space<vmem>>, vector<64x128xbf16>
    %c0_1 = arith.constant 0 : index
    %c0_2 = arith.constant 0 : index
    %1 = vector.load %arg2[%c0_1, %c0_2] : memref<128x512xbf16, #tpu.memory_space<vmem>>, vector<128x512xbf16>
    %cst = arith.constant dense<0.000000e+00> : vector<64x512xf32>
    %2 = tpu.matmul %0, %1, %cst {dimension_numbers = #tpu.dot_dimension_numbers<[1], [0], [0], [1], [0, 0, 1, 1], [], []>} : vector<64x128xbf16>, vector<128x512xbf16>, vector<64x512xf32> -> vector<64x512xf32>
    %c0_3 = arith.constant 0 : index
    %c0_4 = arith.constant 0 : index
    %3 = vector.load %arg3[%c0_3, %c0_4] : memref<64x512xf32, #tpu.memory_space<vmem>>, vector<64x512xf32>
    tpu.vector_store %arg3[%c0_3, %c0_4], %2 {strides = array<i32>} : memref<64x512xf32, #tpu.memory_space<vmem>>, vector<64x512xf32>,
    return
  }
  func.func @transform_0(%arg0: i32) -> (i32, i32) {
    %c0_i32 = arith.constant 0 : i32
    %c0_i32_0 = arith.constant 0 : i32
    return %arg0, %c0_i32 : i32, i32
  }
  func.func @transform_1(%arg0: i32) -> (i32, i32) {
    %c0_i32 = arith.constant 0 : i32
    %c0_i32_0 = arith.constant 0 : i32
    %c0_i32_1 = arith.constant 0 : i32
    return %c0_i32, %c0_i32_0 : i32, i32
  }
  func.func @transform_2(%arg0: i32) -> (i32, i32) {
    %c0_i32 = arith.constant 0 : i32
    %c0_i32_0 = arith.constant 0 : i32
    return %arg0, %c0_i32 : i32, i32
  }
}

module attributes {stable_mosaic.version = 11 : i64} {
  func.func @_fc_kernel(%arg0: i32, %arg1: i32, %arg2: memref<64x128xbf16, #tpu.memory_space<vmem>>, %arg3: memref<128x512xbf16, #tpu.memory_space<vmem>>, %arg4: memref<64x512xf32, #tpu.memory_space<vmem>>) attributes {dimension_semantics = [#tpu.dimension_semantics<parallel>, #tpu.dimension_semantics<parallel>], iteration_bounds = array<i64: 1, 1>, scalar_prefetch = 0 : i64, scratch_operands = 0 : i64, tpu.core_type = #tpu.core_type<tc>, window_params = [{transform_indices = @transform_0, window_bounds = array<i64: 64, 128>}, {transform_indices = @transform_1, window_bounds = array<i64: 128, 512>}, {transform_indices = @transform_2, window_bounds = array<i64: 64, 512>}]} {
    %c0 = arith.constant 0 : index
    %c0_0 = arith.constant 0 : index
    %0 = vector.load %arg2[%c0, %c0_0] : memref<64x128xbf16, #tpu.memory_space<vmem>>, vector<64x128xbf16>
    %c0_1 = arith.constant 0 : index
    %c0_2 = arith.constant 0 : index
    %1 = vector.load %arg3[%c0_1, %c0_2] : memref<128x512xbf16, #tpu.memory_space<vmem>>, vector<128x512xbf16>
    %cst = arith.constant dense<0.000000e+00> : vector<64x512xf32>
    %2 = tpu.matmul %0, %1, %cst {dimension_numbers = #tpu.dot_dimension_numbers<[1], [0], [0], [1], [0, 0, 1, 1], [], []>} : vector<64x128xbf16>, vector<128x512xbf16>, vector<64x512xf32> -> vector<64x512xf32>
    %c0_3 = arith.constant 0 : index
    %c0_4 = arith.constant 0 : index
    %3 = vector.load %arg4[%c0_3, %c0_4] : memref<64x512xf32, #tpu.memory_space<vmem>>, vector<64x512xf32>
    tpu.vector_store %arg4[%c0_3, %c0_4], %2 {strides = array<i32>} : memref<64x512xf32, #tpu.memory_space<vmem>>, vector<64x512xf32>,
    return
  }
  func.func @transform_0(%arg0: i32, %arg1: i32) -> (i32, i32) {
    %c0_i32 = arith.constant 0 : i32
    %c0_i32_0 = arith.constant 0 : i32
    return %arg1, %c0_i32 : i32, i32
  }
  func.func @transform_1(%arg0: i32, %arg1: i32) -> (i32, i32) {
    %c0_i32 = arith.constant 0 : i32
    %c0_i32_0 = arith.constant 0 : i32
    return %c0_i32, %arg0 : i32, i32
  }
  func.func @transform_2(%arg0: i32, %arg1: i32) -> (i32, i32) {
    %c0_i32 = arith.constant 0 : i32
    return %arg1, %arg0 : i32, i32
  }
}

module attributes {stable_mosaic.version = 11 : i64} {
  func.func @_fused_lstm_kernel(%arg0: i32, %arg1: i32, %arg2: memref<8x8x512xf32, #tpu.memory_space<vmem>>, %arg3: memref<128x512xbf16, #tpu.memory_space<vmem>>, %arg4: memref<128x512xbf16, #tpu.memory_space<vmem>>, %arg5: memref<128x512xbf16, #tpu.memory_space<vmem>>, %arg6: memref<8x128xf32, #tpu.memory_space<vmem>>, %arg7: memref<8x128xf32, #tpu.memory_space<vmem>>, %arg8: memref<8x128xf32, #tpu.memory_space<vmem>>, %arg9: memref<8x128xf32, #tpu.memory_space<vmem>>, %arg10: memref<8x8x128xbf16, #tpu.memory_space<vmem>>, %arg11: memref<8x128xf32, #tpu.memory_space<vmem>>, %arg12: memref<8x128xf32, #tpu.memory_space<vmem>>, %arg13: memref<8x128xf32, #tpu.memory_space<vmem>>, %arg14: memref<8x128xf32, #tpu.memory_space<vmem>>, %arg15: memref<8x128xf32, #tpu.memory_space<vmem>>, %arg16: memref<8x128xf32, #tpu.memory_space<vmem>>, %arg17: memref<8x128xf32, #tpu.memory_space<vmem>>, %arg18: memref<8x128xf32, #tpu.memory_space<vmem>>) attributes {dimension_semantics = [#tpu.dimension_semantics<parallel>, #tpu.dimension_semantics<arbitrary>], iteration_bounds = array<i64: 1, 1>, scalar_prefetch = 0 : i64, scratch_operands = 4 : i64, tpu.core_type = #tpu.core_type<tc>, window_params = [{transform_indices = @transform_0, window_bounds = array<i64: 8, 8, 512>}, {pipeline_mode = #tpu.pipeline_mode<synchronous>, transform_indices = @transform_1, window_bounds = array<i64: 128, 512>}, {pipeline_mode = #tpu.pipeline_mode<synchronous>, transform_indices = @transform_2, window_bounds = array<i64: 128, 512>}, {pipeline_mode = #tpu.pipeline_mode<synchronous>, transform_indices = @transform_3, window_bounds = array<i64: 128, 512>}, {transform_indices = @transform_4, window_bounds = array<i64: 8, 128>}, {transform_indices = @transform_5, window_bounds = array<i64: 8, 128>}, {transform_indices = @transform_6, window_bounds = array<i64: 8, 128>}, {transform_indices = @transform_7, window_bounds = array<i64: 8, 128>}, {transform_indices = @transform_8, window_bounds = array<i64: 8, 8, 128>}, {transform_indices = @transform_9, window_bounds = array<i64: 8, 128>}, {transform_indices = @transform_10, window_bounds = array<i64: 8, 128>}, {transform_indices = @transform_11, window_bounds = array<i64: 8, 128>}, {transform_indices = @transform_12, window_bounds = array<i64: 8, 128>}]} {
    %c0_i32 = arith.constant 0 : i32
    %0 = arith.cmpi eq, %arg1, %c0_i32 : i32
    %1 = arith.extui %0 : i1 to i32
    %c0_i32_0 = arith.constant 0 : i32
    %2 = arith.cmpi ne, %1, %c0_i32_0 : i32
    scf.if %2 {
      %c0_154 = arith.constant 0 : index
      %c0_155 = arith.constant 0 : index
      %502 = vector.load %arg6[%c0_154, %c0_155] : memref<8x128xf32, #tpu.memory_space<vmem>>, vector<8x128xf32>
      %c0_156 = arith.constant 0 : index
      %c0_157 = arith.constant 0 : index
      %503 = vector.load %arg15[%c0_156, %c0_157] : memref<8x128xf32, #tpu.memory_space<vmem>>, vector<8x128xf32>
      tpu.vector_store %arg15[%c0_156, %c0_157], %502 {strides = array<i32>} : memref<8x128xf32, #tpu.memory_space<vmem>>, vector<8x128xf32>,
      %c0_158 = arith.constant 0 : index
      %c0_159 = arith.constant 0 : index
      %504 = vector.load %arg7[%c0_158, %c0_159] : memref<8x128xf32, #tpu.memory_space<vmem>>, vector<8x128xf32>
      %c0_160 = arith.constant 0 : index
      %c0_161 = arith.constant 0 : index
      %505 = vector.load %arg16[%c0_160, %c0_161] : memref<8x128xf32, #tpu.memory_space<vmem>>, vector<8x128xf32>
      tpu.vector_store %arg16[%c0_160, %c0_161], %504 {strides = array<i32>} : memref<8x128xf32, #tpu.memory_space<vmem>>, vector<8x128xf32>,
      %c0_162 = arith.constant 0 : index
      %c0_163 = arith.constant 0 : index
      %506 = vector.load %arg8[%c0_162, %c0_163] : memref<8x128xf32, #tpu.memory_space<vmem>>, vector<8x128xf32>
      %c0_164 = arith.constant 0 : index
      %c0_165 = arith.constant 0 : index
      %507 = vector.load %arg17[%c0_164, %c0_165] : memref<8x128xf32, #tpu.memory_space<vmem>>, vector<8x128xf32>
      tpu.vector_store %arg17[%c0_164, %c0_165], %506 {strides = array<i32>} : memref<8x128xf32, #tpu.memory_space<vmem>>, vector<8x128xf32>,
      %c0_166 = arith.constant 0 : index
      %c0_167 = arith.constant 0 : index
      %508 = vector.load %arg9[%c0_166, %c0_167] : memref<8x128xf32, #tpu.memory_space<vmem>>, vector<8x128xf32>
      %c0_168 = arith.constant 0 : index
      %c0_169 = arith.constant 0 : index
      %509 = vector.load %arg18[%c0_168, %c0_169] : memref<8x128xf32, #tpu.memory_space<vmem>>, vector<8x128xf32>
      tpu.vector_store %arg18[%c0_168, %c0_169], %508 {strides = array<i32>} : memref<8x128xf32, #tpu.memory_space<vmem>>, vector<8x128xf32>,
    } else {
    }
    %c0 = arith.constant 0 : index
    %c0_1 = arith.constant 0 : index
    %3 = vector.load %arg15[%c0, %c0_1] : memref<8x128xf32, #tpu.memory_space<vmem>>, vector<8x128xf32>
    %c0_2 = arith.constant 0 : index
    %c0_3 = arith.constant 0 : index
    %4 = vector.load %arg16[%c0_2, %c0_3] : memref<8x128xf32, #tpu.memory_space<vmem>>, vector<8x128xf32>
    %c0_4 = arith.constant 0 : index
    %c0_5 = arith.constant 0 : index
    %5 = vector.load %arg17[%c0_4, %c0_5] : memref<8x128xf32, #tpu.memory_space<vmem>>, vector<8x128xf32>
    %c0_6 = arith.constant 0 : index
    %c0_7 = arith.constant 0 : index
    %6 = vector.load %arg18[%c0_6, %c0_7] : memref<8x128xf32, #tpu.memory_space<vmem>>, vector<8x128xf32>
    %c0_i32_8 = arith.constant 0 : i32
    %7 = arith.index_cast %c0_i32_8 : i32 to index
    %c0_9 = arith.constant 0 : index
    %c0_10 = arith.constant 0 : index
    %8 = vector.load %arg2[%7, %c0_9, %c0_10] : memref<8x8x512xf32, #tpu.memory_space<vmem>>, vector<1x8x512xf32>
    %9 = vector.shape_cast %8 : vector<1x8x512xf32> to vector<8x512xf32>
    %10 = arith.truncf %3 : vector<8x128xf32> to vector<8x128xbf16>
    %c0_11 = arith.constant 0 : index
    %c0_12 = arith.constant 0 : index
    %11 = vector.load %arg3[%c0_11, %c0_12] : memref<128x512xbf16, #tpu.memory_space<vmem>>, vector<128x512xbf16>
    %cst = arith.constant dense<0.000000e+00> : vector<8x512xf32>
    %12 = tpu.matmul %10, %11, %cst {dimension_numbers = #tpu.dot_dimension_numbers<[1], [0], [0], [1], [0, 0, 1, 1], [], []>} : vector<8x128xbf16>, vector<128x512xbf16>, vector<8x512xf32> -> vector<8x512xf32>
    %13 = arith.addf %9, %12 : vector<8x512xf32>
    %14 = vector.extract_strided_slice %13 {offsets = [0, 0], sizes = [8, 256], strides = [1, 1]} : vector<8x512xf32> to vector<8x256xf32>
    %15 = arith.negf %14 : vector<8x256xf32>
    %16 = math.exp %15 : vector<8x256xf32>
    %cst_13 = arith.constant 1.000000e+00 : f32
    %17 = vector.broadcast %cst_13 : f32 to vector<8x256xf32>
    %18 = arith.addf %17, %16 : vector<8x256xf32>
    %19 = arith.divf %17, %18 : vector<8x256xf32>
    %20 = vector.extract_strided_slice %19 {offsets = [0, 0], sizes = [8, 128], strides = [1, 1]} : vector<8x256xf32> to vector<8x128xf32>
    %21 = vector.extract_strided_slice %19 {offsets = [0, 128], sizes = [8, 128], strides = [1, 1]} : vector<8x256xf32> to vector<8x128xf32>
    %22 = vector.extract_strided_slice %13 {offsets = [0, 256], sizes = [8, 128], strides = [1, 1]} : vector<8x512xf32> to vector<8x128xf32>
    %23 = math.tanh %22 : vector<8x128xf32>
    %24 = vector.extract_strided_slice %13 {offsets = [0, 384], sizes = [8, 128], strides = [1, 1]} : vector<8x512xf32> to vector<8x128xf32>
    %25 = arith.negf %24 : vector<8x128xf32>
    %26 = math.exp %25 : vector<8x128xf32>
    %cst_14 = arith.constant 1.000000e+00 : f32
    %27 = vector.broadcast %cst_14 : f32 to vector<8x128xf32>
    %28 = arith.addf %27, %26 : vector<8x128xf32>
    %29 = arith.divf %27, %28 : vector<8x128xf32>
    %30 = arith.mulf %21, %4 : vector<8x128xf32>
    %31 = arith.mulf %20, %23 : vector<8x128xf32>
    %32 = arith.addf %30, %31 : vector<8x128xf32>
    %33 = math.tanh %32 : vector<8x128xf32>
    %34 = arith.mulf %29, %33 : vector<8x128xf32>
    %35 = arith.truncf %34 : vector<8x128xf32> to vector<8x128xbf16>
    %c0_15 = arith.constant 0 : index
    %c0_16 = arith.constant 0 : index
    %36 = vector.load %arg4[%c0_15, %c0_16] : memref<128x512xbf16, #tpu.memory_space<vmem>>, vector<128x512xbf16>
    %cst_17 = arith.constant dense<0.000000e+00> : vector<8x512xf32>
    %37 = tpu.matmul %35, %36, %cst_17 {dimension_numbers = #tpu.dot_dimension_numbers<[1], [0], [0], [1], [0, 0, 1, 1], [], []>} : vector<8x128xbf16>, vector<128x512xbf16>, vector<8x512xf32> -> vector<8x512xf32>
    %38 = arith.truncf %5 : vector<8x128xf32> to vector<8x128xbf16>
    %c0_18 = arith.constant 0 : index
    %c0_19 = arith.constant 0 : index
    %39 = vector.load %arg5[%c0_18, %c0_19] : memref<128x512xbf16, #tpu.memory_space<vmem>>, vector<128x512xbf16>
    %cst_20 = arith.constant dense<0.000000e+00> : vector<8x512xf32>
    %40 = tpu.matmul %38, %39, %cst_20 {dimension_numbers = #tpu.dot_dimension_numbers<[1], [0], [0], [1], [0, 0, 1, 1], [], []>} : vector<8x128xbf16>, vector<128x512xbf16>, vector<8x512xf32> -> vector<8x512xf32>
    %41 = arith.addf %37, %40 : vector<8x512xf32>
    %42 = vector.extract_strided_slice %41 {offsets = [0, 0], sizes = [8, 256], strides = [1, 1]} : vector<8x512xf32> to vector<8x256xf32>
    %43 = arith.negf %42 : vector<8x256xf32>
    %44 = math.exp %43 : vector<8x256xf32>
    %cst_21 = arith.constant 1.000000e+00 : f32
    %45 = vector.broadcast %cst_21 : f32 to vector<8x256xf32>
    %46 = arith.addf %45, %44 : vector<8x256xf32>
    %47 = arith.divf %45, %46 : vector<8x256xf32>
    %48 = vector.extract_strided_slice %47 {offsets = [0, 0], sizes = [8, 128], strides = [1, 1]} : vector<8x256xf32> to vector<8x128xf32>
    %49 = vector.extract_strided_slice %47 {offsets = [0, 128], sizes = [8, 128], strides = [1, 1]} : vector<8x256xf32> to vector<8x128xf32>
    %50 = vector.extract_strided_slice %41 {offsets = [0, 256], sizes = [8, 128], strides = [1, 1]} : vector<8x512xf32> to vector<8x128xf32>
    %51 = math.tanh %50 : vector<8x128xf32>
    %52 = vector.extract_strided_slice %41 {offsets = [0, 384], sizes = [8, 128], strides = [1, 1]} : vector<8x512xf32> to vector<8x128xf32>
    %53 = arith.negf %52 : vector<8x128xf32>
    %54 = math.exp %53 : vector<8x128xf32>
    %cst_22 = arith.constant 1.000000e+00 : f32
    %55 = vector.broadcast %cst_22 : f32 to vector<8x128xf32>
    %56 = arith.addf %55, %54 : vector<8x128xf32>
    %57 = arith.divf %55, %56 : vector<8x128xf32>
    %58 = arith.mulf %49, %6 : vector<8x128xf32>
    %59 = arith.mulf %48, %51 : vector<8x128xf32>
    %60 = arith.addf %58, %59 : vector<8x128xf32>
    %61 = math.tanh %60 : vector<8x128xf32>
    %62 = arith.mulf %57, %61 : vector<8x128xf32>
    %63 = arith.truncf %62 : vector<8x128xf32> to vector<8x128xbf16>
    %64 = arith.index_cast %c0_i32_8 : i32 to index
    %c0_23 = arith.constant 0 : index
    %c0_24 = arith.constant 0 : index
    %65 = vector.load %arg10[%64, %c0_23, %c0_24] : memref<8x8x128xbf16, #tpu.memory_space<vmem>>, vector<1x8x128xbf16>
    %66 = vector.shape_cast %65 : vector<1x8x128xbf16> to vector<8x128xbf16>
    %67 = vector.shape_cast %63 : vector<8x128xbf16> to vector<1x8x128xbf16>
    tpu.vector_store %arg10[%64, %c0_23, %c0_24], %67 {strides = array<i32>} : memref<8x8x128xbf16, #tpu.memory_space<vmem>>, vector<1x8x128xbf16>,
    %c1_i32 = arith.constant 1 : i32
    %68 = arith.index_cast %c1_i32 : i32 to index
    %c0_25 = arith.constant 0 : index
    %c0_26 = arith.constant 0 : index
    %69 = vector.load %arg2[%68, %c0_25, %c0_26] : memref<8x8x512xf32, #tpu.memory_space<vmem>>, vector<1x8x512xf32>
    %70 = vector.shape_cast %69 : vector<1x8x512xf32> to vector<8x512xf32>
    %71 = arith.truncf %34 : vector<8x128xf32> to vector<8x128xbf16>
    %c0_27 = arith.constant 0 : index
    %c0_28 = arith.constant 0 : index
    %72 = vector.load %arg3[%c0_27, %c0_28] : memref<128x512xbf16, #tpu.memory_space<vmem>>, vector<128x512xbf16>
    %cst_29 = arith.constant dense<0.000000e+00> : vector<8x512xf32>
    %73 = tpu.matmul %71, %72, %cst_29 {dimension_numbers = #tpu.dot_dimension_numbers<[1], [0], [0], [1], [0, 0, 1, 1], [], []>} : vector<8x128xbf16>, vector<128x512xbf16>, vector<8x512xf32> -> vector<8x512xf32>
    %74 = arith.addf %70, %73 : vector<8x512xf32>
    %75 = vector.extract_strided_slice %74 {offsets = [0, 0], sizes = [8, 256], strides = [1, 1]} : vector<8x512xf32> to vector<8x256xf32>
    %76 = arith.negf %75 : vector<8x256xf32>
    %77 = math.exp %76 : vector<8x256xf32>
    %cst_30 = arith.constant 1.000000e+00 : f32
    %78 = vector.broadcast %cst_30 : f32 to vector<8x256xf32>
    %79 = arith.addf %78, %77 : vector<8x256xf32>
    %80 = arith.divf %78, %79 : vector<8x256xf32>
    %81 = vector.extract_strided_slice %80 {offsets = [0, 0], sizes = [8, 128], strides = [1, 1]} : vector<8x256xf32> to vector<8x128xf32>
    %82 = vector.extract_strided_slice %80 {offsets = [0, 128], sizes = [8, 128], strides = [1, 1]} : vector<8x256xf32> to vector<8x128xf32>
    %83 = vector.extract_strided_slice %74 {offsets = [0, 256], sizes = [8, 128], strides = [1, 1]} : vector<8x512xf32> to vector<8x128xf32>
    %84 = math.tanh %83 : vector<8x128xf32>
    %85 = vector.extract_strided_slice %74 {offsets = [0, 384], sizes = [8, 128], strides = [1, 1]} : vector<8x512xf32> to vector<8x128xf32>
    %86 = arith.negf %85 : vector<8x128xf32>
    %87 = math.exp %86 : vector<8x128xf32>
    %cst_31 = arith.constant 1.000000e+00 : f32
    %88 = vector.broadcast %cst_31 : f32 to vector<8x128xf32>
    %89 = arith.addf %88, %87 : vector<8x128xf32>
    %90 = arith.divf %88, %89 : vector<8x128xf32>
    %91 = arith.mulf %82, %32 : vector<8x128xf32>
    %92 = arith.mulf %81, %84 : vector<8x128xf32>
    %93 = arith.addf %91, %92 : vector<8x128xf32>
    %94 = math.tanh %93 : vector<8x128xf32>
    %95 = arith.mulf %90, %94 : vector<8x128xf32>
    %96 = arith.truncf %95 : vector<8x128xf32> to vector<8x128xbf16>
    %c0_32 = arith.constant 0 : index
    %c0_33 = arith.constant 0 : index
    %97 = vector.load %arg4[%c0_32, %c0_33] : memref<128x512xbf16, #tpu.memory_space<vmem>>, vector<128x512xbf16>
    %cst_34 = arith.constant dense<0.000000e+00> : vector<8x512xf32>
    %98 = tpu.matmul %96, %97, %cst_34 {dimension_numbers = #tpu.dot_dimension_numbers<[1], [0], [0], [1], [0, 0, 1, 1], [], []>} : vector<8x128xbf16>, vector<128x512xbf16>, vector<8x512xf32> -> vector<8x512xf32>
    %99 = arith.truncf %62 : vector<8x128xf32> to vector<8x128xbf16>
    %c0_35 = arith.constant 0 : index
    %c0_36 = arith.constant 0 : index
    %100 = vector.load %arg5[%c0_35, %c0_36] : memref<128x512xbf16, #tpu.memory_space<vmem>>, vector<128x512xbf16>
    %cst_37 = arith.constant dense<0.000000e+00> : vector<8x512xf32>
    %101 = tpu.matmul %99, %100, %cst_37 {dimension_numbers = #tpu.dot_dimension_numbers<[1], [0], [0], [1], [0, 0, 1, 1], [], []>} : vector<8x128xbf16>, vector<128x512xbf16>, vector<8x512xf32> -> vector<8x512xf32>
    %102 = arith.addf %98, %101 : vector<8x512xf32>
    %103 = vector.extract_strided_slice %102 {offsets = [0, 0], sizes = [8, 256], strides = [1, 1]} : vector<8x512xf32> to vector<8x256xf32>
    %104 = arith.negf %103 : vector<8x256xf32>
    %105 = math.exp %104 : vector<8x256xf32>
    %cst_38 = arith.constant 1.000000e+00 : f32
    %106 = vector.broadcast %cst_38 : f32 to vector<8x256xf32>
    %107 = arith.addf %106, %105 : vector<8x256xf32>
    %108 = arith.divf %106, %107 : vector<8x256xf32>
    %109 = vector.extract_strided_slice %108 {offsets = [0, 0], sizes = [8, 128], strides = [1, 1]} : vector<8x256xf32> to vector<8x128xf32>
    %110 = vector.extract_strided_slice %108 {offsets = [0, 128], sizes = [8, 128], strides = [1, 1]} : vector<8x256xf32> to vector<8x128xf32>
    %111 = vector.extract_strided_slice %102 {offsets = [0, 256], sizes = [8, 128], strides = [1, 1]} : vector<8x512xf32> to vector<8x128xf32>
    %112 = math.tanh %111 : vector<8x128xf32>
    %113 = vector.extract_strided_slice %102 {offsets = [0, 384], sizes = [8, 128], strides = [1, 1]} : vector<8x512xf32> to vector<8x128xf32>
    %114 = arith.negf %113 : vector<8x128xf32>
    %115 = math.exp %114 : vector<8x128xf32>
    %cst_39 = arith.constant 1.000000e+00 : f32
    %116 = vector.broadcast %cst_39 : f32 to vector<8x128xf32>
    %117 = arith.addf %116, %115 : vector<8x128xf32>
    %118 = arith.divf %116, %117 : vector<8x128xf32>
    %119 = arith.mulf %110, %60 : vector<8x128xf32>
    %120 = arith.mulf %109, %112 : vector<8x128xf32>
    %121 = arith.addf %119, %120 : vector<8x128xf32>
    %122 = math.tanh %121 : vector<8x128xf32>
    %123 = arith.mulf %118, %122 : vector<8x128xf32>
    %124 = arith.truncf %123 : vector<8x128xf32> to vector<8x128xbf16>
    %125 = arith.index_cast %c1_i32 : i32 to index
    %c0_40 = arith.constant 0 : index
    %c0_41 = arith.constant 0 : index
    %126 = vector.load %arg10[%125, %c0_40, %c0_41] : memref<8x8x128xbf16, #tpu.memory_space<vmem>>, vector<1x8x128xbf16>
    %127 = vector.shape_cast %126 : vector<1x8x128xbf16> to vector<8x128xbf16>
    %128 = vector.shape_cast %124 : vector<8x128xbf16> to vector<1x8x128xbf16>
    tpu.vector_store %arg10[%125, %c0_40, %c0_41], %128 {strides = array<i32>} : memref<8x8x128xbf16, #tpu.memory_space<vmem>>, vector<1x8x128xbf16>,
    %c2_i32 = arith.constant 2 : i32
    %129 = arith.index_cast %c2_i32 : i32 to index
    %c0_42 = arith.constant 0 : index
    %c0_43 = arith.constant 0 : index
    %130 = vector.load %arg2[%129, %c0_42, %c0_43] : memref<8x8x512xf32, #tpu.memory_space<vmem>>, vector<1x8x512xf32>
    %131 = vector.shape_cast %130 : vector<1x8x512xf32> to vector<8x512xf32>
    %132 = arith.truncf %95 : vector<8x128xf32> to vector<8x128xbf16>
    %c0_44 = arith.constant 0 : index
    %c0_45 = arith.constant 0 : index
    %133 = vector.load %arg3[%c0_44, %c0_45] : memref<128x512xbf16, #tpu.memory_space<vmem>>, vector<128x512xbf16>
    %cst_46 = arith.constant dense<0.000000e+00> : vector<8x512xf32>
    %134 = tpu.matmul %132, %133, %cst_46 {dimension_numbers = #tpu.dot_dimension_numbers<[1], [0], [0], [1], [0, 0, 1, 1], [], []>} : vector<8x128xbf16>, vector<128x512xbf16>, vector<8x512xf32> -> vector<8x512xf32>
    %135 = arith.addf %131, %134 : vector<8x512xf32>
    %136 = vector.extract_strided_slice %135 {offsets = [0, 0], sizes = [8, 256], strides = [1, 1]} : vector<8x512xf32> to vector<8x256xf32>
    %137 = arith.negf %136 : vector<8x256xf32>
    %138 = math.exp %137 : vector<8x256xf32>
    %cst_47 = arith.constant 1.000000e+00 : f32
    %139 = vector.broadcast %cst_47 : f32 to vector<8x256xf32>
    %140 = arith.addf %139, %138 : vector<8x256xf32>
    %141 = arith.divf %139, %140 : vector<8x256xf32>
    %142 = vector.extract_strided_slice %141 {offsets = [0, 0], sizes = [8, 128], strides = [1, 1]} : vector<8x256xf32> to vector<8x128xf32>
    %143 = vector.extract_strided_slice %141 {offsets = [0, 128], sizes = [8, 128], strides = [1, 1]} : vector<8x256xf32> to vector<8x128xf32>
    %144 = vector.extract_strided_slice %135 {offsets = [0, 256], sizes = [8, 128], strides = [1, 1]} : vector<8x512xf32> to vector<8x128xf32>
    %145 = math.tanh %144 : vector<8x128xf32>
    %146 = vector.extract_strided_slice %135 {offsets = [0, 384], sizes = [8, 128], strides = [1, 1]} : vector<8x512xf32> to vector<8x128xf32>
    %147 = arith.negf %146 : vector<8x128xf32>
    %148 = math.exp %147 : vector<8x128xf32>
    %cst_48 = arith.constant 1.000000e+00 : f32
    %149 = vector.broadcast %cst_48 : f32 to vector<8x128xf32>
    %150 = arith.addf %149, %148 : vector<8x128xf32>
    %151 = arith.divf %149, %150 : vector<8x128xf32>
    %152 = arith.mulf %143, %93 : vector<8x128xf32>
    %153 = arith.mulf %142, %145 : vector<8x128xf32>
    %154 = arith.addf %152, %153 : vector<8x128xf32>
    %155 = math.tanh %154 : vector<8x128xf32>
    %156 = arith.mulf %151, %155 : vector<8x128xf32>
    %157 = arith.truncf %156 : vector<8x128xf32> to vector<8x128xbf16>
    %c0_49 = arith.constant 0 : index
    %c0_50 = arith.constant 0 : index
    %158 = vector.load %arg4[%c0_49, %c0_50] : memref<128x512xbf16, #tpu.memory_space<vmem>>, vector<128x512xbf16>
    %cst_51 = arith.constant dense<0.000000e+00> : vector<8x512xf32>
    %159 = tpu.matmul %157, %158, %cst_51 {dimension_numbers = #tpu.dot_dimension_numbers<[1], [0], [0], [1], [0, 0, 1, 1], [], []>} : vector<8x128xbf16>, vector<128x512xbf16>, vector<8x512xf32> -> vector<8x512xf32>
    %160 = arith.truncf %123 : vector<8x128xf32> to vector<8x128xbf16>
    %c0_52 = arith.constant 0 : index
    %c0_53 = arith.constant 0 : index
    %161 = vector.load %arg5[%c0_52, %c0_53] : memref<128x512xbf16, #tpu.memory_space<vmem>>, vector<128x512xbf16>
    %cst_54 = arith.constant dense<0.000000e+00> : vector<8x512xf32>
    %162 = tpu.matmul %160, %161, %cst_54 {dimension_numbers = #tpu.dot_dimension_numbers<[1], [0], [0], [1], [0, 0, 1, 1], [], []>} : vector<8x128xbf16>, vector<128x512xbf16>, vector<8x512xf32> -> vector<8x512xf32>
    %163 = arith.addf %159, %162 : vector<8x512xf32>
    %164 = vector.extract_strided_slice %163 {offsets = [0, 0], sizes = [8, 256], strides = [1, 1]} : vector<8x512xf32> to vector<8x256xf32>
    %165 = arith.negf %164 : vector<8x256xf32>
    %166 = math.exp %165 : vector<8x256xf32>
    %cst_55 = arith.constant 1.000000e+00 : f32
    %167 = vector.broadcast %cst_55 : f32 to vector<8x256xf32>
    %168 = arith.addf %167, %166 : vector<8x256xf32>
    %169 = arith.divf %167, %168 : vector<8x256xf32>
    %170 = vector.extract_strided_slice %169 {offsets = [0, 0], sizes = [8, 128], strides = [1, 1]} : vector<8x256xf32> to vector<8x128xf32>
    %171 = vector.extract_strided_slice %169 {offsets = [0, 128], sizes = [8, 128], strides = [1, 1]} : vector<8x256xf32> to vector<8x128xf32>
    %172 = vector.extract_strided_slice %163 {offsets = [0, 256], sizes = [8, 128], strides = [1, 1]} : vector<8x512xf32> to vector<8x128xf32>
    %173 = math.tanh %172 : vector<8x128xf32>
    %174 = vector.extract_strided_slice %163 {offsets = [0, 384], sizes = [8, 128], strides = [1, 1]} : vector<8x512xf32> to vector<8x128xf32>
    %175 = arith.negf %174 : vector<8x128xf32>
    %176 = math.exp %175 : vector<8x128xf32>
    %cst_56 = arith.constant 1.000000e+00 : f32
    %177 = vector.broadcast %cst_56 : f32 to vector<8x128xf32>
    %178 = arith.addf %177, %176 : vector<8x128xf32>
    %179 = arith.divf %177, %178 : vector<8x128xf32>
    %180 = arith.mulf %171, %121 : vector<8x128xf32>
    %181 = arith.mulf %170, %173 : vector<8x128xf32>
    %182 = arith.addf %180, %181 : vector<8x128xf32>
    %183 = math.tanh %182 : vector<8x128xf32>
    %184 = arith.mulf %179, %183 : vector<8x128xf32>
    %185 = arith.truncf %184 : vector<8x128xf32> to vector<8x128xbf16>
    %186 = arith.index_cast %c2_i32 : i32 to index
    %c0_57 = arith.constant 0 : index
    %c0_58 = arith.constant 0 : index
    %187 = vector.load %arg10[%186, %c0_57, %c0_58] : memref<8x8x128xbf16, #tpu.memory_space<vmem>>, vector<1x8x128xbf16>
    %188 = vector.shape_cast %187 : vector<1x8x128xbf16> to vector<8x128xbf16>
    %189 = vector.shape_cast %185 : vector<8x128xbf16> to vector<1x8x128xbf16>
    tpu.vector_store %arg10[%186, %c0_57, %c0_58], %189 {strides = array<i32>} : memref<8x8x128xbf16, #tpu.memory_space<vmem>>, vector<1x8x128xbf16>,
    %c3_i32 = arith.constant 3 : i32
    %190 = arith.index_cast %c3_i32 : i32 to index
    %c0_59 = arith.constant 0 : index
    %c0_60 = arith.constant 0 : index
    %191 = vector.load %arg2[%190, %c0_59, %c0_60] : memref<8x8x512xf32, #tpu.memory_space<vmem>>, vector<1x8x512xf32>
    %192 = vector.shape_cast %191 : vector<1x8x512xf32> to vector<8x512xf32>
    %193 = arith.truncf %156 : vector<8x128xf32> to vector<8x128xbf16>
    %c0_61 = arith.constant 0 : index
    %c0_62 = arith.constant 0 : index
    %194 = vector.load %arg3[%c0_61, %c0_62] : memref<128x512xbf16, #tpu.memory_space<vmem>>, vector<128x512xbf16>
    %cst_63 = arith.constant dense<0.000000e+00> : vector<8x512xf32>
    %195 = tpu.matmul %193, %194, %cst_63 {dimension_numbers = #tpu.dot_dimension_numbers<[1], [0], [0], [1], [0, 0, 1, 1], [], []>} : vector<8x128xbf16>, vector<128x512xbf16>, vector<8x512xf32> -> vector<8x512xf32>
    %196 = arith.addf %192, %195 : vector<8x512xf32>
    %197 = vector.extract_strided_slice %196 {offsets = [0, 0], sizes = [8, 256], strides = [1, 1]} : vector<8x512xf32> to vector<8x256xf32>
    %198 = arith.negf %197 : vector<8x256xf32>
    %199 = math.exp %198 : vector<8x256xf32>
    %cst_64 = arith.constant 1.000000e+00 : f32
    %200 = vector.broadcast %cst_64 : f32 to vector<8x256xf32>
    %201 = arith.addf %200, %199 : vector<8x256xf32>
    %202 = arith.divf %200, %201 : vector<8x256xf32>
    %203 = vector.extract_strided_slice %202 {offsets = [0, 0], sizes = [8, 128], strides = [1, 1]} : vector<8x256xf32> to vector<8x128xf32>
    %204 = vector.extract_strided_slice %202 {offsets = [0, 128], sizes = [8, 128], strides = [1, 1]} : vector<8x256xf32> to vector<8x128xf32>
    %205 = vector.extract_strided_slice %196 {offsets = [0, 256], sizes = [8, 128], strides = [1, 1]} : vector<8x512xf32> to vector<8x128xf32>
    %206 = math.tanh %205 : vector<8x128xf32>
    %207 = vector.extract_strided_slice %196 {offsets = [0, 384], sizes = [8, 128], strides = [1, 1]} : vector<8x512xf32> to vector<8x128xf32>
    %208 = arith.negf %207 : vector<8x128xf32>
    %209 = math.exp %208 : vector<8x128xf32>
    %cst_65 = arith.constant 1.000000e+00 : f32
    %210 = vector.broadcast %cst_65 : f32 to vector<8x128xf32>
    %211 = arith.addf %210, %209 : vector<8x128xf32>
    %212 = arith.divf %210, %211 : vector<8x128xf32>
    %213 = arith.mulf %204, %154 : vector<8x128xf32>
    %214 = arith.mulf %203, %206 : vector<8x128xf32>
    %215 = arith.addf %213, %214 : vector<8x128xf32>
    %216 = math.tanh %215 : vector<8x128xf32>
    %217 = arith.mulf %212, %216 : vector<8x128xf32>
    %218 = arith.truncf %217 : vector<8x128xf32> to vector<8x128xbf16>
    %c0_66 = arith.constant 0 : index
    %c0_67 = arith.constant 0 : index
    %219 = vector.load %arg4[%c0_66, %c0_67] : memref<128x512xbf16, #tpu.memory_space<vmem>>, vector<128x512xbf16>
    %cst_68 = arith.constant dense<0.000000e+00> : vector<8x512xf32>
    %220 = tpu.matmul %218, %219, %cst_68 {dimension_numbers = #tpu.dot_dimension_numbers<[1], [0], [0], [1], [0, 0, 1, 1], [], []>} : vector<8x128xbf16>, vector<128x512xbf16>, vector<8x512xf32> -> vector<8x512xf32>
    %221 = arith.truncf %184 : vector<8x128xf32> to vector<8x128xbf16>
    %c0_69 = arith.constant 0 : index
    %c0_70 = arith.constant 0 : index
    %222 = vector.load %arg5[%c0_69, %c0_70] : memref<128x512xbf16, #tpu.memory_space<vmem>>, vector<128x512xbf16>
    %cst_71 = arith.constant dense<0.000000e+00> : vector<8x512xf32>
    %223 = tpu.matmul %221, %222, %cst_71 {dimension_numbers = #tpu.dot_dimension_numbers<[1], [0], [0], [1], [0, 0, 1, 1], [], []>} : vector<8x128xbf16>, vector<128x512xbf16>, vector<8x512xf32> -> vector<8x512xf32>
    %224 = arith.addf %220, %223 : vector<8x512xf32>
    %225 = vector.extract_strided_slice %224 {offsets = [0, 0], sizes = [8, 256], strides = [1, 1]} : vector<8x512xf32> to vector<8x256xf32>
    %226 = arith.negf %225 : vector<8x256xf32>
    %227 = math.exp %226 : vector<8x256xf32>
    %cst_72 = arith.constant 1.000000e+00 : f32
    %228 = vector.broadcast %cst_72 : f32 to vector<8x256xf32>
    %229 = arith.addf %228, %227 : vector<8x256xf32>
    %230 = arith.divf %228, %229 : vector<8x256xf32>
    %231 = vector.extract_strided_slice %230 {offsets = [0, 0], sizes = [8, 128], strides = [1, 1]} : vector<8x256xf32> to vector<8x128xf32>
    %232 = vector.extract_strided_slice %230 {offsets = [0, 128], sizes = [8, 128], strides = [1, 1]} : vector<8x256xf32> to vector<8x128xf32>
    %233 = vector.extract_strided_slice %224 {offsets = [0, 256], sizes = [8, 128], strides = [1, 1]} : vector<8x512xf32> to vector<8x128xf32>
    %234 = math.tanh %233 : vector<8x128xf32>
    %235 = vector.extract_strided_slice %224 {offsets = [0, 384], sizes = [8, 128], strides = [1, 1]} : vector<8x512xf32> to vector<8x128xf32>
    %236 = arith.negf %235 : vector<8x128xf32>
    %237 = math.exp %236 : vector<8x128xf32>
    %cst_73 = arith.constant 1.000000e+00 : f32
    %238 = vector.broadcast %cst_73 : f32 to vector<8x128xf32>
    %239 = arith.addf %238, %237 : vector<8x128xf32>
    %240 = arith.divf %238, %239 : vector<8x128xf32>
    %241 = arith.mulf %232, %182 : vector<8x128xf32>
    %242 = arith.mulf %231, %234 : vector<8x128xf32>
    %243 = arith.addf %241, %242 : vector<8x128xf32>
    %244 = math.tanh %243 : vector<8x128xf32>
    %245 = arith.mulf %240, %244 : vector<8x128xf32>
    %246 = arith.truncf %245 : vector<8x128xf32> to vector<8x128xbf16>
    %247 = arith.index_cast %c3_i32 : i32 to index
    %c0_74 = arith.constant 0 : index
    %c0_75 = arith.constant 0 : index
    %248 = vector.load %arg10[%247, %c0_74, %c0_75] : memref<8x8x128xbf16, #tpu.memory_space<vmem>>, vector<1x8x128xbf16>
    %249 = vector.shape_cast %248 : vector<1x8x128xbf16> to vector<8x128xbf16>
    %250 = vector.shape_cast %246 : vector<8x128xbf16> to vector<1x8x128xbf16>
    tpu.vector_store %arg10[%247, %c0_74, %c0_75], %250 {strides = array<i32>} : memref<8x8x128xbf16, #tpu.memory_space<vmem>>, vector<1x8x128xbf16>,
    %c4_i32 = arith.constant 4 : i32
    %251 = arith.index_cast %c4_i32 : i32 to index
    %c0_76 = arith.constant 0 : index
    %c0_77 = arith.constant 0 : index
    %252 = vector.load %arg2[%251, %c0_76, %c0_77] : memref<8x8x512xf32, #tpu.memory_space<vmem>>, vector<1x8x512xf32>
    %253 = vector.shape_cast %252 : vector<1x8x512xf32> to vector<8x512xf32>
    %254 = arith.truncf %217 : vector<8x128xf32> to vector<8x128xbf16>
    %c0_78 = arith.constant 0 : index
    %c0_79 = arith.constant 0 : index
    %255 = vector.load %arg3[%c0_78, %c0_79] : memref<128x512xbf16, #tpu.memory_space<vmem>>, vector<128x512xbf16>
    %cst_80 = arith.constant dense<0.000000e+00> : vector<8x512xf32>
    %256 = tpu.matmul %254, %255, %cst_80 {dimension_numbers = #tpu.dot_dimension_numbers<[1], [0], [0], [1], [0, 0, 1, 1], [], []>} : vector<8x128xbf16>, vector<128x512xbf16>, vector<8x512xf32> -> vector<8x512xf32>
    %257 = arith.addf %253, %256 : vector<8x512xf32>
    %258 = vector.extract_strided_slice %257 {offsets = [0, 0], sizes = [8, 256], strides = [1, 1]} : vector<8x512xf32> to vector<8x256xf32>
    %259 = arith.negf %258 : vector<8x256xf32>
    %260 = math.exp %259 : vector<8x256xf32>
    %cst_81 = arith.constant 1.000000e+00 : f32
    %261 = vector.broadcast %cst_81 : f32 to vector<8x256xf32>
    %262 = arith.addf %261, %260 : vector<8x256xf32>
    %263 = arith.divf %261, %262 : vector<8x256xf32>
    %264 = vector.extract_strided_slice %263 {offsets = [0, 0], sizes = [8, 128], strides = [1, 1]} : vector<8x256xf32> to vector<8x128xf32>
    %265 = vector.extract_strided_slice %263 {offsets = [0, 128], sizes = [8, 128], strides = [1, 1]} : vector<8x256xf32> to vector<8x128xf32>
    %266 = vector.extract_strided_slice %257 {offsets = [0, 256], sizes = [8, 128], strides = [1, 1]} : vector<8x512xf32> to vector<8x128xf32>
    %267 = math.tanh %266 : vector<8x128xf32>
    %268 = vector.extract_strided_slice %257 {offsets = [0, 384], sizes = [8, 128], strides = [1, 1]} : vector<8x512xf32> to vector<8x128xf32>
    %269 = arith.negf %268 : vector<8x128xf32>
    %270 = math.exp %269 : vector<8x128xf32>
    %cst_82 = arith.constant 1.000000e+00 : f32
    %271 = vector.broadcast %cst_82 : f32 to vector<8x128xf32>
    %272 = arith.addf %271, %270 : vector<8x128xf32>
    %273 = arith.divf %271, %272 : vector<8x128xf32>
    %274 = arith.mulf %265, %215 : vector<8x128xf32>
    %275 = arith.mulf %264, %267 : vector<8x128xf32>
    %276 = arith.addf %274, %275 : vector<8x128xf32>
    %277 = math.tanh %276 : vector<8x128xf32>
    %278 = arith.mulf %273, %277 : vector<8x128xf32>
    %279 = arith.truncf %278 : vector<8x128xf32> to vector<8x128xbf16>
    %c0_83 = arith.constant 0 : index
    %c0_84 = arith.constant 0 : index
    %280 = vector.load %arg4[%c0_83, %c0_84] : memref<128x512xbf16, #tpu.memory_space<vmem>>, vector<128x512xbf16>
    %cst_85 = arith.constant dense<0.000000e+00> : vector<8x512xf32>
    %281 = tpu.matmul %279, %280, %cst_85 {dimension_numbers = #tpu.dot_dimension_numbers<[1], [0], [0], [1], [0, 0, 1, 1], [], []>} : vector<8x128xbf16>, vector<128x512xbf16>, vector<8x512xf32> -> vector<8x512xf32>
    %282 = arith.truncf %245 : vector<8x128xf32> to vector<8x128xbf16>
    %c0_86 = arith.constant 0 : index
    %c0_87 = arith.constant 0 : index
    %283 = vector.load %arg5[%c0_86, %c0_87] : memref<128x512xbf16, #tpu.memory_space<vmem>>, vector<128x512xbf16>
    %cst_88 = arith.constant dense<0.000000e+00> : vector<8x512xf32>
    %284 = tpu.matmul %282, %283, %cst_88 {dimension_numbers = #tpu.dot_dimension_numbers<[1], [0], [0], [1], [0, 0, 1, 1], [], []>} : vector<8x128xbf16>, vector<128x512xbf16>, vector<8x512xf32> -> vector<8x512xf32>
    %285 = arith.addf %281, %284 : vector<8x512xf32>
    %286 = vector.extract_strided_slice %285 {offsets = [0, 0], sizes = [8, 256], strides = [1, 1]} : vector<8x512xf32> to vector<8x256xf32>
    %287 = arith.negf %286 : vector<8x256xf32>
    %288 = math.exp %287 : vector<8x256xf32>
    %cst_89 = arith.constant 1.000000e+00 : f32
    %289 = vector.broadcast %cst_89 : f32 to vector<8x256xf32>
    %290 = arith.addf %289, %288 : vector<8x256xf32>
    %291 = arith.divf %289, %290 : vector<8x256xf32>
    %292 = vector.extract_strided_slice %291 {offsets = [0, 0], sizes = [8, 128], strides = [1, 1]} : vector<8x256xf32> to vector<8x128xf32>
    %293 = vector.extract_strided_slice %291 {offsets = [0, 128], sizes = [8, 128], strides = [1, 1]} : vector<8x256xf32> to vector<8x128xf32>
    %294 = vector.extract_strided_slice %285 {offsets = [0, 256], sizes = [8, 128], strides = [1, 1]} : vector<8x512xf32> to vector<8x128xf32>
    %295 = math.tanh %294 : vector<8x128xf32>
    %296 = vector.extract_strided_slice %285 {offsets = [0, 384], sizes = [8, 128], strides = [1, 1]} : vector<8x512xf32> to vector<8x128xf32>
    %297 = arith.negf %296 : vector<8x128xf32>
    %298 = math.exp %297 : vector<8x128xf32>
    %cst_90 = arith.constant 1.000000e+00 : f32
    %299 = vector.broadcast %cst_90 : f32 to vector<8x128xf32>
    %300 = arith.addf %299, %298 : vector<8x128xf32>
    %301 = arith.divf %299, %300 : vector<8x128xf32>
    %302 = arith.mulf %293, %243 : vector<8x128xf32>
    %303 = arith.mulf %292, %295 : vector<8x128xf32>
    %304 = arith.addf %302, %303 : vector<8x128xf32>
    %305 = math.tanh %304 : vector<8x128xf32>
    %306 = arith.mulf %301, %305 : vector<8x128xf32>
    %307 = arith.truncf %306 : vector<8x128xf32> to vector<8x128xbf16>
    %308 = arith.index_cast %c4_i32 : i32 to index
    %c0_91 = arith.constant 0 : index
    %c0_92 = arith.constant 0 : index
    %309 = vector.load %arg10[%308, %c0_91, %c0_92] : memref<8x8x128xbf16, #tpu.memory_space<vmem>>, vector<1x8x128xbf16>
    %310 = vector.shape_cast %309 : vector<1x8x128xbf16> to vector<8x128xbf16>
    %311 = vector.shape_cast %307 : vector<8x128xbf16> to vector<1x8x128xbf16>
    tpu.vector_store %arg10[%308, %c0_91, %c0_92], %311 {strides = array<i32>} : memref<8x8x128xbf16, #tpu.memory_space<vmem>>, vector<1x8x128xbf16>,
    %c5_i32 = arith.constant 5 : i32
    %312 = arith.index_cast %c5_i32 : i32 to index
    %c0_93 = arith.constant 0 : index
    %c0_94 = arith.constant 0 : index
    %313 = vector.load %arg2[%312, %c0_93, %c0_94] : memref<8x8x512xf32, #tpu.memory_space<vmem>>, vector<1x8x512xf32>
    %314 = vector.shape_cast %313 : vector<1x8x512xf32> to vector<8x512xf32>
    %315 = arith.truncf %278 : vector<8x128xf32> to vector<8x128xbf16>
    %c0_95 = arith.constant 0 : index
    %c0_96 = arith.constant 0 : index
    %316 = vector.load %arg3[%c0_95, %c0_96] : memref<128x512xbf16, #tpu.memory_space<vmem>>, vector<128x512xbf16>
    %cst_97 = arith.constant dense<0.000000e+00> : vector<8x512xf32>
    %317 = tpu.matmul %315, %316, %cst_97 {dimension_numbers = #tpu.dot_dimension_numbers<[1], [0], [0], [1], [0, 0, 1, 1], [], []>} : vector<8x128xbf16>, vector<128x512xbf16>, vector<8x512xf32> -> vector<8x512xf32>
    %318 = arith.addf %314, %317 : vector<8x512xf32>
    %319 = vector.extract_strided_slice %318 {offsets = [0, 0], sizes = [8, 256], strides = [1, 1]} : vector<8x512xf32> to vector<8x256xf32>
    %320 = arith.negf %319 : vector<8x256xf32>
    %321 = math.exp %320 : vector<8x256xf32>
    %cst_98 = arith.constant 1.000000e+00 : f32
    %322 = vector.broadcast %cst_98 : f32 to vector<8x256xf32>
    %323 = arith.addf %322, %321 : vector<8x256xf32>
    %324 = arith.divf %322, %323 : vector<8x256xf32>
    %325 = vector.extract_strided_slice %324 {offsets = [0, 0], sizes = [8, 128], strides = [1, 1]} : vector<8x256xf32> to vector<8x128xf32>
    %326 = vector.extract_strided_slice %324 {offsets = [0, 128], sizes = [8, 128], strides = [1, 1]} : vector<8x256xf32> to vector<8x128xf32>
    %327 = vector.extract_strided_slice %318 {offsets = [0, 256], sizes = [8, 128], strides = [1, 1]} : vector<8x512xf32> to vector<8x128xf32>
    %328 = math.tanh %327 : vector<8x128xf32>
    %329 = vector.extract_strided_slice %318 {offsets = [0, 384], sizes = [8, 128], strides = [1, 1]} : vector<8x512xf32> to vector<8x128xf32>
    %330 = arith.negf %329 : vector<8x128xf32>
    %331 = math.exp %330 : vector<8x128xf32>
    %cst_99 = arith.constant 1.000000e+00 : f32
    %332 = vector.broadcast %cst_99 : f32 to vector<8x128xf32>
    %333 = arith.addf %332, %331 : vector<8x128xf32>
    %334 = arith.divf %332, %333 : vector<8x128xf32>
    %335 = arith.mulf %326, %276 : vector<8x128xf32>
    %336 = arith.mulf %325, %328 : vector<8x128xf32>
    %337 = arith.addf %335, %336 : vector<8x128xf32>
    %338 = math.tanh %337 : vector<8x128xf32>
    %339 = arith.mulf %334, %338 : vector<8x128xf32>
    %340 = arith.truncf %339 : vector<8x128xf32> to vector<8x128xbf16>
    %c0_100 = arith.constant 0 : index
    %c0_101 = arith.constant 0 : index
    %341 = vector.load %arg4[%c0_100, %c0_101] : memref<128x512xbf16, #tpu.memory_space<vmem>>, vector<128x512xbf16>
    %cst_102 = arith.constant dense<0.000000e+00> : vector<8x512xf32>
    %342 = tpu.matmul %340, %341, %cst_102 {dimension_numbers = #tpu.dot_dimension_numbers<[1], [0], [0], [1], [0, 0, 1, 1], [], []>} : vector<8x128xbf16>, vector<128x512xbf16>, vector<8x512xf32> -> vector<8x512xf32>
    %343 = arith.truncf %306 : vector<8x128xf32> to vector<8x128xbf16>
    %c0_103 = arith.constant 0 : index
    %c0_104 = arith.constant 0 : index
    %344 = vector.load %arg5[%c0_103, %c0_104] : memref<128x512xbf16, #tpu.memory_space<vmem>>, vector<128x512xbf16>
    %cst_105 = arith.constant dense<0.000000e+00> : vector<8x512xf32>
    %345 = tpu.matmul %343, %344, %cst_105 {dimension_numbers = #tpu.dot_dimension_numbers<[1], [0], [0], [1], [0, 0, 1, 1], [], []>} : vector<8x128xbf16>, vector<128x512xbf16>, vector<8x512xf32> -> vector<8x512xf32>
    %346 = arith.addf %342, %345 : vector<8x512xf32>
    %347 = vector.extract_strided_slice %346 {offsets = [0, 0], sizes = [8, 256], strides = [1, 1]} : vector<8x512xf32> to vector<8x256xf32>
    %348 = arith.negf %347 : vector<8x256xf32>
    %349 = math.exp %348 : vector<8x256xf32>
    %cst_106 = arith.constant 1.000000e+00 : f32
    %350 = vector.broadcast %cst_106 : f32 to vector<8x256xf32>
    %351 = arith.addf %350, %349 : vector<8x256xf32>
    %352 = arith.divf %350, %351 : vector<8x256xf32>
    %353 = vector.extract_strided_slice %352 {offsets = [0, 0], sizes = [8, 128], strides = [1, 1]} : vector<8x256xf32> to vector<8x128xf32>
    %354 = vector.extract_strided_slice %352 {offsets = [0, 128], sizes = [8, 128], strides = [1, 1]} : vector<8x256xf32> to vector<8x128xf32>
    %355 = vector.extract_strided_slice %346 {offsets = [0, 256], sizes = [8, 128], strides = [1, 1]} : vector<8x512xf32> to vector<8x128xf32>
    %356 = math.tanh %355 : vector<8x128xf32>
    %357 = vector.extract_strided_slice %346 {offsets = [0, 384], sizes = [8, 128], strides = [1, 1]} : vector<8x512xf32> to vector<8x128xf32>
    %358 = arith.negf %357 : vector<8x128xf32>
    %359 = math.exp %358 : vector<8x128xf32>
    %cst_107 = arith.constant 1.000000e+00 : f32
    %360 = vector.broadcast %cst_107 : f32 to vector<8x128xf32>
    %361 = arith.addf %360, %359 : vector<8x128xf32>
    %362 = arith.divf %360, %361 : vector<8x128xf32>
    %363 = arith.mulf %354, %304 : vector<8x128xf32>
    %364 = arith.mulf %353, %356 : vector<8x128xf32>
    %365 = arith.addf %363, %364 : vector<8x128xf32>
    %366 = math.tanh %365 : vector<8x128xf32>
    %367 = arith.mulf %362, %366 : vector<8x128xf32>
    %368 = arith.truncf %367 : vector<8x128xf32> to vector<8x128xbf16>
    %369 = arith.index_cast %c5_i32 : i32 to index
    %c0_108 = arith.constant 0 : index
    %c0_109 = arith.constant 0 : index
    %370 = vector.load %arg10[%369, %c0_108, %c0_109] : memref<8x8x128xbf16, #tpu.memory_space<vmem>>, vector<1x8x128xbf16>
    %371 = vector.shape_cast %370 : vector<1x8x128xbf16> to vector<8x128xbf16>
    %372 = vector.shape_cast %368 : vector<8x128xbf16> to vector<1x8x128xbf16>
    tpu.vector_store %arg10[%369, %c0_108, %c0_109], %372 {strides = array<i32>} : memref<8x8x128xbf16, #tpu.memory_space<vmem>>, vector<1x8x128xbf16>,
    %c6_i32 = arith.constant 6 : i32
    %373 = arith.index_cast %c6_i32 : i32 to index
    %c0_110 = arith.constant 0 : index
    %c0_111 = arith.constant 0 : index
    %374 = vector.load %arg2[%373, %c0_110, %c0_111] : memref<8x8x512xf32, #tpu.memory_space<vmem>>, vector<1x8x512xf32>
    %375 = vector.shape_cast %374 : vector<1x8x512xf32> to vector<8x512xf32>
    %376 = arith.truncf %339 : vector<8x128xf32> to vector<8x128xbf16>
    %c0_112 = arith.constant 0 : index
    %c0_113 = arith.constant 0 : index
    %377 = vector.load %arg3[%c0_112, %c0_113] : memref<128x512xbf16, #tpu.memory_space<vmem>>, vector<128x512xbf16>
    %cst_114 = arith.constant dense<0.000000e+00> : vector<8x512xf32>
    %378 = tpu.matmul %376, %377, %cst_114 {dimension_numbers = #tpu.dot_dimension_numbers<[1], [0], [0], [1], [0, 0, 1, 1], [], []>} : vector<8x128xbf16>, vector<128x512xbf16>, vector<8x512xf32> -> vector<8x512xf32>
    %379 = arith.addf %375, %378 : vector<8x512xf32>
    %380 = vector.extract_strided_slice %379 {offsets = [0, 0], sizes = [8, 256], strides = [1, 1]} : vector<8x512xf32> to vector<8x256xf32>
    %381 = arith.negf %380 : vector<8x256xf32>
    %382 = math.exp %381 : vector<8x256xf32>
    %cst_115 = arith.constant 1.000000e+00 : f32
    %383 = vector.broadcast %cst_115 : f32 to vector<8x256xf32>
    %384 = arith.addf %383, %382 : vector<8x256xf32>
    %385 = arith.divf %383, %384 : vector<8x256xf32>
    %386 = vector.extract_strided_slice %385 {offsets = [0, 0], sizes = [8, 128], strides = [1, 1]} : vector<8x256xf32> to vector<8x128xf32>
    %387 = vector.extract_strided_slice %385 {offsets = [0, 128], sizes = [8, 128], strides = [1, 1]} : vector<8x256xf32> to vector<8x128xf32>
    %388 = vector.extract_strided_slice %379 {offsets = [0, 256], sizes = [8, 128], strides = [1, 1]} : vector<8x512xf32> to vector<8x128xf32>
    %389 = math.tanh %388 : vector<8x128xf32>
    %390 = vector.extract_strided_slice %379 {offsets = [0, 384], sizes = [8, 128], strides = [1, 1]} : vector<8x512xf32> to vector<8x128xf32>
    %391 = arith.negf %390 : vector<8x128xf32>
    %392 = math.exp %391 : vector<8x128xf32>
    %cst_116 = arith.constant 1.000000e+00 : f32
    %393 = vector.broadcast %cst_116 : f32 to vector<8x128xf32>
    %394 = arith.addf %393, %392 : vector<8x128xf32>
    %395 = arith.divf %393, %394 : vector<8x128xf32>
    %396 = arith.mulf %387, %337 : vector<8x128xf32>
    %397 = arith.mulf %386, %389 : vector<8x128xf32>
    %398 = arith.addf %396, %397 : vector<8x128xf32>
    %399 = math.tanh %398 : vector<8x128xf32>
    %400 = arith.mulf %395, %399 : vector<8x128xf32>
    %401 = arith.truncf %400 : vector<8x128xf32> to vector<8x128xbf16>
    %c0_117 = arith.constant 0 : index
    %c0_118 = arith.constant 0 : index
    %402 = vector.load %arg4[%c0_117, %c0_118] : memref<128x512xbf16, #tpu.memory_space<vmem>>, vector<128x512xbf16>
    %cst_119 = arith.constant dense<0.000000e+00> : vector<8x512xf32>
    %403 = tpu.matmul %401, %402, %cst_119 {dimension_numbers = #tpu.dot_dimension_numbers<[1], [0], [0], [1], [0, 0, 1, 1], [], []>} : vector<8x128xbf16>, vector<128x512xbf16>, vector<8x512xf32> -> vector<8x512xf32>
    %404 = arith.truncf %367 : vector<8x128xf32> to vector<8x128xbf16>
    %c0_120 = arith.constant 0 : index
    %c0_121 = arith.constant 0 : index
    %405 = vector.load %arg5[%c0_120, %c0_121] : memref<128x512xbf16, #tpu.memory_space<vmem>>, vector<128x512xbf16>
    %cst_122 = arith.constant dense<0.000000e+00> : vector<8x512xf32>
    %406 = tpu.matmul %404, %405, %cst_122 {dimension_numbers = #tpu.dot_dimension_numbers<[1], [0], [0], [1], [0, 0, 1, 1], [], []>} : vector<8x128xbf16>, vector<128x512xbf16>, vector<8x512xf32> -> vector<8x512xf32>
    %407 = arith.addf %403, %406 : vector<8x512xf32>
    %408 = vector.extract_strided_slice %407 {offsets = [0, 0], sizes = [8, 256], strides = [1, 1]} : vector<8x512xf32> to vector<8x256xf32>
    %409 = arith.negf %408 : vector<8x256xf32>
    %410 = math.exp %409 : vector<8x256xf32>
    %cst_123 = arith.constant 1.000000e+00 : f32
    %411 = vector.broadcast %cst_123 : f32 to vector<8x256xf32>
    %412 = arith.addf %411, %410 : vector<8x256xf32>
    %413 = arith.divf %411, %412 : vector<8x256xf32>
    %414 = vector.extract_strided_slice %413 {offsets = [0, 0], sizes = [8, 128], strides = [1, 1]} : vector<8x256xf32> to vector<8x128xf32>
    %415 = vector.extract_strided_slice %413 {offsets = [0, 128], sizes = [8, 128], strides = [1, 1]} : vector<8x256xf32> to vector<8x128xf32>
    %416 = vector.extract_strided_slice %407 {offsets = [0, 256], sizes = [8, 128], strides = [1, 1]} : vector<8x512xf32> to vector<8x128xf32>
    %417 = math.tanh %416 : vector<8x128xf32>
    %418 = vector.extract_strided_slice %407 {offsets = [0, 384], sizes = [8, 128], strides = [1, 1]} : vector<8x512xf32> to vector<8x128xf32>
    %419 = arith.negf %418 : vector<8x128xf32>
    %420 = math.exp %419 : vector<8x128xf32>
    %cst_124 = arith.constant 1.000000e+00 : f32
    %421 = vector.broadcast %cst_124 : f32 to vector<8x128xf32>
    %422 = arith.addf %421, %420 : vector<8x128xf32>
    %423 = arith.divf %421, %422 : vector<8x128xf32>
    %424 = arith.mulf %415, %365 : vector<8x128xf32>
    %425 = arith.mulf %414, %417 : vector<8x128xf32>
    %426 = arith.addf %424, %425 : vector<8x128xf32>
    %427 = math.tanh %426 : vector<8x128xf32>
    %428 = arith.mulf %423, %427 : vector<8x128xf32>
    %429 = arith.truncf %428 : vector<8x128xf32> to vector<8x128xbf16>
    %430 = arith.index_cast %c6_i32 : i32 to index
    %c0_125 = arith.constant 0 : index
    %c0_126 = arith.constant 0 : index
    %431 = vector.load %arg10[%430, %c0_125, %c0_126] : memref<8x8x128xbf16, #tpu.memory_space<vmem>>, vector<1x8x128xbf16>
    %432 = vector.shape_cast %431 : vector<1x8x128xbf16> to vector<8x128xbf16>
    %433 = vector.shape_cast %429 : vector<8x128xbf16> to vector<1x8x128xbf16>
    tpu.vector_store %arg10[%430, %c0_125, %c0_126], %433 {strides = array<i32>} : memref<8x8x128xbf16, #tpu.memory_space<vmem>>, vector<1x8x128xbf16>,
    %c7_i32 = arith.constant 7 : i32
    %434 = arith.index_cast %c7_i32 : i32 to index
    %c0_127 = arith.constant 0 : index
    %c0_128 = arith.constant 0 : index
    %435 = vector.load %arg2[%434, %c0_127, %c0_128] : memref<8x8x512xf32, #tpu.memory_space<vmem>>, vector<1x8x512xf32>
    %436 = vector.shape_cast %435 : vector<1x8x512xf32> to vector<8x512xf32>
    %437 = arith.truncf %400 : vector<8x128xf32> to vector<8x128xbf16>
    %c0_129 = arith.constant 0 : index
    %c0_130 = arith.constant 0 : index
    %438 = vector.load %arg3[%c0_129, %c0_130] : memref<128x512xbf16, #tpu.memory_space<vmem>>, vector<128x512xbf16>
    %cst_131 = arith.constant dense<0.000000e+00> : vector<8x512xf32>
    %439 = tpu.matmul %437, %438, %cst_131 {dimension_numbers = #tpu.dot_dimension_numbers<[1], [0], [0], [1], [0, 0, 1, 1], [], []>} : vector<8x128xbf16>, vector<128x512xbf16>, vector<8x512xf32> -> vector<8x512xf32>
    %440 = arith.addf %436, %439 : vector<8x512xf32>
    %441 = vector.extract_strided_slice %440 {offsets = [0, 0], sizes = [8, 256], strides = [1, 1]} : vector<8x512xf32> to vector<8x256xf32>
    %442 = arith.negf %441 : vector<8x256xf32>
    %443 = math.exp %442 : vector<8x256xf32>
    %cst_132 = arith.constant 1.000000e+00 : f32
    %444 = vector.broadcast %cst_132 : f32 to vector<8x256xf32>
    %445 = arith.addf %444, %443 : vector<8x256xf32>
    %446 = arith.divf %444, %445 : vector<8x256xf32>
    %447 = vector.extract_strided_slice %446 {offsets = [0, 0], sizes = [8, 128], strides = [1, 1]} : vector<8x256xf32> to vector<8x128xf32>
    %448 = vector.extract_strided_slice %446 {offsets = [0, 128], sizes = [8, 128], strides = [1, 1]} : vector<8x256xf32> to vector<8x128xf32>
    %449 = vector.extract_strided_slice %440 {offsets = [0, 256], sizes = [8, 128], strides = [1, 1]} : vector<8x512xf32> to vector<8x128xf32>
    %450 = math.tanh %449 : vector<8x128xf32>
    %451 = vector.extract_strided_slice %440 {offsets = [0, 384], sizes = [8, 128], strides = [1, 1]} : vector<8x512xf32> to vector<8x128xf32>
    %452 = arith.negf %451 : vector<8x128xf32>
    %453 = math.exp %452 : vector<8x128xf32>
    %cst_133 = arith.constant 1.000000e+00 : f32
    %454 = vector.broadcast %cst_133 : f32 to vector<8x128xf32>
    %455 = arith.addf %454, %453 : vector<8x128xf32>
    %456 = arith.divf %454, %455 : vector<8x128xf32>
    %457 = arith.mulf %448, %398 : vector<8x128xf32>
    %458 = arith.mulf %447, %450 : vector<8x128xf32>
    %459 = arith.addf %457, %458 : vector<8x128xf32>
    %460 = math.tanh %459 : vector<8x128xf32>
    %461 = arith.mulf %456, %460 : vector<8x128xf32>
    %462 = arith.truncf %461 : vector<8x128xf32> to vector<8x128xbf16>
    %c0_134 = arith.constant 0 : index
    %c0_135 = arith.constant 0 : index
    %463 = vector.load %arg4[%c0_134, %c0_135] : memref<128x512xbf16, #tpu.memory_space<vmem>>, vector<128x512xbf16>
    %cst_136 = arith.constant dense<0.000000e+00> : vector<8x512xf32>
    %464 = tpu.matmul %462, %463, %cst_136 {dimension_numbers = #tpu.dot_dimension_numbers<[1], [0], [0], [1], [0, 0, 1, 1], [], []>} : vector<8x128xbf16>, vector<128x512xbf16>, vector<8x512xf32> -> vector<8x512xf32>
    %465 = arith.truncf %428 : vector<8x128xf32> to vector<8x128xbf16>
    %c0_137 = arith.constant 0 : index
    %c0_138 = arith.constant 0 : index
    %466 = vector.load %arg5[%c0_137, %c0_138] : memref<128x512xbf16, #tpu.memory_space<vmem>>, vector<128x512xbf16>
    %cst_139 = arith.constant dense<0.000000e+00> : vector<8x512xf32>
    %467 = tpu.matmul %465, %466, %cst_139 {dimension_numbers = #tpu.dot_dimension_numbers<[1], [0], [0], [1], [0, 0, 1, 1], [], []>} : vector<8x128xbf16>, vector<128x512xbf16>, vector<8x512xf32> -> vector<8x512xf32>
    %468 = arith.addf %464, %467 : vector<8x512xf32>
    %469 = vector.extract_strided_slice %468 {offsets = [0, 0], sizes = [8, 256], strides = [1, 1]} : vector<8x512xf32> to vector<8x256xf32>
    %470 = arith.negf %469 : vector<8x256xf32>
    %471 = math.exp %470 : vector<8x256xf32>
    %cst_140 = arith.constant 1.000000e+00 : f32
    %472 = vector.broadcast %cst_140 : f32 to vector<8x256xf32>
    %473 = arith.addf %472, %471 : vector<8x256xf32>
    %474 = arith.divf %472, %473 : vector<8x256xf32>
    %475 = vector.extract_strided_slice %474 {offsets = [0, 0], sizes = [8, 128], strides = [1, 1]} : vector<8x256xf32> to vector<8x128xf32>
    %476 = vector.extract_strided_slice %474 {offsets = [0, 128], sizes = [8, 128], strides = [1, 1]} : vector<8x256xf32> to vector<8x128xf32>
    %477 = vector.extract_strided_slice %468 {offsets = [0, 256], sizes = [8, 128], strides = [1, 1]} : vector<8x512xf32> to vector<8x128xf32>
    %478 = math.tanh %477 : vector<8x128xf32>
    %479 = vector.extract_strided_slice %468 {offsets = [0, 384], sizes = [8, 128], strides = [1, 1]} : vector<8x512xf32> to vector<8x128xf32>
    %480 = arith.negf %479 : vector<8x128xf32>
    %481 = math.exp %480 : vector<8x128xf32>
    %cst_141 = arith.constant 1.000000e+00 : f32
    %482 = vector.broadcast %cst_141 : f32 to vector<8x128xf32>
    %483 = arith.addf %482, %481 : vector<8x128xf32>
    %484 = arith.divf %482, %483 : vector<8x128xf32>
    %485 = arith.mulf %476, %426 : vector<8x128xf32>
    %486 = arith.mulf %475, %478 : vector<8x128xf32>
    %487 = arith.addf %485, %486 : vector<8x128xf32>
    %488 = math.tanh %487 : vector<8x128xf32>
    %489 = arith.mulf %484, %488 : vector<8x128xf32>
    %490 = arith.truncf %489 : vector<8x128xf32> to vector<8x128xbf16>
    %491 = arith.index_cast %c7_i32 : i32 to index
    %c0_142 = arith.constant 0 : index
    %c0_143 = arith.constant 0 : index
    %492 = vector.load %arg10[%491, %c0_142, %c0_143] : memref<8x8x128xbf16, #tpu.memory_space<vmem>>, vector<1x8x128xbf16>
    %493 = vector.shape_cast %492 : vector<1x8x128xbf16> to vector<8x128xbf16>
    %494 = vector.shape_cast %490 : vector<8x128xbf16> to vector<1x8x128xbf16>
    tpu.vector_store %arg10[%491, %c0_142, %c0_143], %494 {strides = array<i32>} : memref<8x8x128xbf16, #tpu.memory_space<vmem>>, vector<1x8x128xbf16>,
    %c8_i32 = arith.constant 8 : i32
    %c0_144 = arith.constant 0 : index
    %c0_145 = arith.constant 0 : index
    %495 = vector.load %arg15[%c0_144, %c0_145] : memref<8x128xf32, #tpu.memory_space<vmem>>, vector<8x128xf32>
    tpu.vector_store %arg15[%c0_144, %c0_145], %461 {strides = array<i32>} : memref<8x128xf32, #tpu.memory_space<vmem>>, vector<8x128xf32>,
    %c0_146 = arith.constant 0 : index
    %c0_147 = arith.constant 0 : index
    %496 = vector.load %arg16[%c0_146, %c0_147] : memref<8x128xf32, #tpu.memory_space<vmem>>, vector<8x128xf32>
    tpu.vector_store %arg16[%c0_146, %c0_147], %459 {strides = array<i32>} : memref<8x128xf32, #tpu.memory_space<vmem>>, vector<8x128xf32>,
    %c0_148 = arith.constant 0 : index
    %c0_149 = arith.constant 0 : index
    %497 = vector.load %arg17[%c0_148, %c0_149] : memref<8x128xf32, #tpu.memory_space<vmem>>, vector<8x128xf32>
    tpu.vector_store %arg17[%c0_148, %c0_149], %489 {strides = array<i32>} : memref<8x128xf32, #tpu.memory_space<vmem>>, vector<8x128xf32>,
    %c0_150 = arith.constant 0 : index
    %c0_151 = arith.constant 0 : index
    %498 = vector.load %arg18[%c0_150, %c0_151] : memref<8x128xf32, #tpu.memory_space<vmem>>, vector<8x128xf32>
    tpu.vector_store %arg18[%c0_150, %c0_151], %487 {strides = array<i32>} : memref<8x128xf32, #tpu.memory_space<vmem>>, vector<8x128xf32>,
    %c0_i32_152 = arith.constant 0 : i32
    %499 = arith.cmpi eq, %arg1, %c0_i32_152 : i32
    %500 = arith.extui %499 : i1 to i32
    %c0_i32_153 = arith.constant 0 : i32
    %501 = arith.cmpi ne, %500, %c0_i32_153 : i32
    scf.if %501 {
      %c0_154 = arith.constant 0 : index
      %c0_155 = arith.constant 0 : index
      %502 = vector.load %arg11[%c0_154, %c0_155] : memref<8x128xf32, #tpu.memory_space<vmem>>, vector<8x128xf32>
      tpu.vector_store %arg11[%c0_154, %c0_155], %461 {strides = array<i32>} : memref<8x128xf32, #tpu.memory_space<vmem>>, vector<8x128xf32>,
      %c0_156 = arith.constant 0 : index
      %c0_157 = arith.constant 0 : index
      %503 = vector.load %arg12[%c0_156, %c0_157] : memref<8x128xf32, #tpu.memory_space<vmem>>, vector<8x128xf32>
      tpu.vector_store %arg12[%c0_156, %c0_157], %459 {strides = array<i32>} : memref<8x128xf32, #tpu.memory_space<vmem>>, vector<8x128xf32>,
      %c0_158 = arith.constant 0 : index
      %c0_159 = arith.constant 0 : index
      %504 = vector.load %arg13[%c0_158, %c0_159] : memref<8x128xf32, #tpu.memory_space<vmem>>, vector<8x128xf32>
      tpu.vector_store %arg13[%c0_158, %c0_159], %489 {strides = array<i32>} : memref<8x128xf32, #tpu.memory_space<vmem>>, vector<8x128xf32>,
      %c0_160 = arith.constant 0 : index
      %c0_161 = arith.constant 0 : index
      %505 = vector.load %arg14[%c0_160, %c0_161] : memref<8x128xf32, #tpu.memory_space<vmem>>, vector<8x128xf32>
      tpu.vector_store %arg14[%c0_160, %c0_161], %487 {strides = array<i32>} : memref<8x128xf32, #tpu.memory_space<vmem>>, vector<8x128xf32>,
    } else {
    }
    return
  }
  func.func @transform_0(%arg0: i32, %arg1: i32) -> (i32, i32, i32) {
    %c0_i32 = arith.constant 0 : i32
    %c0_i32_0 = arith.constant 0 : i32
    return %arg1, %arg0, %c0_i32 : i32, i32, i32
  }
  func.func @transform_1(%arg0: i32, %arg1: i32) -> (i32, i32) {
    %c0_i32 = arith.constant 0 : i32
    %c0_i32_0 = arith.constant 0 : i32
    %c0_i32_1 = arith.constant 0 : i32
    return %c0_i32, %c0_i32_0 : i32, i32
  }
  func.func @transform_2(%arg0: i32, %arg1: i32) -> (i32, i32) {
    %c0_i32 = arith.constant 0 : i32
    %c0_i32_0 = arith.constant 0 : i32
    %c0_i32_1 = arith.constant 0 : i32
    return %c0_i32, %c0_i32_0 : i32, i32
  }
  func.func @transform_3(%arg0: i32, %arg1: i32) -> (i32, i32) {
    %c0_i32 = arith.constant 0 : i32
    %c0_i32_0 = arith.constant 0 : i32
    %c0_i32_1 = arith.constant 0 : i32
    return %c0_i32, %c0_i32_0 : i32, i32
  }
  func.func @transform_4(%arg0: i32, %arg1: i32) -> (i32, i32) {
    %c0_i32 = arith.constant 0 : i32
    %c0_i32_0 = arith.constant 0 : i32
    return %arg0, %c0_i32 : i32, i32
  }
  func.func @transform_5(%arg0: i32, %arg1: i32) -> (i32, i32) {
    %c0_i32 = arith.constant 0 : i32
    %c0_i32_0 = arith.constant 0 : i32
    return %arg0, %c0_i32 : i32, i32
  }
  func.func @transform_6(%arg0: i32, %arg1: i32) -> (i32, i32) {
    %c0_i32 = arith.constant 0 : i32
    %c0_i32_0 = arith.constant 0 : i32
    return %arg0, %c0_i32 : i32, i32
  }
  func.func @transform_7(%arg0: i32, %arg1: i32) -> (i32, i32) {
    %c0_i32 = arith.constant 0 : i32
    %c0_i32_0 = arith.constant 0 : i32
    return %arg0, %c0_i32 : i32, i32
  }
  func.func @transform_8(%arg0: i32, %arg1: i32) -> (i32, i32, i32) {
    %c0_i32 = arith.constant 0 : i32
    %c0_i32_0 = arith.constant 0 : i32
    return %arg1, %arg0, %c0_i32 : i32, i32, i32
  }
  func.func @transform_9(%arg0: i32, %arg1: i32) -> (i32, i32) {
    %c0_i32 = arith.constant 0 : i32
    %c0_i32_0 = arith.constant 0 : i32
    return %arg0, %c0_i32 : i32, i32
  }
  func.func @transform_10(%arg0: i32, %arg1: i32) -> (i32, i32) {
    %c0_i32 = arith.constant 0 : i32
    %c0_i32_0 = arith.constant 0 : i32
    return %arg0, %c0_i32 : i32, i32
  }
  func.func @transform_11(%arg0: i32, %arg1: i32) -> (i32, i32) {
    %c0_i32 = arith.constant 0 : i32
    %c0_i32_0 = arith.constant 0 : i32
    return %arg0, %c0_i32 : i32, i32
  }
  func.func @transform_12(%arg0: i32, %arg1: i32) -> (i32, i32) {
    %c0_i32 = arith.constant 0 : i32
    %c0_i32_0 = arith.constant 0 : i32
    return %arg0, %c0_i32 : i32, i32
  }
}

</mosaic_0001>

<bundles_post_ra>
// kernel: my_lstm_forward.3
= control target key start
LH: loop header
LB: loop body
LE: loop exit
PB: predicated region body
PF: predicated region fallthrough
CT: control target
= control target key end

     0   :  { %v507_v1 = vmov 0   ;;  %s735_s1 = inlined_call_operand.vmem [shape: bf16[128,512], index: 1, kind: input, shape index: {}]   ;;  %s736_s0 = inlined_call_operand.vmem [shape: bf16[64,128], index: 0, kind: input, shape index: {}]   ;;  %s737_s2 = inlined_call_operand.vmem [shape: f32[64,512], index: 2, kind: output, shape index: {}]  }
   0x1   :  { %v455_v0 = vld [vmem:[%s735_s1 + $0xe4] ss:$16 sps:$4 sm:$0xff]   ;;  %268 = vmatprep.mubr.bf16.mxu0 %v507_v1  ;;  %341 = vmatprep.mubr.bf16.mxu1 %v507_v1  ;;  %v457_v2 = vld [vmem:[%s735_s1 + $0xec] ss:$16 sps:$4 sm:$0xff]   ;;  %v459_v3 = vld [vmem:[%s735_s1 + $0xe0] ss:$16 sps:$4 sm:$0xff]  }
   0x2   :  { %236 = vmatprep.subr.bf16.mxu0 %v455_v0  ;;  %v460_v4 = vld [vmem:[%s735_s1 + $0xe8] ss:$16 sps:$4 sm:$0xff]   ;;  %309 = vmatprep.subr.bf16.mxu1 %v457_v2  ;;  %v461_v5 = vld [vmem:[%s735_s1 + $0xc4] ss:$16 sps:$4 sm:$0xff]   ;;  %v463_v6 = vld [vmem:[%s735_s1 + $0xcc] ss:$16 sps:$4 sm:$0xff]  }
   0x3   :  { %237 = vmatpush1.bf16.msra.mxu0 %v459_v3  ;;  %310 = vmatpush1.bf16.msra.mxu1 %v460_v4  ;;  %v465_v7 = vld [vmem:[%s735_s1 + $0xc0] ss:$16 sps:$4 sm:$0xff]   ;;  %v466_v8 = vld [vmem:[%s735_s1 + $0xc8] ss:$16 sps:$4 sm:$0xff]   ;;  %v467_v9 = vld [vmem:[%s735_s1 + $0xa4] ss:$16 sps:$4 sm:$0xff]  }
   0x4   :  { %238 = vmatprep.subr.bf16.mxu0 %v461_v5  ;;  %311 = vmatprep.subr.bf16.mxu1 %v463_v6  ;;  %v469_v10 = vld [vmem:[%s735_s1 + $0xac] ss:$16 sps:$4 sm:$0xff]   ;;  %v471_v11 = vld [vmem:[%s735_s1 + $0xa0] ss:$16 sps:$4 sm:$0xff]   ;;  %v472_v12 = vld [vmem:[%s735_s1 + $0xa8] ss:$16 sps:$4 sm:$0xff]  }
   0x5   :  { %v473_v13 = vld [vmem:[%s735_s1 + $0x84] ss:$16 sps:$4 sm:$0xff]   ;;  %v475_v14 = vld [vmem:[%s735_s1 + $0x8c] ss:$16 sps:$4 sm:$0xff]   ;;  %v477_v15 = vld [vmem:[%s735_s1 + $0x80] ss:$16 sps:$4 sm:$0xff]  }
   0x6   :  { %v478_v16 = vld [vmem:[%s735_s1 + $0x88] ss:$16 sps:$4 sm:$0xff]   ;;  %v479_v17 = vld [vmem:[%s735_s1 + $0x64] ss:$16 sps:$4 sm:$0xff]   ;;  %v481_v18 = vld [vmem:[%s735_s1 + $0x6c] ss:$16 sps:$4 sm:$0xff]  }
   0x7   :  { %239 = vmatpush1.bf16.msra.mxu0 %v465_v7  ;;  %312 = vmatpush1.bf16.msra.mxu1 %v466_v8  ;;  %v483_v19 = vld [vmem:[%s735_s1 + $0x60] ss:$16 sps:$4 sm:$0xff]   ;;  %v484_v20 = vld [vmem:[%s735_s1 + $0x68] ss:$16 sps:$4 sm:$0xff]   ;;  %v485_v21 = vld [vmem:[%s735_s1 + $0x44] ss:$16 sps:$4 sm:$0xff]  }
   0x8   :  { %240 = vmatprep.subr.bf16.mxu0 %v467_v9  ;;  %313 = vmatprep.subr.bf16.mxu1 %v469_v10  ;;  %v487_v22 = vld [vmem:[%s735_s1 + $0x4c] ss:$16 sps:$4 sm:$0xff]   ;;  %v489_v23 = vld [vmem:[%s735_s1 + $0x40] ss:$16 sps:$4 sm:$0xff]   ;;  %v490_v24 = vld [vmem:[%s735_s1 + $0x48] ss:$16 sps:$4 sm:$0xff]  }
   0x9   :  { %v491_v25 = vld [vmem:[%s735_s1 + $0x24] ss:$16 sps:$4 sm:$0xff]   ;;  %v493_v26 = vld [vmem:[%s735_s1 + $0x2c] ss:$16 sps:$4 sm:$0xff]   ;;  %v495_v27 = vld [vmem:[%s735_s1 + $0x20] ss:$16 sps:$4 sm:$0xff]  }
   0xa   :  { %v496_v28 = vld [vmem:[%s735_s1 + $0x28] ss:$16 sps:$4 sm:$0xff]   ;;  %v497_v29 = vld [vmem:[%s735_s1 + $0x4] ss:$16 sps:$4 sm:$0xff]   ;;  %v499_v30 = vld [vmem:[%s735_s1 + $0xc] ss:$16 sps:$4 sm:$0xff]  }
   0xb   :  { %241 = vmatpush1.bf16.msra.mxu0 %v471_v11  ;;  %314 = vmatpush1.bf16.msra.mxu1 %v472_v12  ;;  %v501_v31 = vld [vmem:[%s735_s1] ss:$16 sps:$4 sm:$0xff]   ;;  %v502_v32 = vld [vmem:[%s735_s1 + $0x8] ss:$16 sps:$4 sm:$0xff]  }
   0xc   :  { %242 = vmatprep.subr.bf16.mxu0 %v473_v13  ;;  %315 = vmatprep.subr.bf16.mxu1 %v475_v14  ;;  %v503_v33 = vld [vmem:[%s736_s0] sm:$0xff]   ;;  %v504_v34 = vld [vmem:[%s736_s0 + $0x8] sm:$0xff]   ;;  %v505_v35 = vld [vmem:[%s736_s0 + $0x10] sm:$0xff]  }
   0xd   :  { %v506_v36 = vld [vmem:[%s736_s0 + $0x18] sm:$0xff]  }
   0xf   :  { %243 = vmatpush1.bf16.msra.mxu0 %v477_v15  ;;  %316 = vmatpush1.bf16.msra.mxu1 %v478_v16 }
  0x10   :  { %244 = vmatprep.subr.bf16.mxu0 %v479_v17  ;;  %317 = vmatprep.subr.bf16.mxu1 %v481_v18 }
  0x13   :  { %245 = vmatpush1.bf16.msra.mxu0 %v483_v19  ;;  %318 = vmatpush1.bf16.msra.mxu1 %v484_v20 }
  0x14   :  { %246 = vmatprep.subr.bf16.mxu0 %v485_v21  ;;  %319 = vmatprep.subr.bf16.mxu1 %v487_v22 }
  0x17   :  { %247 = vmatpush1.bf16.msra.mxu0 %v489_v23  ;;  %320 = vmatpush1.bf16.msra.mxu1 %v490_v24 }
  0x18   :  { %248 = vmatprep.subr.bf16.mxu0 %v491_v25  ;;  %321 = vmatprep.subr.bf16.mxu1 %v493_v26 }
  0x1b   :  { %249 = vmatpush1.bf16.msra.mxu0 %v495_v27  ;;  %322 = vmatpush1.bf16.msra.mxu1 %v496_v28 }
  0x1c   :  { %250 = vmatprep.subr.bf16.mxu0 %v497_v29  ;;  %323 = vmatprep.subr.bf16.mxu1 %v499_v30 }
  0x1f   :  { %251 = vmatpush1.bf16.msra.mxu0 %v501_v31  ;;  %324 = vmatpush1.bf16.msra.mxu1 %v502_v32 }
  0x22   :  { %269 = vmatmul.mubr.bf16.vlgmr.msra.gmra.mxu0 %v503_v33  ;;  %342 = vmatmul.mubr.bf16.vlgmr.msra.gmra.mxu1 %v503_v33 }
  0x23   :  { %278 = vmatprep.mubr.bf16.mxu0 %v507_v1  ;;  %351 = vmatprep.mubr.bf16.mxu1 %v507_v1 }
  0x2a   :  { %279 = vmatmul.mubr.bf16.gmra.mxu0 %v504_v34  ;;  %352 = vmatmul.mubr.bf16.gmra.mxu1 %v504_v34 }
  0x2b   :  { %288 = vmatprep.mubr.bf16.mxu0 %v507_v1  ;;  %361 = vmatprep.mubr.bf16.mxu1 %v507_v1 }
  0x32   :  { %289 = vmatmul.mubr.bf16.gmra.mxu0 %v505_v35  ;;  %362 = vmatmul.mubr.bf16.gmra.mxu1 %v505_v35 }
  0x33   :  { %298 = vmatprep.mubr.bf16.mxu0 %v507_v1  ;;  %371 = vmatprep.mubr.bf16.mxu1 %v507_v1 }
  0x3a   :  { %299 = vmatmul.mubr.bf16.gmra.mxu0 %v506_v36  ;;  %372 = vmatmul.mubr.bf16.gmra.mxu1 %v506_v36 }
  0xe2   :  { %v270_v37 = vpop.f32.mrf.mxu0  ;;  %v343_v38 = vpop.f32.mrf.mxu1 }
  0xe3   :  { %382 = vst [vmem:[%s737_s2] sm:$0xff] %v270_v37  ;;  %384 = vst [vmem:[%s737_s2 + $0x10] sm:$0xff] %v343_v38 }
  0xe4   :  { %v272_v39 = vpop.f32.mrf.mxu0  ;;  %v345_v40 = vpop.f32.mrf.mxu1 }
  0xe5   :  { %383 = vst [vmem:[%s737_s2 + $0x8] sm:$0xff] %v272_v39  ;;  %385 = vst [vmem:[%s737_s2 + $0x18] sm:$0xff] %v345_v40 }
  0xe6   :  { %v274_v41 = vpop.f32.mrf.mxu0  ;;  %v347_v42 = vpop.f32.mrf.mxu1 }
  0xe7   :  { %386 = vst [vmem:[%s737_s2 + $0x20] sm:$0xff] %v274_v41  ;;  %388 = vst [vmem:[%s737_s2 + $0x30] sm:$0xff] %v347_v42 }
  0xe8   :  { %v276_v43 = vpop.f32.mrf.mxu0  ;;  %v349_v44 = vpop.f32.mrf.mxu1 }
  0xe9   :  { %387 = vst [vmem:[%s737_s2 + $0x28] sm:$0xff] %v276_v43  ;;  %389 = vst [vmem:[%s737_s2 + $0x38] sm:$0xff] %v349_v44 }
  0xea   :  { %v280_v45 = vpop.f32.mrf.mxu0  ;;  %v353_v46 = vpop.f32.mrf.mxu1 }
  0xeb   :  { %390 = vst [vmem:[%s737_s2 + $0x40] sm:$0xff] %v280_v45  ;;  %392 = vst [vmem:[%s737_s2 + $0x50] sm:$0xff] %v353_v46 }
  0xec   :  { %v282_v47 = vpop.f32.mrf.mxu0  ;;  %v355_v48 = vpop.f32.mrf.mxu1 }
  0xed   :  { %391 = vst [vmem:[%s737_s2 + $0x48] sm:$0xff] %v282_v47  ;;  %393 = vst [vmem:[%s737_s2 + $0x58] sm:$0xff] %v355_v48 }
  0xee   :  { %v284_v49 = vpop.f32.mrf.mxu0  ;;  %v357_v50 = vpop.f32.mrf.mxu1 }
  0xef   :  { %394 = vst [vmem:[%s737_s2 + $0x60] sm:$0xff] %v284_v49  ;;  %396 = vst [vmem:[%s737_s2 + $0x70] sm:$0xff] %v357_v50 }
  0xf0   :  { %v286_v51 = vpop.f32.mrf.mxu0  ;;  %v359_v52 = vpop.f32.mrf.mxu1 }
  0xf1   :  { %395 = vst [vmem:[%s737_s2 + $0x68] sm:$0xff] %v286_v51  ;;  %397 = vst [vmem:[%s737_s2 + $0x78] sm:$0xff] %v359_v52 }
  0xf2   :  { %v290_v53 = vpop.f32.mrf.mxu0  ;;  %v363_v54 = vpop.f32.mrf.mxu1 }
  0xf3   :  { %398 = vst [vmem:[%s737_s2 + $0x80] sm:$0xff] %v290_v53  ;;  %400 = vst [vmem:[%s737_s2 + $0x90] sm:$0xff] %v363_v54 }
  0xf4   :  { %v292_v55 = vpop.f32.mrf.mxu0  ;;  %v365_v56 = vpop.f32.mrf.mxu1 }
  0xf5   :  { %399 = vst [vmem:[%s737_s2 + $0x88] sm:$0xff] %v292_v55  ;;  %401 = vst [vmem:[%s737_s2 + $0x98] sm:$0xff] %v365_v56 }
  0xf6   :  { %v294_v57 = vpop.f32.mrf.mxu0  ;;  %v367_v58 = vpop.f32.mrf.mxu1 }
  0xf7   :  { %402 = vst [vmem:[%s737_s2 + $0xa0] sm:$0xff] %v294_v57  ;;  %404 = vst [vmem:[%s737_s2 + $0xb0] sm:$0xff] %v367_v58 }
  0xf8   :  { %v296_v59 = vpop.f32.mrf.mxu0  ;;  %v369_v60 = vpop.f32.mrf.mxu1 }
  0xf9   :  { %403 = vst [vmem:[%s737_s2 + $0xa8] sm:$0xff] %v296_v59  ;;  %405 = vst [vmem:[%s737_s2 + $0xb8] sm:$0xff] %v369_v60 }
  0xfa   :  { %v300_v61 = vpop.f32.mrf.mxu0  ;;  %v373_v62 = vpop.f32.mrf.mxu1 }
  0xfb   :  { %406 = vst [vmem:[%s737_s2 + $0xc0] sm:$0xff] %v300_v61  ;;  %408 = vst [vmem:[%s737_s2 + $0xd0] sm:$0xff] %v373_v62 }
  0xfc   :  { %v302_v63 = vpop.f32.mrf.mxu0  ;;  %v375_v0 = vpop.f32.mrf.mxu1 }
  0xfd   :  { %407 = vst [vmem:[%s737_s2 + $0xc8] sm:$0xff] %v302_v63  ;;  %409 = vst [vmem:[%s737_s2 + $0xd8] sm:$0xff] %v375_v0 }
  0xfe   :  { %v304_v1 = vpop.f32.mrf.mxu0  ;;  %v377_v2 = vpop.f32.mrf.mxu1 }
  0xff   :  { %410 = vst [vmem:[%s737_s2 + $0xe0] sm:$0xff] %v304_v1  ;;  %412 = vst [vmem:[%s737_s2 + $0xf0] sm:$0xff] %v377_v2 }
 0x100   :  { %v306_v3 = vpop.f32.mrf.mxu0  ;;  %v379_v4 = vpop.f32.mrf.mxu1 }
 0x101   :  { %411 = vst [vmem:[%s737_s2 + $0xe8] sm:$0xff] %v306_v3  ;;  %413 = vst [vmem:[%s737_s2 + $0xf8] sm:$0xff] %v379_v4 }

// kernel: my_lstm_forward.5
= control target key start
LH: loop header
LB: loop body
LE: loop exit
PB: predicated region body
PF: predicated region fallthrough
CT: control target
= control target key end

     0   :  { %v545_v2 = vmov 0   ;;  %s683_s0 = inlined_call_operand.vmem [shape: bf16[64,128], index: 0, kind: input, shape index: {}]   ;;  %s684_s1 = inlined_call_operand.vmem [shape: bf16[128,512], index: 1, kind: input, shape index: {}]   ;;  %s685_s2 = inlined_call_operand.hbm [shape: f32[64,512], index: 2, kind: output, shape index: {}]  }
   0x1   :  { %v471_v0 = vld [vmem:[%s684_s1 + $0xe4] ss:$16 sps:$4 sm:$0xff]   ;;  %v473_v1 = vld [vmem:[%s684_s1 + $0xec] ss:$16 sps:$4 sm:$0xff]   ;;  %269 = vmatprep.mubr.bf16.mxu0 %v545_v2  ;;  %342 = vmatprep.mubr.bf16.mxu1 %v545_v2  ;;  %v475_v3 = vld [vmem:[%s684_s1 + $0xe0] ss:$16 sps:$4 sm:$0xff]  }
   0x2   :  { %237 = vmatprep.subr.bf16.mxu0 %v471_v0  ;;  %v476_v4 = vld [vmem:[%s684_s1 + $0xe8] ss:$16 sps:$4 sm:$0xff]   ;;  %310 = vmatprep.subr.bf16.mxu1 %v473_v1  ;;  %v477_v5 = vld [vmem:[%s684_s1 + $0xc4] ss:$16 sps:$4 sm:$0xff]   ;;  %v479_v6 = vld [vmem:[%s684_s1 + $0xcc] ss:$16 sps:$4 sm:$0xff]  }
   0x3   :  { %238 = vmatpush1.bf16.msra.mxu0 %v475_v3  ;;  %311 = vmatpush1.bf16.msra.mxu1 %v476_v4  ;;  %v481_v7 = vld [vmem:[%s684_s1 + $0xc0] ss:$16 sps:$4 sm:$0xff]   ;;  %v482_v8 = vld [vmem:[%s684_s1 + $0xc8] ss:$16 sps:$4 sm:$0xff]   ;;  %v483_v9 = vld [vmem:[%s684_s1 + $0xa4] ss:$16 sps:$4 sm:$0xff]  }
   0x4   :  { %239 = vmatprep.subr.bf16.mxu0 %v477_v5  ;;  %312 = vmatprep.subr.bf16.mxu1 %v479_v6  ;;  %v485_v10 = vld [vmem:[%s684_s1 + $0xac] ss:$16 sps:$4 sm:$0xff]   ;;  %v487_v11 = vld [vmem:[%s684_s1 + $0xa0] ss:$16 sps:$4 sm:$0xff]   ;;  %v488_v12 = vld [vmem:[%s684_s1 + $0xa8] ss:$16 sps:$4 sm:$0xff]  }
   0x5   :  { %v489_v13 = vld [vmem:[%s684_s1 + $0x84] ss:$16 sps:$4 sm:$0xff]   ;;  %v491_v14 = vld [vmem:[%s684_s1 + $0x8c] ss:$16 sps:$4 sm:$0xff]   ;;  %v493_v15 = vld [vmem:[%s684_s1 + $0x80] ss:$16 sps:$4 sm:$0xff]  }
   0x6   :  { %v494_v16 = vld [vmem:[%s684_s1 + $0x88] ss:$16 sps:$4 sm:$0xff]   ;;  %v495_v17 = vld [vmem:[%s684_s1 + $0x64] ss:$16 sps:$4 sm:$0xff]   ;;  %v497_v18 = vld [vmem:[%s684_s1 + $0x6c] ss:$16 sps:$4 sm:$0xff]  }
   0x7   :  { %240 = vmatpush1.bf16.msra.mxu0 %v481_v7  ;;  %313 = vmatpush1.bf16.msra.mxu1 %v482_v8  ;;  %v499_v19 = vld [vmem:[%s684_s1 + $0x60] ss:$16 sps:$4 sm:$0xff]   ;;  %v500_v20 = vld [vmem:[%s684_s1 + $0x68] ss:$16 sps:$4 sm:$0xff]   ;;  %v501_v21 = vld [vmem:[%s684_s1 + $0x44] ss:$16 sps:$4 sm:$0xff]  }
   0x8   :  { %241 = vmatprep.subr.bf16.mxu0 %v483_v9  ;;  %314 = vmatprep.subr.bf16.mxu1 %v485_v10  ;;  %v503_v22 = vld [vmem:[%s684_s1 + $0x4c] ss:$16 sps:$4 sm:$0xff]   ;;  %v505_v23 = vld [vmem:[%s684_s1 + $0x40] ss:$16 sps:$4 sm:$0xff]   ;;  %v506_v24 = vld [vmem:[%s684_s1 + $0x48] ss:$16 sps:$4 sm:$0xff]  }
   0x9   :  { %v507_v25 = vld [vmem:[%s684_s1 + $0x24] ss:$16 sps:$4 sm:$0xff]   ;;  %v509_v26 = vld [vmem:[%s684_s1 + $0x2c] ss:$16 sps:$4 sm:$0xff]   ;;  %v511_v27 = vld [vmem:[%s684_s1 + $0x20] ss:$16 sps:$4 sm:$0xff]  }
   0xa   :  { %v512_v28 = vld [vmem:[%s684_s1 + $0x28] ss:$16 sps:$4 sm:$0xff]   ;;  %v513_v29 = vld [vmem:[%s684_s1 + $0x4] ss:$16 sps:$4 sm:$0xff]   ;;  %v515_v30 = vld [vmem:[%s684_s1 + $0xc] ss:$16 sps:$4 sm:$0xff]  }
   0xb   :  { %242 = vmatpush1.bf16.msra.mxu0 %v487_v11  ;;  %315 = vmatpush1.bf16.msra.mxu1 %v488_v12 }
   0xc   :  { %243 = vmatprep.subr.bf16.mxu0 %v489_v13  ;;  %316 = vmatprep.subr.bf16.mxu1 %v491_v14 }
   0xf   :  { %244 = vmatpush1.bf16.msra.mxu0 %v493_v15  ;;  %317 = vmatpush1.bf16.msra.mxu1 %v494_v16 }
  0x10   :  { %245 = vmatprep.subr.bf16.mxu0 %v495_v17  ;;  %318 = vmatprep.subr.bf16.mxu1 %v497_v18 }
  0x13   :  { %246 = vmatpush1.bf16.msra.mxu0 %v499_v19  ;;  %319 = vmatpush1.bf16.msra.mxu1 %v500_v20 }
  0x14   :  { %247 = vmatprep.subr.bf16.mxu0 %v501_v21  ;;  %320 = vmatprep.subr.bf16.mxu1 %v503_v22 }
  0x17   :  { %248 = vmatpush1.bf16.msra.mxu0 %v505_v23  ;;  %321 = vmatpush1.bf16.msra.mxu1 %v506_v24 }
  0x18   :  { %249 = vmatprep.subr.bf16.mxu0 %v507_v25  ;;  %322 = vmatprep.subr.bf16.mxu1 %v509_v26 }
  0x19   :  { %7 = vsyncpa [#allocation3], 0  ;;  %v517_v31 = vld [vmem:[%s684_s1] ss:$16 sps:$4 sm:$0xff]   ;;  %v518_v32 = vld [vmem:[%s684_s1 + $0x8] ss:$16 sps:$4 sm:$0xff]  }
  0x1a   :  { %v519_v33 = vld [vmem:[%s683_s0] sm:$0xff]   ;;  %v520_v34 = vld [vmem:[%s683_s0 + $0x8] sm:$0xff]   ;;  %v521_v35 = vld [vmem:[%s683_s0 + $0x10] sm:$0xff]  }
  0x1b   :  { %250 = vmatpush1.bf16.msra.mxu0 %v511_v27  ;;  %323 = vmatpush1.bf16.msra.mxu1 %v512_v28  ;;  %v522_v36 = vld [vmem:[%s683_s0 + $0x18] sm:$0xff]   ;;  %s546_s0 = smov [#allocation2]  }
  0x1c   :  { %251 = vmatprep.subr.bf16.mxu0 %v513_v29  ;;  %324 = vmatprep.subr.bf16.mxu1 %v515_v30  ;;  %s420_s24 = sshll.u32 %s546_s0, 4  ;;  %s421_s24 = int_to_ptr.vmem [resolvable:$true] %s420_s24 }
  0x1d   :  { %s523_s25 = scalar_lea.vmem %s421_s24, 4096  ;;  %p528_p1 = scmp.lt.s32.totalorder %s421_s24, %s421_s24 }
  0x1e   :  { %p524_p0 = scmp.ne.s32.totalorder %s421_s24, %s523_s25  ;;  %p529_p2 = scmp.lt.s32.totalorder %s523_s25, %s523_s25 }
  0x1f   :  { %252 = vmatpush1.bf16.msra.mxu0 %v517_v31  ;;  %325 = vmatpush1.bf16.msra.mxu1 %v518_v32 }
  0x20   :  { %p530_p3 = por %p529_p2, %p528_p1 }
  0x22   :  { %270 = vmatmul.mubr.bf16.vlgmr.msra.gmra.mxu0 %v519_v33  ;;  %343 = vmatmul.mubr.bf16.vlgmr.msra.gmra.mxu1 %v519_v33  ;;  %p531_p4 = pnand %p530_p3, %p524_p0 }
  0x23   :  { %279 = vmatprep.mubr.bf16.mxu0 %v545_v2  ;;  %352 = vmatprep.mubr.bf16.mxu1 %v545_v2 }
  0x2a   :  { %280 = vmatmul.mubr.bf16.gmra.mxu0 %v520_v34  ;;  %353 = vmatmul.mubr.bf16.gmra.mxu1 %v520_v34 }
  0x2b   :  { %289 = vmatprep.mubr.bf16.mxu0 %v545_v2  ;;  %362 = vmatprep.mubr.bf16.mxu1 %v545_v2 }
  0x32   :  { %290 = vmatmul.mubr.bf16.gmra.mxu0 %v521_v35  ;;  %363 = vmatmul.mubr.bf16.gmra.mxu1 %v521_v35 }
  0x33   :  { %299 = vmatprep.mubr.bf16.mxu0 %v545_v2  ;;  %372 = vmatprep.mubr.bf16.mxu1 %v545_v2 }
  0x3a   :  { %300 = vmatmul.mubr.bf16.gmra.mxu0 %v522_v36  ;;  %373 = vmatmul.mubr.bf16.gmra.mxu1 %v522_v36 }
  0xe2   :  { %v271_v37 = vpop.f32.mrf.mxu0  ;;  %v344_v38 = vpop.f32.mrf.mxu1 }
  0xe3   :  { %383 = vst [vmem:[#allocation2] sm:$0xff] %v271_v37  ;;  %385 = vst [vmem:[#allocation2 + $0x10] sm:$0xff] %v344_v38 }
  0xe4   :  { %v273_v39 = vpop.f32.mrf.mxu0  ;;  %v346_v40 = vpop.f32.mrf.mxu1 }
  0xe5   :  { %384 = vst [vmem:[#allocation2 + $0x8] sm:$0xff] %v273_v39  ;;  %386 = vst [vmem:[#allocation2 + $0x18] sm:$0xff] %v346_v40 }
  0xe6   :  { %v275_v41 = vpop.f32.mrf.mxu0  ;;  %v348_v42 = vpop.f32.mrf.mxu1 }
  0xe7   :  { %387 = vst [vmem:[#allocation2 + $0x20] sm:$0xff] %v275_v41  ;;  %389 = vst [vmem:[#allocation2 + $0x30] sm:$0xff] %v348_v42 }
  0xe8   :  { %v277_v43 = vpop.f32.mrf.mxu0  ;;  %v350_v44 = vpop.f32.mrf.mxu1 }
  0xe9   :  { %388 = vst [vmem:[#allocation2 + $0x28] sm:$0xff] %v277_v43  ;;  %390 = vst [vmem:[#allocation2 + $0x38] sm:$0xff] %v350_v44 }
  0xea   :  { %v281_v45 = vpop.f32.mrf.mxu0  ;;  %v354_v46 = vpop.f32.mrf.mxu1 }
  0xeb   :  { %391 = vst [vmem:[#allocation2 + $0x40] sm:$0xff] %v281_v45  ;;  %393 = vst [vmem:[#allocation2 + $0x50] sm:$0xff] %v354_v46 }
  0xec   :  { %v283_v47 = vpop.f32.mrf.mxu0  ;;  %v356_v48 = vpop.f32.mrf.mxu1 }
  0xed   :  { %392 = vst [vmem:[#allocation2 + $0x48] sm:$0xff] %v283_v47  ;;  %394 = vst [vmem:[#allocation2 + $0x58] sm:$0xff] %v356_v48 }
  0xee   :  { %v285_v49 = vpop.f32.mrf.mxu0  ;;  %v358_v50 = vpop.f32.mrf.mxu1 }
  0xef   :  { %395 = vst [vmem:[#allocation2 + $0x60] sm:$0xff] %v285_v49  ;;  %397 = vst [vmem:[#allocation2 + $0x70] sm:$0xff] %v358_v50 }
  0xf0   :  { %v287_v51 = vpop.f32.mrf.mxu0  ;;  %v360_v52 = vpop.f32.mrf.mxu1 }
  0xf1   :  { %396 = vst [vmem:[#allocation2 + $0x68] sm:$0xff] %v287_v51  ;;  %398 = vst [vmem:[#allocation2 + $0x78] sm:$0xff] %v360_v52 }
  0xf2   :  { %v291_v53 = vpop.f32.mrf.mxu0  ;;  %v364_v54 = vpop.f32.mrf.mxu1 }
  0xf3   :  { %399 = vst [vmem:[#allocation2 + $0x80] sm:$0xff] %v291_v53  ;;  %401 = vst [vmem:[#allocation2 + $0x90] sm:$0xff] %v364_v54 }
  0xf4   :  { %v293_v55 = vpop.f32.mrf.mxu0  ;;  %v366_v56 = vpop.f32.mrf.mxu1 }
  0xf5   :  { %400 = vst [vmem:[#allocation2 + $0x88] sm:$0xff] %v293_v55  ;;  %402 = vst [vmem:[#allocation2 + $0x98] sm:$0xff] %v366_v56 }
  0xf6   :  { %v295_v57 = vpop.f32.mrf.mxu0  ;;  %v368_v58 = vpop.f32.mrf.mxu1 }
  0xf7   :  { %403 = vst [vmem:[#allocation2 + $0xa0] sm:$0xff] %v295_v57  ;;  %405 = vst [vmem:[#allocation2 + $0xb0] sm:$0xff] %v368_v58 }
  0xf8   :  { %v297_v59 = vpop.f32.mrf.mxu0  ;;  %v370_v60 = vpop.f32.mrf.mxu1 }
  0xf9   :  { %404 = vst [vmem:[#allocation2 + $0xa8] sm:$0xff] %v297_v59  ;;  %406 = vst [vmem:[#allocation2 + $0xb8] sm:$0xff] %v370_v60 }
  0xfa   :  { %v301_v61 = vpop.f32.mrf.mxu0  ;;  %v374_v62 = vpop.f32.mrf.mxu1 }
  0xfb   :  { %407 = vst [vmem:[#allocation2 + $0xc0] sm:$0xff] %v301_v61  ;;  %409 = vst [vmem:[#allocation2 + $0xd0] sm:$0xff] %v374_v62 }
  0xfc   :  { %v303_v63 = vpop.f32.mrf.mxu0  ;;  %v376_v0 = vpop.f32.mrf.mxu1 }
  0xfd   :  { %408 = vst [vmem:[#allocation2 + $0xc8] sm:$0xff] %v303_v63  ;;  %410 = vst [vmem:[#allocation2 + $0xd8] sm:$0xff] %v376_v0 }
  0xfe   :  { %v305_v1 = vpop.f32.mrf.mxu0  ;;  %v378_v2 = vpop.f32.mrf.mxu1 }
  0xff   :  { %411 = vst [vmem:[#allocation2 + $0xe0] sm:$0xff] %v305_v1  ;;  %413 = vst [vmem:[#allocation2 + $0xf0] sm:$0xff] %v378_v2 }
 0x100   :  { %v307_v3 = vpop.f32.mrf.mxu0  ;;  %v380_v4 = vpop.f32.mrf.mxu1 }
 0x101   :  { %412 = vst [vmem:[#allocation2 + $0xe8] sm:$0xff] %v307_v3  ;;  %414 = vst [vmem:[#allocation2 + $0xf8] sm:$0xff] %v380_v4 }
 0x102   :  { %534 = shalt.err (!%p531_p4)
}
 0x103   :  { %s547_s26 = smov 512   ;;  %s548_s27 = smov 32  }
 0x104   :  { %426 = dma.vmem_to_hbm [thread:$0]  %s421_s24, 4096, %s685_s2, [#allocation3], %s547_s26, %s547_s26, %s548_s27  }
 0x105   :  { %543 = dma.done.wait [#allocation3], 4096  }
 0x106   :  { %544 = vsyncadd [#allocation3], 4294963200 }
 0x107   :  { %430 = vsyncpa [#allocation3], 1 }

// kernel: my_lstm_forward.4
= control target key start
LH: loop header
LB: loop body
LE: loop exit
PB: predicated region body
PF: predicated region fallthrough
CT: control target
= control target key end

     0   :  { %18 = vsyncpa [#allocation7], 0  ;;  %s11630_s0 = inlined_call_operand.vmem [shape: f32[8,8,512], index: 0, kind: input, shape index: {}]   ;;  %s11631_s1 = inlined_call_operand.vmem [shape: bf16[128,512], index: 1, kind: input, shape index: {}]   ;;  %s11632_s2 = inlined_call_operand.vmem [shape: bf16[128,512], index: 2, kind: input, shape index: {}]   ;;  %s11633_s3 = inlined_call_operand.hbm [shape: bf16[128,512], index: 3, kind: input, shape index: {}]   ;;  %s11634_s4 = inlined_call_operand.vmem [shape: f32[8,128], index: 4, kind: input, shape index: {}]   ;;  %s11635_s5 = inlined_call_operand.vmem [shape: f32[8,128], index: 5, kind: input, shape index: {}]   ;;  %s11636_s6 = inlined_call_operand.vmem [shape: f32[8,128], index: 6, kind: input, shape index: {}]   ;;  %s11637_s7 = inlined_call_operand.vmem [shape: f32[8,128], index: 7, kind: input, shape index: {}]   ;;  %s11638_s8 = inlined_call_operand.vmem [shape: bf16[8,8,128], index: 8, kind: output, shape index: {0}]   ;;  %s11639_s9 = inlined_call_operand.hbm [shape: f32[8,128], index: 9, kind: output, shape index: {1}]   ;;  %s11640_s10 = inlined_call_operand.hbm [shape: f32[8,128], index: 10, kind: output, shape index: {2}]   ;;  %s11641_s11 = inlined_call_operand.hbm [shape: f32[8,128], index: 11, kind: output, shape index: {3}]   ;;  %s11642_s12 = inlined_call_operand.hbm [shape: f32[8,128], index: 12, kind: output, shape index: {4}]  }
   0x1   :  { %19 = vsyncpa [#allocation8], 0 }
   0x2   :  { %20 = vsyncpa [#allocation11], 0 }
   0x3   :  { %21 = vsyncpa [#allocation14], 0  ;;  %s9044_s21 = smov [#allocation6]  }
   0x4   :  { %s33_s22 = sshll.u32 %s9044_s21, 4  ;;  %s34_s22 = int_to_ptr.vmem [resolvable:$true] %s33_s22 }
   0x5   :  { %s8944_s23 = scalar_lea.vmem %s34_s22, 4096  ;;  %p8949_p1 = scmp.lt.s32.totalorder %s34_s22, %s34_s22 }
   0x6   :  { %p8945_p0 = scmp.ne.s32.totalorder %s34_s22, %s8944_s23  ;;  %p8950_p2 = scmp.lt.s32.totalorder %s8944_s23, %s8944_s23 }
   0x8   :  { %p8951_p3 = por %p8950_p2, %p8949_p1 }
   0xa   :  { %p8952_p4 = pnand %p8951_p3, %p8945_p0 }
   0xc   :  { %8955 = shalt.err (!%p8952_p4)
}
   0xd   :  { %s9045_s24 = smov 256   ;;  %s9046_s25 = smov 16  }
   0xe   :  { %39 = dma.hbm_to_vmem [thread:$0]  %s11633_s3, 4096, %s34_s22, [#allocation7], %s9045_s24, %s9045_s24, %s9046_s25  }
   0xf   :  { %9036 = dma.done.wait [#allocation7], 4096  }
  0x10   :  { %9037 = vsyncadd [#allocation7], 4294963200  ;;  %v11643_v0 = vmov 0   ;;  %v8062_v1 = vld [vmem:[%s11631_s1 + $0xe4] ss:$16 sps:$4 sm:$0xff]   ;;  %s9049_s20 = smov [#allocation9]  }
  0x11   :  { %297 = vmatprep.mubr.bf16.mxu0 %v11643_v0  ;;  %338 = vmatprep.mubr.bf16.mxu1 %v11643_v0  ;;  %v8064_v2 = vld [vmem:[%s11631_s1 + $0xe0] ss:$16 sps:$4 sm:$0xff]   ;;  %v8065_v3 = vld [vmem:[%s11631_s1 + $0xc4] ss:$16 sps:$4 sm:$0xff]   ;;  %v8073_v6 = vld [vmem:[%s11631_s1 + $0xec] ss:$16 sps:$4 sm:$0xff]  }
  0x12   :  { %265 = vmatprep.subr.bf16.mxu0 %v8062_v1  ;;  %v8067_v4 = vld [vmem:[%s11631_s1 + $0xc0] ss:$16 sps:$4 sm:$0xff]   ;;  %v8068_v5 = vld [vmem:[%s11631_s1 + $0xa4] ss:$16 sps:$4 sm:$0xff]   ;;  %v8076_v7 = vld [vmem:[%s11631_s1 + $0xe8] ss:$16 sps:$4 sm:$0xff]   ;;  %306 = vmatprep.subr.bf16.mxu1 %v8073_v6 }
  0x13   :  { %266 = vmatpush1.bf16.msra.mxu0 %v8064_v2  ;;  %v8070_v8 = vld [vmem:[%s11631_s1 + $0xa0] ss:$16 sps:$4 sm:$0xff]   ;;  %v8071_v9 = vld [vmem:[%s11631_s1 + $0x84] ss:$16 sps:$4 sm:$0xff]   ;;  %307 = vmatpush1.bf16.msra.mxu1 %v8076_v7  ;;  %v8079_v10 = vld [vmem:[%s11631_s1 + $0xcc] ss:$16 sps:$4 sm:$0xff]  }
  0x14   :  { %267 = vmatprep.subr.bf16.mxu0 %v8065_v3  ;;  %v8082_v11 = vld [vmem:[%s11631_s1 + $0xc8] ss:$16 sps:$4 sm:$0xff]   ;;  %308 = vmatprep.subr.bf16.mxu1 %v8079_v10  ;;  %v8075_v12 = vld [vmem:[%s11631_s1 + $0x80] ss:$16 sps:$4 sm:$0xff]   ;;  %v8077_v13 = vld [vmem:[%s11631_s1 + $0x64] ss:$16 sps:$4 sm:$0xff]  }
  0x15   :  { %v8085_v14 = vld [vmem:[%s11631_s1 + $0xac] ss:$16 sps:$4 sm:$0xff]   ;;  %v8088_v15 = vld [vmem:[%s11631_s1 + $0xa8] ss:$16 sps:$4 sm:$0xff]   ;;  %v8081_v17 = vld [vmem:[%s11631_s1 + $0x60] ss:$16 sps:$4 sm:$0xff]  }
  0x16   :  { %v8091_v16 = vld [vmem:[%s11631_s1 + $0x8c] ss:$16 sps:$4 sm:$0xff]   ;;  %v8083_v18 = vld [vmem:[%s11631_s1 + $0x44] ss:$16 sps:$4 sm:$0xff]   ;;  %v8094_v19 = vld [vmem:[%s11631_s1 + $0x88] ss:$16 sps:$4 sm:$0xff]  }
  0x17   :  { %268 = vmatpush1.bf16.msra.mxu0 %v8067_v4  ;;  %309 = vmatpush1.bf16.msra.mxu1 %v8082_v11  ;;  %v8097_v20 = vld [vmem:[%s11631_s1 + $0x6c] ss:$16 sps:$4 sm:$0xff]   ;;  %v8087_v21 = vld [vmem:[%s11631_s1 + $0x40] ss:$16 sps:$4 sm:$0xff]   ;;  %v8089_v22 = vld [vmem:[%s11631_s1 + $0x24] ss:$16 sps:$4 sm:$0xff]  }
  0x18   :  { %269 = vmatprep.subr.bf16.mxu0 %v8068_v5  ;;  %310 = vmatprep.subr.bf16.mxu1 %v8085_v14  ;;  %v8100_v23 = vld [vmem:[%s11631_s1 + $0x68] ss:$16 sps:$4 sm:$0xff]   ;;  %v8101_v24 = vld [vmem:[%s11631_s1 + $0x4c] ss:$16 sps:$4 sm:$0xff]   ;;  %v8093_v25 = vld [vmem:[%s11631_s1 + $0x20] ss:$16 sps:$4 sm:$0xff]  }
  0x19   :  { %v8095_v26 = vld [vmem:[%s11631_s1 + $0x4] ss:$16 sps:$4 sm:$0xff]   ;;  %v8103_v27 = vld [vmem:[%s11631_s1 + $0x48] ss:$16 sps:$4 sm:$0xff]   ;;  %v8104_v28 = vld [vmem:[%s11631_s1 + $0x2c] ss:$16 sps:$4 sm:$0xff]  }
  0x1a   :  { %v8099_v29 = vld [vmem:[%s11631_s1] ss:$16 sps:$4 sm:$0xff]   ;;  %v8106_v31 = vld [vmem:[%s11631_s1 + $0x28] ss:$16 sps:$4 sm:$0xff]   ;;  %v8107_v32 = vld [vmem:[%s11631_s1 + $0xc] ss:$16 sps:$4 sm:$0xff]  }
  0x1b   :  { %270 = vmatpush1.bf16.msra.mxu0 %v8070_v8  ;;  %311 = vmatpush1.bf16.msra.mxu1 %v8088_v15  ;;  %v56_v30 = vld [vmem:[%s11634_s4] sm:$0xff]  ;;  %v8109_v36 = vld [vmem:[%s11631_s1 + $0x8] ss:$16 sps:$4 sm:$0xff]   ;;  %v8118_v38 = vld [vmem:[#allocation6 + $0xec] ss:$16 sps:$4 sm:$0xff]  }
  0x1c   :  { %271 = vmatprep.subr.bf16.mxu0 %v8071_v9  ;;  %312 = vmatprep.subr.bf16.mxu1 %v8091_v16  ;;  %v8112_v33 = vld [vmem:[#allocation6 + $0xe4] ss:$16 sps:$4 sm:$0xff]   ;;  %v8110_v34 = vld [vmem:[#allocation6 + $0xe0] ss:$16 sps:$4 sm:$0xff]   ;;  %v72_v35 = vpack.c.bf16 %v56_v30, %v56_v30  ;;  %v8116_v40 = vld [vmem:[#allocation6 + $0xe8] ss:$16 sps:$4 sm:$0xff]  }
  0x1d   :  { %v8115_v37 = vld [vmem:[#allocation6 + $0xc4] ss:$16 sps:$4 sm:$0xff]   ;;  %v8113_v39 = vld [vmem:[#allocation6 + $0xc0] ss:$16 sps:$4 sm:$0xff]   ;;  %v8124_v42 = vld [vmem:[#allocation6 + $0xcc] ss:$16 sps:$4 sm:$0xff]  }
  0x1e   :  { %v8121_v41 = vld [vmem:[#allocation6 + $0xa4] ss:$16 sps:$4 sm:$0xff]   ;;  %v8119_v43 = vld [vmem:[#allocation6 + $0xa0] ss:$16 sps:$4 sm:$0xff]   ;;  %v8122_v44 = vld [vmem:[#allocation6 + $0xc8] ss:$16 sps:$4 sm:$0xff]  }
  0x1f   :  { %272 = vmatpush1.bf16.msra.mxu0 %v8075_v12  ;;  %313 = vmatpush1.bf16.msra.mxu1 %v8094_v19  ;;  %v9223_v45 = vld [vmem:[#allocation6 + $0x84] ss:$16 sps:$4 sm:$0xff]   ;;  %v9225_v46 = vld [vmem:[#allocation6 + $0x80] ss:$16 sps:$4 sm:$0xff]   ;;  %v9227_v47 = vld [vmem:[#allocation6 + $0xac] ss:$16 sps:$4 sm:$0xff]  }
  0x20   :  { %273 = vmatprep.subr.bf16.mxu0 %v8077_v13  ;;  %314 = vmatprep.subr.bf16.mxu1 %v8097_v20  ;;  %v9230_v48 = vld [vmem:[#allocation6 + $0xa8] ss:$16 sps:$4 sm:$0xff]   ;;  %v9235_v49 = vld [vmem:[#allocation6 + $0x64] ss:$16 sps:$4 sm:$0xff]   ;;  %v9237_v50 = vld [vmem:[#allocation6 + $0x60] ss:$16 sps:$4 sm:$0xff]  }
  0x21   :  { %v9239_v51 = vld [vmem:[#allocation6 + $0x8c] ss:$16 sps:$4 sm:$0xff]   ;;  %v9242_v52 = vld [vmem:[#allocation6 + $0x88] ss:$16 sps:$4 sm:$0xff]   ;;  %v9247_v53 = vld [vmem:[#allocation6 + $0x44] ss:$16 sps:$4 sm:$0xff]  }
  0x22   :  { %v9249_v54 = vld [vmem:[#allocation6 + $0x40] ss:$16 sps:$4 sm:$0xff]   ;;  %v9251_v55 = vld [vmem:[#allocation6 + $0x6c] ss:$16 sps:$4 sm:$0xff]   ;;  %v9254_v56 = vld [vmem:[#allocation6 + $0x68] ss:$16 sps:$4 sm:$0xff]  }
  0x23   :  { %274 = vmatpush1.bf16.msra.mxu0 %v8081_v17  ;;  %315 = vmatpush1.bf16.msra.mxu1 %v8100_v23  ;;  %v9259_v57 = vld [vmem:[#allocation6 + $0x24] ss:$16 sps:$4 sm:$0xff]   ;;  %v9261_v58 = vld [vmem:[#allocation6 + $0x20] ss:$16 sps:$4 sm:$0xff]   ;;  %v9263_v59 = vld [vmem:[#allocation6 + $0x4c] ss:$16 sps:$4 sm:$0xff]  }
  0x24   :  { %275 = vmatprep.subr.bf16.mxu0 %v8083_v18  ;;  %316 = vmatprep.subr.bf16.mxu1 %v8101_v24  ;;  %v9266_v60 = vld [vmem:[#allocation6 + $0x48] ss:$16 sps:$4 sm:$0xff]   ;;  %v9271_v61 = vld [vmem:[#allocation6 + $0x4] ss:$16 sps:$4 sm:$0xff]   ;;  %v9273_v62 = vld [vmem:[#allocation6] ss:$16 sps:$4 sm:$0xff]  }
  0x25   :  { %v9275_v63 = vld [vmem:[#allocation6 + $0x2c] ss:$16 sps:$4 sm:$0xff]   ;;  %v9278_v1 = vld [vmem:[#allocation6 + $0x28] ss:$16 sps:$4 sm:$0xff]   ;;  %v60_v2 = vld [vmem:[%s11636_s6] sm:$0xff]  ;;  %s7151_s6 = sshll.u32 %s9049_s20, 4  ;;  %s7152_s6 = int_to_ptr.vmem [resolvable:$true] %s7151_s6 }
  0x26   :  { %v408_v3 = vpack.c.bf16 %v60_v2, %v60_v2  ;;  %v9286_v4 = vld [vmem:[#allocation6 + $0xc] ss:$16 sps:$4 sm:$0xff]   ;;  %v9288_v5 = vld [vmem:[#allocation6 + $0x8] ss:$16 sps:$4 sm:$0xff]   ;;  %v9296_v6 = vld [vmem:[%s11632_s2 + $0xe4] ss:$16 sps:$4 sm:$0xff]  }
  0x27   :  { %276 = vmatpush1.bf16.msra.mxu0 %v8087_v21  ;;  %317 = vmatpush1.bf16.msra.mxu1 %v8103_v27  ;;  %v9301_v7 = vld [vmem:[%s11632_s2 + $0xec] ss:$16 sps:$4 sm:$0xff]   ;;  %v9306_v8 = vld [vmem:[%s11632_s2 + $0xe0] ss:$16 sps:$4 sm:$0xff]   ;;  %v9311_v9 = vld [vmem:[%s11632_s2 + $0xe8] ss:$16 sps:$4 sm:$0xff]  }
  0x28   :  { %277 = vmatprep.subr.bf16.mxu0 %v8089_v22  ;;  %318 = vmatprep.subr.bf16.mxu1 %v8104_v28  ;;  %v9320_v10 = vld [vmem:[%s11632_s2 + $0xc4] ss:$16 sps:$4 sm:$0xff]   ;;  %v9325_v11 = vld [vmem:[%s11632_s2 + $0xcc] ss:$16 sps:$4 sm:$0xff]   ;;  %v9331_v12 = vld [vmem:[%s11632_s2 + $0xc0] ss:$16 sps:$4 sm:$0xff]  }
  0x29   :  { %v9336_v13 = vld [vmem:[%s11632_s2 + $0xc8] ss:$16 sps:$4 sm:$0xff]   ;;  %v9345_v14 = vld [vmem:[%s11632_s2 + $0xa4] ss:$16 sps:$4 sm:$0xff]   ;;  %v9350_v15 = vld [vmem:[%s11632_s2 + $0xac] ss:$16 sps:$4 sm:$0xff]  }
  0x2a   :  { %v9355_v16 = vld [vmem:[%s11632_s2 + $0xa0] ss:$16 sps:$4 sm:$0xff]   ;;  %v9360_v17 = vld [vmem:[%s11632_s2 + $0xa8] ss:$16 sps:$4 sm:$0xff]   ;;  %v9369_v18 = vld [vmem:[%s11632_s2 + $0x84] ss:$16 sps:$4 sm:$0xff]  }
  0x2b   :  { %278 = vmatpush1.bf16.msra.mxu0 %v8093_v25  ;;  %319 = vmatpush1.bf16.msra.mxu1 %v8106_v31  ;;  %v9374_v19 = vld [vmem:[%s11632_s2 + $0x8c] ss:$16 sps:$4 sm:$0xff]   ;;  %v9379_v20 = vld [vmem:[%s11632_s2 + $0x80] ss:$16 sps:$4 sm:$0xff]   ;;  %v9384_v21 = vld [vmem:[%s11632_s2 + $0x88] ss:$16 sps:$4 sm:$0xff]  }
  0x2c   :  { %279 = vmatprep.subr.bf16.mxu0 %v8095_v26  ;;  %320 = vmatprep.subr.bf16.mxu1 %v8107_v32  ;;  %v9393_v22 = vld [vmem:[%s11632_s2 + $0x64] ss:$16 sps:$4 sm:$0xff]   ;;  %v9398_v23 = vld [vmem:[%s11632_s2 + $0x6c] ss:$16 sps:$4 sm:$0xff]   ;;  %v9403_v24 = vld [vmem:[%s11632_s2 + $0x60] ss:$16 sps:$4 sm:$0xff]  }
  0x2d   :  { %v9408_v25 = vld [vmem:[%s11632_s2 + $0x68] ss:$16 sps:$4 sm:$0xff]   ;;  %v9415_v26 = vld [vmem:[%s11632_s2 + $0x44] ss:$16 sps:$4 sm:$0xff]   ;;  %v9420_v27 = vld [vmem:[%s11632_s2 + $0x4c] ss:$16 sps:$4 sm:$0xff]  }
  0x2e   :  { %v9426_v28 = vld [vmem:[%s11632_s2 + $0x40] ss:$16 sps:$4 sm:$0xff]   ;;  %v9438_v30 = vld [vmem:[%s11632_s2 + $0x24] ss:$16 sps:$4 sm:$0xff]   ;;  %v9449_v32 = vld [vmem:[%s11632_s2 + $0x2c] ss:$16 sps:$4 sm:$0xff]  }
  0x2f   :  { %280 = vmatpush1.bf16.msra.mxu0 %v8099_v29  ;;  %321 = vmatpush1.bf16.msra.mxu1 %v8109_v36  ;;  %v9433_v29 = vld [vmem:[%s11632_s2 + $0x48] ss:$16 sps:$4 sm:$0xff]   ;;  %v9444_v31 = vld [vmem:[%s11632_s2 + $0x20] ss:$16 sps:$4 sm:$0xff]   ;;  %11770 = vst [vmem:[#allocation20_spill] sm:$0xff] %v9449_v32 }
  0x30   :  { %601 = vmatprep.subr.bf16.mxu0 %v8112_v33  ;;  %642 = vmatprep.subr.bf16.mxu1 %v8118_v38  ;;  %11769 = vst [vmem:[#allocation19_spill] sm:$0xff] %v9444_v31  ;;  %v9454_v33 = vld [vmem:[%s11632_s2 + $0x28] ss:$16 sps:$4 sm:$0xff]   ;;  %v9473_v36 = vld [vmem:[%s11632_s2] ss:$16 sps:$4 sm:$0xff]  }
  0x31   :  { %11771 = vst [vmem:[#allocation21_spill] sm:$0xff] %v9454_v33  ;;  %11774 = vst [vmem:[#allocation24_spill] sm:$0xff] %v9473_v36  ;;  %v8894_v38 = vld [vmem:[%s11631_s1 + $0xe4] ss:$16 sps:$4 sm:$0xff]  }
  0x32   :  { %298 = vmatmul.mubr.bf16.vlgmr.msra.gmra.mxu0 %v72_v35  ;;  %339 = vmatmul.mubr.bf16.vlgmr.msra.gmra.mxu1 %v72_v35  ;;  %v9465_v35 = vld [vmem:[%s11632_s2 + $0xc] ss:$16 sps:$4 sm:$0xff]  }
  0x33   :  { %602 = vmatpush1.bf16.msra.mxu0 %v8110_v34  ;;  %633 = vmatprep.mubr.bf16.mxu0 %v11643_v0  ;;  %v9459_v34 = vld [vmem:[%s11632_s2 + $0x4] ss:$16 sps:$4 sm:$0xff]   ;;  %11773 = vst [vmem:[#allocation23_spill] sm:$0xff] %v9465_v35 }
  0x34   :  { %603 = vmatprep.subr.bf16.mxu0 %v8115_v37  ;;  %643 = vmatpush1.bf16.msra.mxu1 %v8116_v40  ;;  %11772 = vst [vmem:[#allocation22_spill] sm:$0xff] %v9459_v34  ;;  %v9478_v37 = vld [vmem:[%s11632_s2 + $0x8] ss:$16 sps:$4 sm:$0xff]   ;;  %v68_v40 = vld [vmem:[%s11630_s0] sm:$0xff] }
  0x35   :  { %644 = vmatprep.subr.bf16.mxu1 %v8124_v42  ;;  %674 = vmatprep.mubr.bf16.mxu1 %v11643_v0  ;;  %11775 = vst [vmem:[#allocation25_spill] sm:$0xff] %v9478_v37  ;;  %v69_v42 = vld [vmem:[%s11630_s0 + $0x8] sm:$0xff] }
  0x37   :  { %604 = vmatpush1.bf16.msra.mxu0 %v8113_v39  ;;  %v8895_v39 = vld [vmem:[%s11631_s1 + $0xec] ss:$16 sps:$4 sm:$0xff]  }
  0x38   :  { %605 = vmatprep.subr.bf16.mxu0 %v8121_v41  ;;  %645 = vmatpush1.bf16.msra.mxu1 %v8122_v44 }
  0x39   :  { %646 = vmatprep.subr.bf16.mxu1 %v9227_v47 }
  0x3b   :  { %606 = vmatpush1.bf16.msra.mxu0 %v8119_v43 }
  0x3c   :  { %607 = vmatprep.subr.bf16.mxu0 %v9223_v45  ;;  %647 = vmatpush1.bf16.msra.mxu1 %v9230_v48 }
  0x3d   :  { %648 = vmatprep.subr.bf16.mxu1 %v9239_v51 }
  0x3f   :  { %608 = vmatpush1.bf16.msra.mxu0 %v9225_v46 }
  0x40   :  { %609 = vmatprep.subr.bf16.mxu0 %v9235_v49  ;;  %649 = vmatpush1.bf16.msra.mxu1 %v9242_v52 }
  0x41   :  { %650 = vmatprep.subr.bf16.mxu1 %v9251_v55 }
  0x43   :  { %610 = vmatpush1.bf16.msra.mxu0 %v9237_v50 }
  0x44   :  { %611 = vmatprep.subr.bf16.mxu0 %v9247_v53  ;;  %651 = vmatpush1.bf16.msra.mxu1 %v9254_v56 }
  0x45   :  { %652 = vmatprep.subr.bf16.mxu1 %v9263_v59 }
  0x47   :  { %612 = vmatpush1.bf16.msra.mxu0 %v9249_v54 }
  0x48   :  { %613 = vmatprep.subr.bf16.mxu0 %v9259_v57  ;;  %653 = vmatpush1.bf16.msra.mxu1 %v9266_v60 }
  0x49   :  { %654 = vmatprep.subr.bf16.mxu1 %v9275_v63 }
  0x4b   :  { %614 = vmatpush1.bf16.msra.mxu0 %v9261_v58 }
  0x4c   :  { %615 = vmatprep.subr.bf16.mxu0 %v9271_v61  ;;  %655 = vmatpush1.bf16.msra.mxu1 %v9278_v1 }
  0x4d   :  { %656 = vmatprep.subr.bf16.mxu1 %v9286_v4 }
  0x4f   :  { %616 = vmatpush1.bf16.msra.mxu0 %v9273_v62 }
  0x50   :  { %657 = vmatpush1.bf16.msra.mxu1 %v9288_v5  ;;  %843 = vmatprep.subr.bf16.mxu0 %v9296_v6 }
  0x51   :  { %884 = vmatprep.subr.bf16.mxu1 %v9301_v7 }
  0x52   :  { %634 = vmatmul.mubr.bf16.vlgmr.msra.gmra.mxu0 %v408_v3 }
  0x53   :  { %875 = vmatprep.mubr.bf16.mxu0 %v11643_v0  ;;  %675 = vmatmul.mubr.bf16.vlgmr.msra.gmra.mxu1 %v408_v3 }
  0x54   :  { %844 = vmatpush1.bf16.msra.mxu0 %v9306_v8  ;;  %885 = vmatpush1.bf16.msra.mxu1 %v9311_v9 }
  0x55   :  { %916 = vmatprep.mubr.bf16.mxu1 %v11643_v0  ;;  %845 = vmatprep.subr.bf16.mxu0 %v9320_v10 }
  0x56   :  { %886 = vmatprep.subr.bf16.mxu1 %v9325_v11 }
  0x58   :  { %846 = vmatpush1.bf16.msra.mxu0 %v9331_v12  ;;  %887 = vmatpush1.bf16.msra.mxu1 %v9336_v13 }
  0x59   :  { %847 = vmatprep.subr.bf16.mxu0 %v9345_v14  ;;  %888 = vmatprep.subr.bf16.mxu1 %v9350_v15 }
  0x5c   :  { %848 = vmatpush1.bf16.msra.mxu0 %v9355_v16  ;;  %889 = vmatpush1.bf16.msra.mxu1 %v9360_v17 }
  0x5d   :  { %849 = vmatprep.subr.bf16.mxu0 %v9369_v18  ;;  %890 = vmatprep.subr.bf16.mxu1 %v9374_v19 }
  0x60   :  { %850 = vmatpush1.bf16.msra.mxu0 %v9379_v20  ;;  %891 = vmatpush1.bf16.msra.mxu1 %v9384_v21 }
  0x61   :  { %851 = vmatprep.subr.bf16.mxu0 %v9393_v22  ;;  %892 = vmatprep.subr.bf16.mxu1 %v9398_v23 }
  0x64   :  { %852 = vmatpush1.bf16.msra.mxu0 %v9403_v24  ;;  %893 = vmatpush1.bf16.msra.mxu1 %v9408_v25 }
  0x65   :  { %853 = vmatprep.subr.bf16.mxu0 %v9415_v26  ;;  %894 = vmatprep.subr.bf16.mxu1 %v9420_v27 }
  0x68   :  { %854 = vmatpush1.bf16.msra.mxu0 %v9426_v28  ;;  %895 = vmatpush1.bf16.msra.mxu1 %v9433_v29 }
  0x69   :  { %855 = vmatprep.subr.bf16.mxu0 %v9438_v30  ;;  %896 = vmatprep.subr.bf16.mxu1 %v9449_v32 }
  0x6c   :  { %856 = vmatpush1.bf16.msra.mxu0 %v9444_v31  ;;  %897 = vmatpush1.bf16.msra.mxu1 %v9454_v33 }
  0x6d   :  { %857 = vmatprep.subr.bf16.mxu0 %v9459_v34  ;;  %898 = vmatprep.subr.bf16.mxu1 %v9465_v35  ;;  %v71_v35 = vld [vmem:[%s11630_s0 + $0x18] sm:$0xff] }
  0x70   :  { %858 = vmatpush1.bf16.msra.mxu0 %v9473_v36  ;;  %899 = vmatpush1.bf16.msra.mxu1 %v9478_v37 }
  0x71   :  { %1148 = vmatprep.subr.bf16.mxu0 %v8894_v38  ;;  %1189 = vmatprep.subr.bf16.mxu1 %v8895_v39 }
  0xf2   :  { %v299_v41 = vpop.f32.mrf.mxu0  ;;  %v340_v37 = vpop.f32.mrf.mxu1 }
  0xf3   :  { %v347_v43 = vadd.f32 %v299_v41, %v68_v40  ;;  %v70_v40 = vld [vmem:[%s11630_s0 + $0x10] sm:$0xff] }
  0xf4   :  { %v301_v44 = vpop.f32.mrf.mxu0  ;;  %v342_v39 = vpop.f32.mrf.mxu1 }
  0xf5   :  { %v7235_v2 = vmul.f32 -1.442695, %v347_v43  ;;  %v348_v3 = vadd.f32 %v301_v44, %v69_v42  ;;  %v350_v41 = vadd.f32 %v342_v39, %v71_v35  ;;  %v349_v43 = vadd.f32 %v340_v37, %v70_v40 }
  0xf6   :  { %v303_v0 = vpop.f32.mrf.mxu0  ;;  %v344_v34 = vpop.f32.mrf.mxu1 }
  0xf7   :  { %8638 = vpow2.f32 %v7235_v2  ;;  %v7236_v38 = vmul.f32 -1.442695, %v348_v3  ;;  %v7237_v42 = vmul.f32 -1.442695, %v350_v41 }
  0xf8   :  { %v304_v36 = vpop.f32.mrf.mxu0  ;;  %v345_v33 = vpop.f32.mrf.mxu1 }
  0xf9   :  { %8640 = vpow2.f32 %v7236_v38  ;;  %v58_v33 = vld [vmem:[%s11635_s5] sm:$0xff] }
  0xfa   :  { %8642 = vtanh.f32 %v349_v43 }
  0xfb   :  { %8644 = vpow2.f32 %v7237_v42 }
 0x104   :  { %v8639_v0 = vpop.eup %8638 }
 0x105   :  { %v357_v44 = vadd.f32 1.0, %v8639_v0  ;;  %v8896_v0 = vld [vmem:[%s11631_s1 + $0xe0] ss:$16 sps:$4 sm:$0xff]  }
 0x106   :  { %v8641_v2 = vpop.eup %8640 }
 0x107   :  { %8646 = vrcp.f32 %v357_v44  ;;  %v358_v36 = vadd.f32 1.0, %v8641_v2  ;;  %v8643_v3 = vpop.eup %8642  ;;  %v8899_v44 = vld [vmem:[%s11631_s1 + $0xcc] ss:$16 sps:$4 sm:$0xff]   ;;  %v11776_v2 = vmov 0  }
 0x108   :  { %v8645_v38 = vpop.eup %8644 }
 0x109   :  { %8648 = vrcp.f32 %v358_v36  ;;  %v367_v32 = vadd.f32 1.0, %v8645_v38  ;;  %v8900_v36 = vld [vmem:[%s11631_s1 + $0xc0] ss:$16 sps:$4 sm:$0xff]   ;;  %v8902_v38 = vld [vmem:[%s11631_s1 + $0xa4] ss:$16 sps:$4 sm:$0xff]  }
 0x10b   :  { %8650 = vrcp.f32 %v367_v32  ;;  %v8898_v32 = vld [vmem:[%s11631_s1 + $0xc4] ss:$16 sps:$4 sm:$0xff]  }
 0x114   :  { %v8647_v31 = vpop.eup %8646 }
 0x115   :  { %v371_v37 = vmul.f32 %v8647_v31, %v8643_v3  ;;  %v8897_v31 = vld [vmem:[%s11631_s1 + $0xe8] ss:$16 sps:$4 sm:$0xff]  }
 0x116   :  { %v8649_v34 = vpop.eup %8648  ;;  %v8901_v3 = vld [vmem:[%s11631_s1 + $0xc8] ss:$16 sps:$4 sm:$0xff]  }
 0x117   :  { %v370_v35 = vmul.f32 %v8649_v34, %v58_v33  ;;  %v8903_v33 = vld [vmem:[%s11631_s1 + $0xac] ss:$16 sps:$4 sm:$0xff]   ;;  %v8904_v34 = vld [vmem:[%s11631_s1 + $0xa0] ss:$16 sps:$4 sm:$0xff]  }
 0x118   :  { %v8651_v40 = vpop.eup %8650 }
 0x119   :  { %v9507_v39 = vadd.f32 %v371_v37, %v370_v35  ;;  %v8905_v35 = vld [vmem:[%s11631_s1 + $0xa8] ss:$16 sps:$4 sm:$0xff]   ;;  %v8906_v37 = vld [vmem:[%s11631_s1 + $0x84] ss:$16 sps:$4 sm:$0xff]  }
 0x11b   :  { %8652 = vtanh.f32 %v9507_v39 }
 0x128   :  { %v8653_v41 = vpop.eup %8652 }
 0x129   :  { %v374_v43 = vmul.f32 %v8653_v41, %v8651_v40  ;;  %v8907_v40 = vld [vmem:[%s11631_s1 + $0x8c] ss:$16 sps:$4 sm:$0xff]   ;;  %v8908_v41 = vld [vmem:[%s11631_s1 + $0x80] ss:$16 sps:$4 sm:$0xff]  }
 0x12b   :  { %v9510_v42 = vpack.c.bf16 %v374_v43, %v374_v43  ;;  %v8909_v43 = vld [vmem:[%s11631_s1 + $0x88] ss:$16 sps:$4 sm:$0xff]  }
 0x12d   :  { %876 = vmatmul.mubr.bf16.vlgmr.msra.gmra.mxu0 %v9510_v42  ;;  %917 = vmatmul.mubr.bf16.vlgmr.msra.gmra.mxu1 %v9510_v42 }
 0x12e   :  { %1149 = vmatpush1.bf16.msra.mxu0 %v8896_v0  ;;  %1190 = vmatpush1.bf16.msra.mxu1 %v8897_v31  ;;  %v8910_v0 = vld [vmem:[%s11631_s1 + $0x64] ss:$16 sps:$4 sm:$0xff]   ;;  %v8911_v31 = vld [vmem:[%s11631_s1 + $0x6c] ss:$16 sps:$4 sm:$0xff]  }
 0x12f   :  { %1150 = vmatprep.subr.bf16.mxu0 %v8898_v32  ;;  %1191 = vmatprep.subr.bf16.mxu1 %v8899_v44  ;;  %v8912_v32 = vld [vmem:[%s11631_s1 + $0x60] ss:$16 sps:$4 sm:$0xff]   ;;  %v8913_v44 = vld [vmem:[%s11631_s1 + $0x68] ss:$16 sps:$4 sm:$0xff]  }
 0x130   :  { %1180 = vmatprep.mubr.bf16.mxu0 %v11776_v2  ;;  %1221 = vmatprep.mubr.bf16.mxu1 %v11776_v2 }
 0x132   :  { %1151 = vmatpush1.bf16.msra.mxu0 %v8900_v36  ;;  %1192 = vmatpush1.bf16.msra.mxu1 %v8901_v3  ;;  %v8914_v36 = vld [vmem:[%s11631_s1 + $0x44] ss:$16 sps:$4 sm:$0xff]   ;;  %v8915_v3 = vld [vmem:[%s11631_s1 + $0x4c] ss:$16 sps:$4 sm:$0xff]  }
 0x133   :  { %1152 = vmatprep.subr.bf16.mxu0 %v8902_v38  ;;  %1193 = vmatprep.subr.bf16.mxu1 %v8903_v33  ;;  %v8916_v38 = vld [vmem:[%s11631_s1 + $0x40] ss:$16 sps:$4 sm:$0xff]   ;;  %v8917_v33 = vld [vmem:[%s11631_s1 + $0x48] ss:$16 sps:$4 sm:$0xff]  }
 0x136   :  { %1153 = vmatpush1.bf16.msra.mxu0 %v8904_v34  ;;  %1194 = vmatpush1.bf16.msra.mxu1 %v8905_v35  ;;  %v8918_v34 = vld [vmem:[%s11631_s1 + $0x24] ss:$16 sps:$4 sm:$0xff]   ;;  %v8919_v35 = vld [vmem:[%s11631_s1 + $0x2c] ss:$16 sps:$4 sm:$0xff]  }
 0x137   :  { %1154 = vmatprep.subr.bf16.mxu0 %v8906_v37  ;;  %1195 = vmatprep.subr.bf16.mxu1 %v8907_v40  ;;  %v8920_v37 = vld [vmem:[%s11631_s1 + $0x20] ss:$16 sps:$4 sm:$0xff]   ;;  %v8921_v40 = vld [vmem:[%s11631_s1 + $0x28] ss:$16 sps:$4 sm:$0xff]  }
 0x13a   :  { %1155 = vmatpush1.bf16.msra.mxu0 %v8908_v41  ;;  %1196 = vmatpush1.bf16.msra.mxu1 %v8909_v43  ;;  %v8922_v41 = vld [vmem:[%s11631_s1 + $0x4] ss:$16 sps:$4 sm:$0xff]   ;;  %v8923_v43 = vld [vmem:[%s11631_s1 + $0xc] ss:$16 sps:$4 sm:$0xff]  }
 0x13b   :  { %1156 = vmatprep.subr.bf16.mxu0 %v8910_v0  ;;  %1197 = vmatprep.subr.bf16.mxu1 %v8911_v31  ;;  %v635_v0 = vpop.f32.mrf.mxu0 }
 0x13d   :  { %v9600_v31 = vpop.f32.mrf.mxu0 }
 0x13e   :  { %1157 = vmatpush1.bf16.msra.mxu0 %v8912_v32  ;;  %1198 = vmatpush1.bf16.msra.mxu1 %v8913_v44  ;;  %v8924_v32 = vld [vmem:[%s11631_s1] ss:$16 sps:$4 sm:$0xff]   ;;  %v8925_v44 = vld [vmem:[%s11631_s1 + $0x8] ss:$16 sps:$4 sm:$0xff]  }
 0x13f   :  { %1158 = vmatprep.subr.bf16.mxu0 %v8914_v36  ;;  %1199 = vmatprep.subr.bf16.mxu1 %v8915_v3  ;;  %v639_v36 = vpop.f32.mrf.mxu0  ;;  %v8926_v3 = vld [vmem:[#allocation6 + $0xe4] ss:$16 sps:$4 sm:$0xff]  }
 0x142   :  { %1159 = vmatpush1.bf16.msra.mxu0 %v8916_v38  ;;  %1200 = vmatpush1.bf16.msra.mxu1 %v8917_v33  ;;  %v8927_v38 = vld [vmem:[#allocation6 + $0xec] ss:$16 sps:$4 sm:$0xff]   ;;  %v640_v33 = vpop.f32.mrf.mxu0 }
 0x143   :  { %1160 = vmatprep.subr.bf16.mxu0 %v8918_v34  ;;  %1201 = vmatprep.subr.bf16.mxu1 %v8919_v35  ;;  %v9610_v34 = vpop.f32.mrf.mxu1  ;;  %v8928_v35 = vld [vmem:[#allocation6 + $0xe0] ss:$16 sps:$4 sm:$0xff]  }
 0x144   :  { %v62_v33 = vld [vmem:[%s11637_s7] sm:$0xff] }
 0x146   :  { %1161 = vmatpush1.bf16.msra.mxu0 %v8920_v37  ;;  %1202 = vmatpush1.bf16.msra.mxu1 %v8921_v40  ;;  %v8929_v37 = vld [vmem:[#allocation6 + $0xe8] ss:$16 sps:$4 sm:$0xff]   ;;  %v678_v40 = vpop.f32.mrf.mxu1 }
 0x147   :  { %1162 = vmatprep.subr.bf16.mxu0 %v8922_v41  ;;  %1203 = vmatprep.subr.bf16.mxu1 %v8923_v43  ;;  %v8930_v41 = vld [vmem:[#allocation6 + $0xc4] ss:$16 sps:$4 sm:$0xff]   ;;  %v8931_v43 = vld [vmem:[#allocation6 + $0xcc] ss:$16 sps:$4 sm:$0xff]  }
 0x14a   :  { %1163 = vmatpush1.bf16.msra.mxu0 %v8924_v32  ;;  %1204 = vmatpush1.bf16.msra.mxu1 %v8925_v44  ;;  %v680_v32 = vpop.f32.mrf.mxu1  ;;  %v8932_v44 = vld [vmem:[#allocation6 + $0xc0] ss:$16 sps:$4 sm:$0xff]  }
 0x14b   :  { %1483 = vmatprep.subr.bf16.mxu0 %v8926_v3  ;;  %1524 = vmatprep.subr.bf16.mxu1 %v8927_v38  ;;  %v8934_v3 = vld [vmem:[#allocation6 + $0xa4] ss:$16 sps:$4 sm:$0xff]   ;;  %v8935_v38 = vld [vmem:[#allocation6 + $0xa0] ss:$16 sps:$4 sm:$0xff]  }
 0x14c   :  { %v681_v36 = vpop.f32.mrf.mxu1 }
 0x14d   :  { %1181 = vmatmul.mubr.bf16.vlgmr.msra.gmra.mxu0 %v9510_v42  ;;  %1222 = vmatmul.mubr.bf16.vlgmr.msra.gmra.mxu1 %v9510_v42  ;;  %v8933_v42 = vld [vmem:[#allocation6 + $0xc8] ss:$16 sps:$4 sm:$0xff]  }
 0x14e   :  { %1484 = vmatpush1.bf16.msra.mxu0 %v8928_v35  ;;  %1525 = vmatpush1.bf16.msra.mxu1 %v8929_v37 }
 0x14f   :  { %1485 = vmatprep.subr.bf16.mxu0 %v8930_v41  ;;  %1526 = vmatprep.subr.bf16.mxu1 %v8931_v43 }
 0x150   :  { %1515 = vmatprep.mubr.bf16.mxu0 %v11776_v2  ;;  %1556 = vmatprep.mubr.bf16.mxu1 %v11776_v2 }
 0x152   :  { %1486 = vmatpush1.bf16.msra.mxu0 %v8932_v44  ;;  %1527 = vmatpush1.bf16.msra.mxu1 %v8933_v42 }
 0x153   :  { %1487 = vmatprep.subr.bf16.mxu0 %v8934_v3  ;;  %1528 = vmatprep.subr.bf16.mxu1 %v9227_v47 }
 0x156   :  { %1488 = vmatpush1.bf16.msra.mxu0 %v8935_v38  ;;  %1529 = vmatpush1.bf16.msra.mxu1 %v9230_v48 }
 0x157   :  { %1489 = vmatprep.subr.bf16.mxu0 %v9223_v45  ;;  %1530 = vmatprep.subr.bf16.mxu1 %v9239_v51 }
 0x15a   :  { %1490 = vmatpush1.bf16.msra.mxu0 %v9225_v46  ;;  %1531 = vmatpush1.bf16.msra.mxu1 %v9242_v52 }
 0x15b   :  { %1491 = vmatprep.subr.bf16.mxu0 %v9235_v49  ;;  %1532 = vmatprep.subr.bf16.mxu1 %v9251_v55 }
 0x15e   :  { %1492 = vmatpush1.bf16.msra.mxu0 %v9237_v50  ;;  %1533 = vmatpush1.bf16.msra.mxu1 %v9254_v56 }
 0x15f   :  { %1493 = vmatprep.subr.bf16.mxu0 %v9247_v53  ;;  %1534 = vmatprep.subr.bf16.mxu1 %v9263_v59 }
 0x162   :  { %1494 = vmatpush1.bf16.msra.mxu0 %v9249_v54  ;;  %1535 = vmatpush1.bf16.msra.mxu1 %v9266_v60 }
 0x163   :  { %1495 = vmatprep.subr.bf16.mxu0 %v9259_v57  ;;  %1536 = vmatprep.subr.bf16.mxu1 %v9275_v63 }
 0x166   :  { %1496 = vmatpush1.bf16.msra.mxu0 %v9261_v58  ;;  %1537 = vmatpush1.bf16.msra.mxu1 %v9278_v1  ;;  %v7305_v1 = vld [vmem:[%s11630_s0 + $0x20] sm:$0xff] }
 0x167   :  { %1497 = vmatprep.subr.bf16.mxu0 %v9271_v61  ;;  %1538 = vmatprep.subr.bf16.mxu1 %v9286_v4 }
 0x16a   :  { %1498 = vmatpush1.bf16.msra.mxu0 %v9273_v62  ;;  %1539 = vmatpush1.bf16.msra.mxu1 %v9288_v5 }
 0x16b   :  { %1725 = vmatprep.subr.bf16.mxu0 %v9296_v6  ;;  %1766 = vmatprep.subr.bf16.mxu1 %v9301_v7  ;;  %v7306_v6 = vld [vmem:[%s11630_s0 + $0x28] sm:$0xff] }
 0x1ed   :  { %v877_v45 = vpop.f32.mrf.mxu0  ;;  %v918_v46 = vpop.f32.mrf.mxu1 }
 0x1ee   :  { %v878_v47 = vadd.f32 %v877_v45, %v635_v0  ;;  %v919_v60 = vadd.f32 %v918_v46, %v9610_v34 }
 0x1ef   :  { %v879_v48 = vpop.f32.mrf.mxu0  ;;  %v920_v49 = vpop.f32.mrf.mxu1 }
 0x1f0   :  { %v7302_v50 = vmul.f32 -1.442695, %v878_v47  ;;  %v880_v51 = vadd.f32 %v879_v48, %v9600_v31  ;;  %v921_v57 = vadd.f32 %v920_v49, %v678_v40  ;;  %v7308_v48 = vld [vmem:[%s11630_s0 + $0x38] sm:$0xff] }
 0x1f1   :  { %v881_v52 = vpop.f32.mrf.mxu0  ;;  %v922_v53 = vpop.f32.mrf.mxu1 }
 0x1f2   :  { %8654 = vpow2.f32 %v7302_v50  ;;  %v7303_v54 = vmul.f32 -1.442695, %v880_v51  ;;  %v7304_v58 = vmul.f32 -1.442695, %v921_v57  ;;  %v7307_v50 = vld [vmem:[%s11630_s0 + $0x30] sm:$0xff] }
 0x1f3   :  { %v882_v55 = vpop.f32.mrf.mxu0  ;;  %v923_v56 = vpop.f32.mrf.mxu1 }
 0x1f4   :  { %8656 = vpow2.f32 %v7303_v54 }
 0x1f5   :  { %8658 = vpow2.f32 %v7304_v58 }
 0x1ff   :  { %v8655_v59 = vpop.eup %8654 }
 0x200   :  { %v931_v61 = vadd.f32 1.0, %v8655_v59 }
 0x201   :  { %v8657_v62 = vpop.eup %8656 }
 0x202   :  { %8660 = vrcp.f32 %v931_v61  ;;  %v932_v63 = vadd.f32 1.0, %v8657_v62  ;;  %v8659_v7 = vpop.eup %8658 }
 0x203   :  { %8662 = vtanh.f32 %v919_v60  ;;  %v941_v32 = vadd.f32 1.0, %v8659_v7  ;;  %v9776_v7 = vld [vmem:[%s11631_s1 + $0x84] ss:$16 sps:$4 sm:$0xff]  }
 0x204   :  { %8664 = vrcp.f32 %v932_v63 }
 0x20d   :  { %v1182_v4 = vpop.f32.mrf.mxu0  ;;  %v1223_v5 = vpop.f32.mrf.mxu1 }
 0x20e   :  { %v1230_v0 = vadd.f32 %v7305_v1, %v1182_v4  ;;  %v1232_v53 = vadd.f32 %v7307_v50, %v1223_v5  ;;  %v9750_v1 = vld [vmem:[%s11631_s1 + $0xa4] ss:$16 sps:$4 sm:$0xff]   ;;  %v9755_v4 = vld [vmem:[%s11631_s1 + $0xac] ss:$16 sps:$4 sm:$0xff]   ;;  %v9764_v5 = vld [vmem:[%s11631_s1 + $0xa0] ss:$16 sps:$4 sm:$0xff]  }
 0x20f   :  { %v8661_v31 = vpop.eup %8660  ;;  %v1184_v34 = vpop.f32.mrf.mxu0  ;;  %v9899_v50 = vld [vmem:[#allocation6 + $0xe4] ss:$16 sps:$4 sm:$0xff]  }
 0x210   :  { %v1225_v35 = vpop.f32.mrf.mxu1  ;;  %v8663_v37 = vpop.eup %8662  ;;  %v7341_v40 = vmul.f32 -1.442695, %v1230_v0  ;;  %v1231_v41 = vadd.f32 %v7306_v6, %v1184_v34  ;;  %v9769_v6 = vld [vmem:[%s11631_s1 + $0xa8] ss:$16 sps:$4 sm:$0xff]   ;;  %v9781_v0 = vld [vmem:[%s11631_s1 + $0x8c] ss:$16 sps:$4 sm:$0xff]  }
 0x211   :  { %v8665_v43 = vpop.eup %8664  ;;  %v1186_v44 = vpop.f32.mrf.mxu0  ;;  %v945_v36 = vmul.f32 %v8663_v37, %v8661_v31  ;;  %v1233_v49 = vadd.f32 %v7308_v48, %v1225_v35  ;;  %v9788_v31 = vld [vmem:[%s11631_s1 + $0x80] ss:$16 sps:$4 sm:$0xff]   ;;  %v9800_v34 = vld [vmem:[%s11631_s1 + $0x64] ss:$16 sps:$4 sm:$0xff]   ;;  %v9805_v35 = vld [vmem:[%s11631_s1 + $0x6c] ss:$16 sps:$4 sm:$0xff]  }
 0x212   :  { %v1227_v42 = vpop.f32.mrf.mxu1  ;;  %v944_v3 = vmul.f32 %v8665_v43, %v62_v33  ;;  %8666 = vpow2.f32 %v7341_v40  ;;  %v7342_v38 = vmul.f32 -1.442695, %v1231_v41  ;;  %v9793_v33 = vld [vmem:[%s11631_s1 + $0x88] ss:$16 sps:$4 sm:$0xff]   ;;  %v9812_v37 = vld [vmem:[%s11631_s1 + $0x60] ss:$16 sps:$4 sm:$0xff]  }
 0x213   :  { %v1187_v45 = vpop.f32.mrf.mxu0  ;;  %v7343_v51 = vmul.f32 -1.442695, %v1233_v49  ;;  %v9817_v40 = vld [vmem:[%s11631_s1 + $0x68] ss:$16 sps:$4 sm:$0xff]   ;;  %v9824_v41 = vld [vmem:[%s11631_s1 + $0x44] ss:$16 sps:$4 sm:$0xff]  }
 0x214   :  { %v1228_v46 = vpop.f32.mrf.mxu1  ;;  %v9649_v47 = vadd.f32 %v945_v36, %v944_v3  ;;  %8668 = vpow2.f32 %v7342_v38  ;;  %v9829_v43 = vld [vmem:[%s11631_s1 + $0x4c] ss:$16 sps:$4 sm:$0xff]   ;;  %v9841_v44 = vld [vmem:[%s11631_s1 + $0x48] ss:$16 sps:$4 sm:$0xff]   ;;  %v9848_v42 = vld [vmem:[%s11631_s1 + $0x24] ss:$16 sps:$4 sm:$0xff]  }
 0x215   :  { %8670 = vrcp.f32 %v941_v32  ;;  %v9836_v32 = vld [vmem:[%s11631_s1 + $0x40] ss:$16 sps:$4 sm:$0xff]   ;;  %v9853_v36 = vld [vmem:[%s11631_s1 + $0x2c] ss:$16 sps:$4 sm:$0xff]   ;;  %v9865_v38 = vld [vmem:[%s11631_s1 + $0x28] ss:$16 sps:$4 sm:$0xff]  }
 0x216   :  { %8672 = vtanh.f32 %v9649_v47  ;;  %v9860_v3 = vld [vmem:[%s11631_s1 + $0x20] ss:$16 sps:$4 sm:$0xff]   ;;  %v9872_v45 = vld [vmem:[%s11631_s1 + $0x4] ss:$16 sps:$4 sm:$0xff]   ;;  %v9877_v46 = vld [vmem:[%s11631_s1 + $0xc] ss:$16 sps:$4 sm:$0xff]  }
 0x217   :  { %8674 = vpow2.f32 %v7343_v51  ;;  %v9884_v48 = vld [vmem:[%s11631_s1] ss:$16 sps:$4 sm:$0xff]   ;;  %v9889_v49 = vld [vmem:[%s11631_s1 + $0x8] ss:$16 sps:$4 sm:$0xff]   ;;  %v9901_v51 = vld [vmem:[#allocation6 + $0xec] ss:$16 sps:$4 sm:$0xff]  }
 0x21f   :  { %v8667_v52 = vpop.eup %8666 }
 0x220   :  { %v1240_v54 = vadd.f32 1.0, %v8667_v52  ;;  %v9903_v52 = vld [vmem:[#allocation6 + $0xe0] ss:$16 sps:$4 sm:$0xff]  }
 0x221   :  { %v8669_v55 = vpop.eup %8668 }
 0x222   :  { %v8671_v56 = vpop.eup %8670  ;;  %8676 = vrcp.f32 %v1240_v54  ;;  %v1241_v57 = vadd.f32 1.0, %v8669_v55  ;;  %v9911_v54 = vld [vmem:[#allocation6 + $0xc4] ss:$16 sps:$4 sm:$0xff]   ;;  %v9913_v55 = vld [vmem:[#allocation6 + $0xcc] ss:$16 sps:$4 sm:$0xff]  }
 0x223   :  { %v8673_v58 = vpop.eup %8672  ;;  %8678 = vtanh.f32 %v1232_v53  ;;  %v9905_v53 = vld [vmem:[#allocation6 + $0xe8] ss:$16 sps:$4 sm:$0xff]  }
 0x224   :  { %8680 = vrcp.f32 %v1241_v57  ;;  %v948_v59 = vmul.f32 %v8673_v58, %v8671_v56  ;;  %v8675_v61 = vpop.eup %8674  ;;  %v9915_v56 = vld [vmem:[#allocation6 + $0xc0] ss:$16 sps:$4 sm:$0xff]   ;;  %v9917_v57 = vld [vmem:[#allocation6 + $0xc8] ss:$16 sps:$4 sm:$0xff]   ;;  %v9923_v58 = vld [vmem:[#allocation6 + $0xa4] ss:$16 sps:$4 sm:$0xff]  }
 0x225   :  { %v1250_v63 = vadd.f32 1.0, %v8675_v61  ;;  %v9929_v61 = vld [vmem:[#allocation6 + $0xac] ss:$16 sps:$4 sm:$0xff]  }
 0x226   :  { %v949_v60 = vpack.c.bf16 %v948_v59, %v948_v59  ;;  %v9925_v59 = vld [vmem:[#allocation6 + $0xa0] ss:$16 sps:$4 sm:$0xff]  }
 0x227   :  { %8682 = vrcp.f32 %v1250_v63  ;;  %v9941_v63 = vld [vmem:[#allocation6 + $0x88] ss:$16 sps:$4 sm:$0xff]  }
 0x228   :  { %950 = vst [vmem:[%s11638_s8] sm:$0xf] %v949_v60  ;;  %1516 = vmatmul.mubr.bf16.vlgmr.msra.gmra.mxu0 %v949_v60  ;;  %1557 = vmatmul.mubr.bf16.vlgmr.msra.gmra.mxu1 %v949_v60  ;;  %v9927_v60 = vld [vmem:[#allocation6 + $0xa8] ss:$16 sps:$4 sm:$0xff]   ;;  %11792 = vst [vmem:[#allocation27_spill] sm:$0xff] %v9941_v63 }
 0x229   :  { %1726 = vmatpush1.bf16.msra.mxu0 %v9306_v8  ;;  %1767 = vmatpush1.bf16.msra.mxu1 %v9311_v9 }
 0x22a   :  { %1727 = vmatprep.subr.bf16.mxu0 %v9320_v10  ;;  %1768 = vmatprep.subr.bf16.mxu1 %v9325_v11 }
 0x22b   :  { %1757 = vmatprep.mubr.bf16.mxu0 %v11776_v2  ;;  %1798 = vmatprep.mubr.bf16.mxu1 %v11776_v2 }
 0x22d   :  { %1728 = vmatpush1.bf16.msra.mxu0 %v9331_v12  ;;  %1769 = vmatpush1.bf16.msra.mxu1 %v9336_v13  ;;  %v11777_v13 = vld [vmem:[#allocation20_spill] sm:$0xff] }
 0x22e   :  { %1729 = vmatprep.subr.bf16.mxu0 %v9345_v14  ;;  %1770 = vmatprep.subr.bf16.mxu1 %v9350_v15  ;;  %v11778_v14 = vld [vmem:[#allocation19_spill] sm:$0xff]  ;;  %v11779_v15 = vld [vmem:[#allocation21_spill] sm:$0xff]  ;;  %11784 = vst [vmem:[#allocation20_spill] sm:$0xff] %v9917_v57 }
 0x22f   :  { %v8677_v8 = vpop.eup %8676  ;;  %11785 = vst [vmem:[#allocation19_spill] sm:$0xff] %v9923_v58  ;;  %11786 = vst [vmem:[#allocation21_spill] sm:$0xff] %v9925_v59 }
 0x230   :  { %v8679_v62 = vpop.eup %8678 }
 0x231   :  { %v8681_v9 = vpop.eup %8680  ;;  %1730 = vmatpush1.bf16.msra.mxu0 %v9355_v16  ;;  %1771 = vmatpush1.bf16.msra.mxu1 %v9360_v17  ;;  %v1254_v10 = vmul.f32 %v8679_v62, %v8677_v8  ;;  %v11780_v17 = vld [vmem:[#allocation22_spill] sm:$0xff]  ;;  %v9935_v8 = vld [vmem:[#allocation6 + $0x84] ss:$16 sps:$4 sm:$0xff]  }
 0x232   :  { %v1253_v11 = vmul.f32 %v8681_v9, %v9507_v39  ;;  %1731 = vmatprep.subr.bf16.mxu0 %v9369_v18  ;;  %1772 = vmatprep.subr.bf16.mxu1 %v9374_v19  ;;  %v11781_v18 = vld [vmem:[#allocation23_spill] sm:$0xff]  ;;  %v9743_v39 = vld [vmem:[%s11631_s1 + $0xc8] ss:$16 sps:$4 sm:$0xff]   ;;  %11787 = vst [vmem:[#allocation22_spill] sm:$0xff] %v9927_v60  ;;  %v9937_v62 = vld [vmem:[#allocation6 + $0x8c] ss:$16 sps:$4 sm:$0xff]  }
 0x233   :  { %v9698_v19 = vld [vmem:[%s11631_s1 + $0xe4] ss:$16 sps:$4 sm:$0xff]   ;;  %11788 = vst [vmem:[#allocation23_spill] sm:$0xff] %v9929_v61  ;;  %v9939_v9 = vld [vmem:[#allocation6 + $0x80] ss:$16 sps:$4 sm:$0xff]  }
 0x234   :  { %v9676_v12 = vadd.f32 %v1254_v10, %v1253_v11  ;;  %v8683_v16 = vpop.eup %8682  ;;  %11791 = vst [vmem:[#allocation26_spill] sm:$0xff] %v9939_v9  ;;  %v9947_v10 = vld [vmem:[#allocation6 + $0x64] ss:$16 sps:$4 sm:$0xff]   ;;  %v9949_v11 = vld [vmem:[#allocation6 + $0x6c] ss:$16 sps:$4 sm:$0xff]  }
 0x235   :  { %1732 = vmatpush1.bf16.msra.mxu0 %v9379_v20  ;;  %1773 = vmatpush1.bf16.msra.mxu1 %v9384_v21  ;;  %v9703_v20 = vld [vmem:[%s11631_s1 + $0xec] ss:$16 sps:$4 sm:$0xff]   ;;  %11793 = vst [vmem:[#allocation28_spill] sm:$0xff] %v9947_v10  ;;  %11794 = vst [vmem:[#allocation29_spill] sm:$0xff] %v9949_v11 }
 0x236   :  { %1733 = vmatprep.subr.bf16.mxu0 %v9393_v22  ;;  %1774 = vmatprep.subr.bf16.mxu1 %v9398_v23  ;;  %8684 = vtanh.f32 %v9676_v12  ;;  %v11782_v23 = vld [vmem:[#allocation24_spill] sm:$0xff] }
 0x237   :  { %11789 = vst [vmem:[#allocation24_spill] sm:$0xff] %v9935_v8 }
 0x239   :  { %1734 = vmatpush1.bf16.msra.mxu0 %v9403_v24  ;;  %1775 = vmatpush1.bf16.msra.mxu1 %v9408_v25  ;;  %v11783_v24 = vld [vmem:[#allocation25_spill] sm:$0xff] }
 0x23a   :  { %1735 = vmatprep.subr.bf16.mxu0 %v9415_v26  ;;  %1776 = vmatprep.subr.bf16.mxu1 %v9420_v27  ;;  %v9710_v25 = vld [vmem:[%s11631_s1 + $0xe0] ss:$16 sps:$4 sm:$0xff]   ;;  %v9715_v26 = vld [vmem:[%s11631_s1 + $0xe8] ss:$16 sps:$4 sm:$0xff]   ;;  %11790 = vst [vmem:[#allocation25_spill] sm:$0xff] %v9937_v62 }
 0x23d   :  { %1736 = vmatpush1.bf16.msra.mxu0 %v9426_v28  ;;  %1777 = vmatpush1.bf16.msra.mxu1 %v9433_v29  ;;  %v9724_v28 = vld [vmem:[%s11631_s1 + $0xc4] ss:$16 sps:$4 sm:$0xff]   ;;  %v9729_v29 = vld [vmem:[%s11631_s1 + $0xcc] ss:$16 sps:$4 sm:$0xff]  }
 0x23e   :  { %1737 = vmatprep.subr.bf16.mxu0 %v9438_v30  ;;  %1778 = vmatprep.subr.bf16.mxu1 %v11777_v13  ;;  %v9738_v30 = vld [vmem:[%s11631_s1 + $0xc0] ss:$16 sps:$4 sm:$0xff]  }
 0x23f   :  { %v9951_v13 = vld [vmem:[#allocation6 + $0x60] ss:$16 sps:$4 sm:$0xff]  }
 0x240   :  { %11795 = vst [vmem:[#allocation30_spill] sm:$0xff] %v9951_v13 }
 0x241   :  { %1738 = vmatpush1.bf16.msra.mxu0 %v11778_v14  ;;  %1779 = vmatpush1.bf16.msra.mxu1 %v11779_v15  ;;  %v9953_v14 = vld [vmem:[#allocation6 + $0x68] ss:$16 sps:$4 sm:$0xff]   ;;  %v9959_v15 = vld [vmem:[#allocation6 + $0x44] ss:$16 sps:$4 sm:$0xff]  }
 0x242   :  { %1739 = vmatprep.subr.bf16.mxu0 %v11780_v17  ;;  %1780 = vmatprep.subr.bf16.mxu1 %v11781_v18  ;;  %11796 = vst [vmem:[#allocation31_spill] sm:$0xff] %v9953_v14  ;;  %11797 = vst [vmem:[#allocation32_spill] sm:$0xff] %v9959_v15  ;;  %v9963_v17 = vld [vmem:[#allocation6 + $0x40] ss:$16 sps:$4 sm:$0xff]   ;;  %v9965_v18 = vld [vmem:[#allocation6 + $0x48] ss:$16 sps:$4 sm:$0xff]  }
 0x243   :  { %v8685_v21 = vpop.eup %8684  ;;  %11799 = vst [vmem:[#allocation34_spill] sm:$0xff] %v9963_v17  ;;  %11800 = vst [vmem:[#allocation35_spill] sm:$0xff] %v9965_v18 }
 0x244   :  { %v1257_v22 = vmul.f32 %v8685_v21, %v8683_v16  ;;  %v9961_v16 = vld [vmem:[#allocation6 + $0x4c] ss:$16 sps:$4 sm:$0xff]   ;;  %v9971_v21 = vld [vmem:[#allocation6 + $0x24] ss:$16 sps:$4 sm:$0xff]  }
 0x245   :  { %1740 = vmatpush1.bf16.msra.mxu0 %v11782_v23  ;;  %1781 = vmatpush1.bf16.msra.mxu1 %v11783_v24  ;;  %11798 = vst [vmem:[#allocation33_spill] sm:$0xff] %v9961_v16  ;;  %11801 = vst [vmem:[#allocation36_spill] sm:$0xff] %v9971_v21  ;;  %v9975_v23 = vld [vmem:[#allocation6 + $0x20] ss:$16 sps:$4 sm:$0xff]   ;;  %v9977_v24 = vld [vmem:[#allocation6 + $0x28] ss:$16 sps:$4 sm:$0xff]  }
 0x246   :  { %v9717_v27 = vpack.c.bf16 %v1257_v22, %v1257_v22  ;;  %2031 = vmatprep.subr.bf16.mxu0 %v9698_v19  ;;  %2072 = vmatprep.subr.bf16.mxu1 %v9703_v20  ;;  %v9973_v22 = vld [vmem:[#allocation6 + $0x2c] ss:$16 sps:$4 sm:$0xff]   ;;  %11803 = vst [vmem:[#allocation38_spill] sm:$0xff] %v9975_v23  ;;  %11804 = vst [vmem:[#allocation39_spill] sm:$0xff] %v9977_v24 }
 0x247   :  { %11802 = vst [vmem:[#allocation37_spill] sm:$0xff] %v9973_v22 }
 0x248   :  { %1758 = vmatmul.mubr.bf16.vlgmr.msra.gmra.mxu0 %v9717_v27  ;;  %1799 = vmatmul.mubr.bf16.vlgmr.msra.gmra.mxu1 %v9717_v27 }
 0x249   :  { %2032 = vmatpush1.bf16.msra.mxu0 %v9710_v25  ;;  %2073 = vmatpush1.bf16.msra.mxu1 %v9715_v26 }
 0x24a   :  { %2033 = vmatprep.subr.bf16.mxu0 %v9724_v28  ;;  %2074 = vmatprep.subr.bf16.mxu1 %v9729_v29 }
 0x24b   :  { %2063 = vmatprep.mubr.bf16.mxu0 %v11776_v2  ;;  %2104 = vmatprep.mubr.bf16.mxu1 %v11776_v2 }
 0x24d   :  { %2034 = vmatpush1.bf16.msra.mxu0 %v9738_v30  ;;  %2075 = vmatpush1.bf16.msra.mxu1 %v9743_v39 }
 0x24e   :  { %2035 = vmatprep.subr.bf16.mxu0 %v9750_v1  ;;  %2076 = vmatprep.subr.bf16.mxu1 %v9755_v4 }
 0x251   :  { %2036 = vmatpush1.bf16.msra.mxu0 %v9764_v5  ;;  %2077 = vmatpush1.bf16.msra.mxu1 %v9769_v6 }
 0x252   :  { %2037 = vmatprep.subr.bf16.mxu0 %v9776_v7  ;;  %2078 = vmatprep.subr.bf16.mxu1 %v9781_v0 }
 0x255   :  { %2038 = vmatpush1.bf16.msra.mxu0 %v9788_v31  ;;  %2079 = vmatpush1.bf16.msra.mxu1 %v9793_v33 }
 0x256   :  { %2039 = vmatprep.subr.bf16.mxu0 %v9800_v34  ;;  %2080 = vmatprep.subr.bf16.mxu1 %v9805_v35 }
 0x259   :  { %2040 = vmatpush1.bf16.msra.mxu0 %v9812_v37  ;;  %2081 = vmatpush1.bf16.msra.mxu1 %v9817_v40 }
 0x25a   :  { %2041 = vmatprep.subr.bf16.mxu0 %v9824_v41  ;;  %2082 = vmatprep.subr.bf16.mxu1 %v9829_v43 }
 0x25d   :  { %2042 = vmatpush1.bf16.msra.mxu0 %v9836_v32  ;;  %2083 = vmatpush1.bf16.msra.mxu1 %v9841_v44 }
 0x25e   :  { %2043 = vmatprep.subr.bf16.mxu0 %v9848_v42  ;;  %2084 = vmatprep.subr.bf16.mxu1 %v9853_v36 }
 0x261   :  { %2044 = vmatpush1.bf16.msra.mxu0 %v9860_v3  ;;  %2085 = vmatpush1.bf16.msra.mxu1 %v9865_v38 }
 0x262   :  { %2045 = vmatprep.subr.bf16.mxu0 %v9872_v45  ;;  %2086 = vmatprep.subr.bf16.mxu1 %v9877_v46 }
 0x265   :  { %2046 = vmatpush1.bf16.msra.mxu0 %v9884_v48  ;;  %2087 = vmatpush1.bf16.msra.mxu1 %v9889_v49 }
 0x266   :  { %2366 = vmatprep.subr.bf16.mxu0 %v9899_v50  ;;  %2407 = vmatprep.subr.bf16.mxu1 %v9901_v51 }
 0x268   :  { %2064 = vmatmul.mubr.bf16.vlgmr.msra.gmra.mxu0 %v9717_v27  ;;  %2105 = vmatmul.mubr.bf16.vlgmr.msra.gmra.mxu1 %v9717_v27  ;;  %v9983_v27 = vld [vmem:[#allocation6 + $0x4] ss:$16 sps:$4 sm:$0xff]  }
 0x269   :  { %2398 = vmatprep.mubr.bf16.mxu0 %v11776_v2  ;;  %2439 = vmatprep.mubr.bf16.mxu1 %v11776_v2  ;;  %11805 = vst [vmem:[#allocation40_spill] sm:$0xff] %v9983_v27 }
 0x26a   :  { %2367 = vmatpush1.bf16.msra.mxu0 %v9903_v52  ;;  %2408 = vmatpush1.bf16.msra.mxu1 %v9905_v53 }
 0x26b   :  { %2368 = vmatprep.subr.bf16.mxu0 %v9911_v54  ;;  %2409 = vmatprep.subr.bf16.mxu1 %v9913_v55 }
 0x26e   :  { %2369 = vmatpush1.bf16.msra.mxu0 %v9915_v56  ;;  %2410 = vmatpush1.bf16.msra.mxu1 %v9917_v57 }
 0x26f   :  { %2370 = vmatprep.subr.bf16.mxu0 %v9923_v58  ;;  %2411 = vmatprep.subr.bf16.mxu1 %v9929_v61 }
 0x272   :  { %2371 = vmatpush1.bf16.msra.mxu0 %v9925_v59  ;;  %2412 = vmatpush1.bf16.msra.mxu1 %v9927_v60 }
 0x273   :  { %2372 = vmatprep.subr.bf16.mxu0 %v9935_v8  ;;  %2413 = vmatprep.subr.bf16.mxu1 %v9937_v62 }
 0x276   :  { %2373 = vmatpush1.bf16.msra.mxu0 %v9939_v9  ;;  %2414 = vmatpush1.bf16.msra.mxu1 %v9941_v63 }
 0x277   :  { %2374 = vmatprep.subr.bf16.mxu0 %v9947_v10  ;;  %2415 = vmatprep.subr.bf16.mxu1 %v9949_v11 }
 0x27a   :  { %2375 = vmatpush1.bf16.msra.mxu0 %v9951_v13  ;;  %2416 = vmatpush1.bf16.msra.mxu1 %v9953_v14 }
 0x27b   :  { %2376 = vmatprep.subr.bf16.mxu0 %v9959_v15  ;;  %2417 = vmatprep.subr.bf16.mxu1 %v9961_v16  ;;  %v9989_v16 = vld [vmem:[#allocation6 + $0x8] ss:$16 sps:$4 sm:$0xff]  }
 0x27c   :  { %11808 = vst [vmem:[#allocation43_spill] sm:$0xff] %v9989_v16 }
 0x27e   :  { %2377 = vmatpush1.bf16.msra.mxu0 %v9963_v17  ;;  %2418 = vmatpush1.bf16.msra.mxu1 %v9965_v18  ;;  %v9985_v17 = vld [vmem:[#allocation6 + $0xc] ss:$16 sps:$4 sm:$0xff]   ;;  %v9987_v18 = vld [vmem:[#allocation6] ss:$16 sps:$4 sm:$0xff]  }
 0x27f   :  { %2378 = vmatprep.subr.bf16.mxu0 %v9971_v21  ;;  %2419 = vmatprep.subr.bf16.mxu1 %v9973_v22  ;;  %11806 = vst [vmem:[#allocation41_spill] sm:$0xff] %v9985_v17  ;;  %11807 = vst [vmem:[#allocation42_spill] sm:$0xff] %v9987_v18 }
 0x282   :  { %2379 = vmatpush1.bf16.msra.mxu0 %v9975_v23  ;;  %2420 = vmatpush1.bf16.msra.mxu1 %v9977_v24  ;;  %v9998_v24 = vld [vmem:[%s11632_s2 + $0xe4] ss:$16 sps:$4 sm:$0xff]   ;;  %v10003_v23 = vld [vmem:[%s11632_s2 + $0xec] ss:$16 sps:$4 sm:$0xff]  }
 0x283   :  { %2380 = vmatprep.subr.bf16.mxu0 %v9983_v27  ;;  %2421 = vmatprep.subr.bf16.mxu1 %v9985_v17  ;;  %11809 = vst [vmem:[#allocation44_spill] sm:$0xff] %v9998_v24  ;;  %11810 = vst [vmem:[#allocation45_spill] sm:$0xff] %v10003_v23 }
 0x286   :  { %2381 = vmatpush1.bf16.msra.mxu0 %v9987_v18  ;;  %2422 = vmatpush1.bf16.msra.mxu1 %v9989_v16 }
 0x287   :  { %2608 = vmatprep.subr.bf16.mxu0 %v9998_v24  ;;  %2649 = vmatprep.subr.bf16.mxu1 %v10003_v23 }
 0x2e8   :  { %v1517_v27 = vpop.f32.mrf.mxu0  ;;  %v1558_v17 = vpop.f32.mrf.mxu1 }
 0x2ea   :  { %v1519_v22 = vpop.f32.mrf.mxu0  ;;  %v1560_v18 = vpop.f32.mrf.mxu1 }
 0x2ec   :  { %v1521_v21 = vpop.f32.mrf.mxu0  ;;  %v1562_v16 = vpop.f32.mrf.mxu1 }
 0x2ee   :  { %v1522_v15 = vpop.f32.mrf.mxu0  ;;  %v1563_v14 = vpop.f32.mrf.mxu1 }
 0x308   :  { %v1759_v13 = vpop.f32.mrf.mxu0  ;;  %v1800_v11 = vpop.f32.mrf.mxu1 }
 0x309   :  { %v1760_v10 = vadd.f32 %v1759_v13, %v1517_v27  ;;  %v1801_v16 = vadd.f32 %v1800_v11, %v1558_v17 }
 0x30a   :  { %v1761_v63 = vpop.f32.mrf.mxu0  ;;  %v1802_v9 = vpop.f32.mrf.mxu1 }
 0x30b   :  { %v7408_v62 = vmul.f32 -1.442695, %v1760_v10  ;;  %v1762_v8 = vadd.f32 %v1761_v63, %v1519_v22  ;;  %v1803_v58 = vadd.f32 %v1802_v9, %v1560_v18 }
 0x30c   :  { %v1763_v60 = vpop.f32.mrf.mxu0  ;;  %v1804_v59 = vpop.f32.mrf.mxu1 }
 0x30d   :  { %8686 = vpow2.f32 %v7408_v62  ;;  %v7409_v24 = vmul.f32 -1.442695, %v1762_v8  ;;  %v7410_v57 = vmul.f32 -1.442695, %v1803_v58  ;;  %v7412_v59 = vld [vmem:[%s11630_s0 + $0x40] sm:$0xff] }
 0x30e   :  { %v1764_v23 = vpop.f32.mrf.mxu0  ;;  %v1805_v61 = vpop.f32.mrf.mxu1 }
 0x30f   :  { %8688 = vpow2.f32 %v7409_v24  ;;  %v7413_v61 = vld [vmem:[%s11630_s0 + $0x48] sm:$0xff] }
 0x310   :  { %8690 = vpow2.f32 %v7410_v57 }
 0x31a   :  { %v8687_v21 = vpop.eup %8686 }
 0x31b   :  { %v1813_v15 = vadd.f32 1.0, %v8687_v21 }
 0x31c   :  { %v8689_v14 = vpop.eup %8688 }
 0x31d   :  { %8692 = vrcp.f32 %v1813_v15  ;;  %v1814_v13 = vadd.f32 1.0, %v8689_v14  ;;  %v8691_v58 = vpop.eup %8690 }
 0x31e   :  { %8694 = vtanh.f32 %v1801_v16  ;;  %v1823_v22 = vadd.f32 1.0, %v8691_v58 }
 0x31f   :  { %8696 = vrcp.f32 %v1814_v13 }
 0x328   :  { %v2065_v60 = vpop.f32.mrf.mxu0  ;;  %v2106_v8 = vpop.f32.mrf.mxu1 }
 0x329   :  { %v2113_v62 = vadd.f32 %v7412_v59, %v2065_v60  ;;  %v7415_v59 = vld [vmem:[%s11630_s0 + $0x58] sm:$0xff] }
 0x32a   :  { %v8693_v9 = vpop.eup %8692  ;;  %v2067_v63 = vpop.f32.mrf.mxu0 }
 0x32b   :  { %v2108_v10 = vpop.f32.mrf.mxu1  ;;  %v8695_v57 = vpop.eup %8694  ;;  %v7448_v11 = vmul.f32 -1.442695, %v2113_v62  ;;  %v2114_v17 = vadd.f32 %v7413_v61, %v2067_v63  ;;  %v7414_v61 = vld [vmem:[%s11630_s0 + $0x50] sm:$0xff] }
 0x32c   :  { %v8697_v18 = vpop.eup %8696  ;;  %v2069_v23 = vpop.f32.mrf.mxu0  ;;  %v1827_v27 = vmul.f32 %v8695_v57, %v8693_v9  ;;  %v2116_v60 = vadd.f32 %v7415_v59, %v2108_v10  ;;  %v2115_v62 = vadd.f32 %v7414_v61, %v2106_v8  ;;  %v10026_v10 = vld [vmem:[%s11632_s2 + $0xe0] ss:$16 sps:$4 sm:$0xff]   ;;  %v10082_v59 = vld [vmem:[%s11632_s2 + $0xa8] ss:$16 sps:$4 sm:$0xff]   ;;  %v10089_v61 = vld [vmem:[%s11632_s2 + $0x84] ss:$16 sps:$4 sm:$0xff]  }
 0x32d   :  { %v2110_v24 = vpop.f32.mrf.mxu1  ;;  %v1826_v21 = vmul.f32 %v8697_v18, %v9649_v47  ;;  %8698 = vpow2.f32 %v7448_v11  ;;  %v7449_v16 = vmul.f32 -1.442695, %v2114_v17  ;;  %v10036_v23 = vld [vmem:[%s11632_s2 + $0xc4] ss:$16 sps:$4 sm:$0xff]   ;;  %11811 = vst [vmem:[#allocation46_spill] sm:$0xff] %v10082_v59 }
 0x32e   :  { %v2070_v15 = vpop.f32.mrf.mxu0  ;;  %v7450_v47 = vmul.f32 -1.442695, %v2116_v60  ;;  %v10041_v24 = vld [vmem:[%s11632_s2 + $0xcc] ss:$16 sps:$4 sm:$0xff]  }
 0x32f   :  { %v2111_v14 = vpop.f32.mrf.mxu1  ;;  %v10014_v13 = vadd.f32 %v1827_v27, %v1826_v21  ;;  %8700 = vpow2.f32 %v7449_v16  ;;  %v10051_v27 = vld [vmem:[%s11632_s2 + $0xc0] ss:$16 sps:$4 sm:$0xff]   ;;  %v10056_v21 = vld [vmem:[%s11632_s2 + $0xc8] ss:$16 sps:$4 sm:$0xff]   ;;  %v10063_v16 = vld [vmem:[%s11632_s2 + $0xa4] ss:$16 sps:$4 sm:$0xff]  }
 0x330   :  { %8702 = vrcp.f32 %v1823_v22  ;;  %v10031_v22 = vld [vmem:[%s11632_s2 + $0xe8] ss:$16 sps:$4 sm:$0xff]   ;;  %v10068_v15 = vld [vmem:[%s11632_s2 + $0xac] ss:$16 sps:$4 sm:$0xff]   ;;  %v10077_v14 = vld [vmem:[%s11632_s2 + $0xa0] ss:$16 sps:$4 sm:$0xff]  }
 0x331   :  { %8704 = vtanh.f32 %v10014_v13 }
 0x332   :  { %8706 = vpow2.f32 %v7450_v47  ;;  %v10094_v47 = vld [vmem:[%s11632_s2 + $0x8c] ss:$16 sps:$4 sm:$0xff]  }
 0x33a   :  { %v8699_v58 = vpop.eup %8698 }
 0x33b   :  { %v2123_v9 = vadd.f32 1.0, %v8699_v58 }
 0x33c   :  { %v8701_v63 = vpop.eup %8700 }
 0x33d   :  { %v8703_v57 = vpop.eup %8702  ;;  %8708 = vrcp.f32 %v2123_v9  ;;  %v2124_v11 = vadd.f32 1.0, %v8701_v63 }
 0x33e   :  { %v8705_v17 = vpop.eup %8704  ;;  %8710 = vtanh.f32 %v2115_v62 }
 0x33f   :  { %8712 = vrcp.f32 %v2124_v11  ;;  %v1830_v18 = vmul.f32 %v8705_v17, %v8703_v57  ;;  %v8707_v60 = vpop.eup %8706  ;;  %v10101_v57 = vld [vmem:[%s11632_s2 + $0x80] ss:$16 sps:$4 sm:$0xff]   ;;  %v10106_v11 = vld [vmem:[%s11632_s2 + $0x88] ss:$16 sps:$4 sm:$0xff]  }
 0x340   :  { %v2133_v63 = vadd.f32 1.0, %v8707_v60  ;;  %v10119_v60 = vld [vmem:[%s11632_s2 + $0x6c] ss:$16 sps:$4 sm:$0xff]  }
 0x341   :  { %v1831_v8 = vpack.c.bf16 %v1830_v18, %v1830_v18  ;;  %11813 = vst [vmem:[#allocation48_spill] sm:$0xff] %v10119_v60 }
 0x342   :  { %8714 = vrcp.f32 %v2133_v63  ;;  %v10153_v63 = vld [vmem:[%s11632_s2 + $0x40] ss:$16 sps:$4 sm:$0xff]  }
 0x343   :  { %7411 = vst [vmem:[%s11638_s8 + $0x4] sm:$0xf] %v1831_v8  ;;  %2399 = vmatmul.mubr.bf16.vlgmr.msra.gmra.mxu0 %v1831_v8  ;;  %2440 = vmatmul.mubr.bf16.vlgmr.msra.gmra.mxu1 %v1831_v8  ;;  %v10114_v8 = vld [vmem:[%s11632_s2 + $0x64] ss:$16 sps:$4 sm:$0xff]   ;;  %11818 = vst [vmem:[#allocation53_spill] sm:$0xff] %v10153_v63 }
 0x344   :  { %2609 = vmatpush1.bf16.msra.mxu0 %v10026_v10  ;;  %2650 = vmatpush1.bf16.msra.mxu1 %v10031_v22  ;;  %11812 = vst [vmem:[#allocation47_spill] sm:$0xff] %v10114_v8 }
 0x345   :  { %2610 = vmatprep.subr.bf16.mxu0 %v10036_v23  ;;  %2651 = vmatprep.subr.bf16.mxu1 %v10041_v24 }
 0x346   :  { %2640 = vmatprep.mubr.bf16.mxu0 %v11776_v2  ;;  %2681 = vmatprep.mubr.bf16.mxu1 %v11776_v2 }
 0x348   :  { %2611 = vmatpush1.bf16.msra.mxu0 %v10051_v27  ;;  %2652 = vmatpush1.bf16.msra.mxu1 %v10056_v21 }
 0x349   :  { %2612 = vmatprep.subr.bf16.mxu0 %v10063_v16  ;;  %2653 = vmatprep.subr.bf16.mxu1 %v10068_v15 }
 0x34a   :  { %v8709_v58 = vpop.eup %8708 }
 0x34b   :  { %v8711_v62 = vpop.eup %8710 }
 0x34c   :  { %v8713_v9 = vpop.eup %8712  ;;  %2613 = vmatpush1.bf16.msra.mxu0 %v10077_v14  ;;  %2654 = vmatpush1.bf16.msra.mxu1 %v10082_v59  ;;  %v2137_v17 = vmul.f32 %v8711_v62, %v8709_v58  ;;  %v10133_v58 = vld [vmem:[%s11632_s2 + $0x68] ss:$16 sps:$4 sm:$0xff]   ;;  %v10140_v62 = vld [vmem:[%s11632_s2 + $0x44] ss:$16 sps:$4 sm:$0xff]  }
 0x34d   :  { %v2136_v18 = vmul.f32 %v8713_v9, %v9676_v12  ;;  %2614 = vmatprep.subr.bf16.mxu0 %v10089_v61  ;;  %2655 = vmatprep.subr.bf16.mxu1 %v10094_v47  ;;  %v10128_v12 = vld [vmem:[%s11632_s2 + $0x60] ss:$16 sps:$4 sm:$0xff]   ;;  %11815 = vst [vmem:[#allocation50_spill] sm:$0xff] %v10133_v58  ;;  %11816 = vst [vmem:[#allocation51_spill] sm:$0xff] %v10140_v62  ;;  %v10145_v9 = vld [vmem:[%s11632_s2 + $0x4c] ss:$16 sps:$4 sm:$0xff]  }
 0x34e   :  { %11814 = vst [vmem:[#allocation49_spill] sm:$0xff] %v10128_v12  ;;  %11817 = vst [vmem:[#allocation52_spill] sm:$0xff] %v10145_v9 }
 0x34f   :  { %v10121_v59 = vadd.f32 %v2137_v17, %v2136_v18  ;;  %v10158_v17 = vld [vmem:[%s11632_s2 + $0x48] ss:$16 sps:$4 sm:$0xff]   ;;  %v10165_v18 = vld [vmem:[%s11632_s2 + $0x24] ss:$16 sps:$4 sm:$0xff]  }
 0x350   :  { %2615 = vmatpush1.bf16.msra.mxu0 %v10101_v57  ;;  %2656 = vmatpush1.bf16.msra.mxu1 %v10106_v11  ;;  %11819 = vst [vmem:[#allocation54_spill] sm:$0xff] %v10158_v17  ;;  %11820 = vst [vmem:[#allocation55_spill] sm:$0xff] %v10165_v18 }
 0x351   :  { %2616 = vmatprep.subr.bf16.mxu0 %v10114_v8  ;;  %2657 = vmatprep.subr.bf16.mxu1 %v10119_v60  ;;  %8716 = vtanh.f32 %v10121_v59 }
 0x354   :  { %2617 = vmatpush1.bf16.msra.mxu0 %v10128_v12  ;;  %2658 = vmatpush1.bf16.msra.mxu1 %v10133_v58  ;;  %v10170_v58 = vld [vmem:[%s11632_s2 + $0x2c] ss:$16 sps:$4 sm:$0xff]   ;;  %v8715_v12 = vpop.eup %8714 }
 0x355   :  { %2618 = vmatprep.subr.bf16.mxu0 %v10140_v62  ;;  %2659 = vmatprep.subr.bf16.mxu1 %v10145_v9  ;;  %11821 = vst [vmem:[#allocation56_spill] sm:$0xff] %v10170_v58  ;;  %v10177_v62 = vld [vmem:[%s11632_s2 + $0x20] ss:$16 sps:$4 sm:$0xff]   ;;  %v10182_v9 = vld [vmem:[%s11632_s2 + $0x28] ss:$16 sps:$4 sm:$0xff]  }
 0x356   :  { %11822 = vst [vmem:[#allocation57_spill] sm:$0xff] %v10182_v9 }
 0x358   :  { %2619 = vmatpush1.bf16.msra.mxu0 %v10153_v63  ;;  %2660 = vmatpush1.bf16.msra.mxu1 %v10158_v17  ;;  %v10189_v63 = vld [vmem:[%s11632_s2 + $0x4] ss:$16 sps:$4 sm:$0xff]   ;;  %v10194_v17 = vld [vmem:[%s11632_s2 + $0xc] ss:$16 sps:$4 sm:$0xff]  }
 0x359   :  { %2620 = vmatprep.subr.bf16.mxu0 %v10165_v18  ;;  %2661 = vmatprep.subr.bf16.mxu1 %v10170_v58  ;;  %v10201_v18 = vld [vmem:[%s11632_s2] ss:$16 sps:$4 sm:$0xff]   ;;  %v10206_v58 = vld [vmem:[%s11632_s2 + $0x8] ss:$16 sps:$4 sm:$0xff]  }
 0x35c   :  { %2621 = vmatpush1.bf16.msra.mxu0 %v10177_v62  ;;  %2662 = vmatpush1.bf16.msra.mxu1 %v10182_v9 }
 0x35d   :  { %2622 = vmatprep.subr.bf16.mxu0 %v10189_v63  ;;  %2663 = vmatprep.subr.bf16.mxu1 %v10194_v17 }
 0x35e   :  { %v8717_v60 = vpop.eup %8716 }
 0x35f   :  { %v2140_v8 = vmul.f32 %v8717_v60, %v8715_v12 }
 0x360   :  { %2623 = vmatpush1.bf16.msra.mxu0 %v10201_v18  ;;  %2664 = vmatpush1.bf16.msra.mxu1 %v10206_v58 }
 0x361   :  { %2914 = vmatprep.subr.bf16.mxu0 %v9698_v19  ;;  %2955 = vmatprep.subr.bf16.mxu1 %v9703_v20  ;;  %v2141_v9 = vpack.c.bf16 %v2140_v8, %v2140_v8  ;;  %v11823_v19 = vld [vmem:[#allocation20_spill] sm:$0xff]  ;;  %v11824_v20 = vld [vmem:[#allocation19_spill] sm:$0xff] }
 0x363   :  { %2641 = vmatmul.mubr.bf16.vlgmr.msra.gmra.mxu0 %v2141_v9  ;;  %2682 = vmatmul.mubr.bf16.vlgmr.msra.gmra.mxu1 %v2141_v9 }
 0x364   :  { %2915 = vmatpush1.bf16.msra.mxu0 %v9710_v25  ;;  %2956 = vmatpush1.bf16.msra.mxu1 %v9715_v26  ;;  %v11825_v25 = vld [vmem:[#allocation23_spill] sm:$0xff]  ;;  %v11826_v26 = vld [vmem:[#allocation21_spill] sm:$0xff] }
 0x365   :  { %2916 = vmatprep.subr.bf16.mxu0 %v9724_v28  ;;  %2957 = vmatprep.subr.bf16.mxu1 %v9729_v29  ;;  %v11827_v28 = vld [vmem:[#allocation22_spill] sm:$0xff]  ;;  %v11828_v29 = vld [vmem:[#allocation24_spill] sm:$0xff] }
 0x366   :  { %2946 = vmatprep.mubr.bf16.mxu0 %v11776_v2  ;;  %2987 = vmatprep.mubr.bf16.mxu1 %v11776_v2 }
 0x368   :  { %2917 = vmatpush1.bf16.msra.mxu0 %v9738_v30  ;;  %2958 = vmatpush1.bf16.msra.mxu1 %v9743_v39  ;;  %v11829_v30 = vld [vmem:[#allocation25_spill] sm:$0xff]  ;;  %v11830_v39 = vld [vmem:[#allocation26_spill] sm:$0xff] }
 0x369   :  { %2918 = vmatprep.subr.bf16.mxu0 %v9750_v1  ;;  %2959 = vmatprep.subr.bf16.mxu1 %v9755_v4  ;;  %v11831_v1 = vld [vmem:[#allocation27_spill] sm:$0xff]  ;;  %v11832_v4 = vld [vmem:[#allocation28_spill] sm:$0xff] }
 0x36c   :  { %2919 = vmatpush1.bf16.msra.mxu0 %v9764_v5  ;;  %2960 = vmatpush1.bf16.msra.mxu1 %v9769_v6  ;;  %v11833_v5 = vld [vmem:[#allocation29_spill] sm:$0xff]  ;;  %v11834_v6 = vld [vmem:[#allocation30_spill] sm:$0xff] }
 0x36d   :  { %2920 = vmatprep.subr.bf16.mxu0 %v9776_v7  ;;  %2961 = vmatprep.subr.bf16.mxu1 %v9781_v0  ;;  %v11835_v7 = vld [vmem:[#allocation31_spill] sm:$0xff]  ;;  %v11836_v0 = vld [vmem:[#allocation32_spill] sm:$0xff] }
 0x370   :  { %2921 = vmatpush1.bf16.msra.mxu0 %v9788_v31  ;;  %2962 = vmatpush1.bf16.msra.mxu1 %v9793_v33  ;;  %v11837_v31 = vld [vmem:[#allocation33_spill] sm:$0xff]  ;;  %v11838_v33 = vld [vmem:[#allocation34_spill] sm:$0xff] }
 0x371   :  { %2922 = vmatprep.subr.bf16.mxu0 %v9800_v34  ;;  %2963 = vmatprep.subr.bf16.mxu1 %v9805_v35  ;;  %v11839_v34 = vld [vmem:[#allocation35_spill] sm:$0xff]  ;;  %v11840_v35 = vld [vmem:[#allocation36_spill] sm:$0xff] }
 0x374   :  { %2923 = vmatpush1.bf16.msra.mxu0 %v9812_v37  ;;  %2964 = vmatpush1.bf16.msra.mxu1 %v9817_v40  ;;  %v11841_v37 = vld [vmem:[#allocation37_spill] sm:$0xff]  ;;  %v11842_v40 = vld [vmem:[#allocation38_spill] sm:$0xff] }
 0x375   :  { %2924 = vmatprep.subr.bf16.mxu0 %v9824_v41  ;;  %2965 = vmatprep.subr.bf16.mxu1 %v9829_v43  ;;  %v11843_v41 = vld [vmem:[#allocation39_spill] sm:$0xff]  ;;  %v11844_v43 = vld [vmem:[#allocation40_spill] sm:$0xff] }
 0x378   :  { %2925 = vmatpush1.bf16.msra.mxu0 %v9836_v32  ;;  %2966 = vmatpush1.bf16.msra.mxu1 %v9841_v44  ;;  %v11845_v32 = vld [vmem:[#allocation41_spill] sm:$0xff]  ;;  %v11846_v44 = vld [vmem:[#allocation42_spill] sm:$0xff] }
 0x379   :  { %2926 = vmatprep.subr.bf16.mxu0 %v9848_v42  ;;  %2967 = vmatprep.subr.bf16.mxu1 %v9853_v36  ;;  %v11847_v42 = vld [vmem:[#allocation43_spill] sm:$0xff]  ;;  %v11848_v36 = vld [vmem:[#allocation44_spill] sm:$0xff] }
 0x37c   :  { %2927 = vmatpush1.bf16.msra.mxu0 %v9860_v3  ;;  %2968 = vmatpush1.bf16.msra.mxu1 %v9865_v38  ;;  %v11849_v3 = vld [vmem:[#allocation45_spill] sm:$0xff] }
 0x37d   :  { %2928 = vmatprep.subr.bf16.mxu0 %v9872_v45  ;;  %2969 = vmatprep.subr.bf16.mxu1 %v9877_v46 }
 0x380   :  { %2929 = vmatpush1.bf16.msra.mxu0 %v9884_v48  ;;  %2970 = vmatpush1.bf16.msra.mxu1 %v9889_v49 }
 0x381   :  { %3249 = vmatprep.subr.bf16.mxu0 %v9899_v50  ;;  %3290 = vmatprep.subr.bf16.mxu1 %v9901_v51 }
 0x383   :  { %2947 = vmatmul.mubr.bf16.vlgmr.msra.gmra.mxu0 %v2141_v9  ;;  %2988 = vmatmul.mubr.bf16.vlgmr.msra.gmra.mxu1 %v2141_v9 }
 0x384   :  { %3250 = vmatpush1.bf16.msra.mxu0 %v9903_v52  ;;  %3291 = vmatpush1.bf16.msra.mxu1 %v9905_v53 }
 0x385   :  { %3251 = vmatprep.subr.bf16.mxu0 %v9911_v54  ;;  %3292 = vmatprep.subr.bf16.mxu1 %v9913_v55 }
 0x386   :  { %3281 = vmatprep.mubr.bf16.mxu0 %v11776_v2  ;;  %3322 = vmatprep.mubr.bf16.mxu1 %v11776_v2 }
 0x388   :  { %3252 = vmatpush1.bf16.msra.mxu0 %v9915_v56  ;;  %3293 = vmatpush1.bf16.msra.mxu1 %v11823_v19 }
 0x389   :  { %3253 = vmatprep.subr.bf16.mxu0 %v11824_v20  ;;  %3294 = vmatprep.subr.bf16.mxu1 %v11825_v25 }
 0x38c   :  { %3254 = vmatpush1.bf16.msra.mxu0 %v11826_v26  ;;  %3295 = vmatpush1.bf16.msra.mxu1 %v11827_v28 }
 0x38d   :  { %3255 = vmatprep.subr.bf16.mxu0 %v11828_v29  ;;  %3296 = vmatprep.subr.bf16.mxu1 %v11829_v30 }
 0x390   :  { %3256 = vmatpush1.bf16.msra.mxu0 %v11830_v39  ;;  %3297 = vmatpush1.bf16.msra.mxu1 %v11831_v1 }
 0x391   :  { %3257 = vmatprep.subr.bf16.mxu0 %v11832_v4  ;;  %3298 = vmatprep.subr.bf16.mxu1 %v11833_v5 }
 0x394   :  { %3258 = vmatpush1.bf16.msra.mxu0 %v11834_v6  ;;  %3299 = vmatpush1.bf16.msra.mxu1 %v11835_v7  ;;  %v7519_v6 = vld [vmem:[%s11630_s0 + $0x60] sm:$0xff] }
 0x395   :  { %3259 = vmatprep.subr.bf16.mxu0 %v11836_v0  ;;  %3300 = vmatprep.subr.bf16.mxu1 %v11837_v31  ;;  %v7520_v31 = vld [vmem:[%s11630_s0 + $0x68] sm:$0xff] }
 0x398   :  { %3260 = vmatpush1.bf16.msra.mxu0 %v11838_v33  ;;  %3301 = vmatpush1.bf16.msra.mxu1 %v11839_v34 }
 0x399   :  { %3261 = vmatprep.subr.bf16.mxu0 %v11840_v35  ;;  %3302 = vmatprep.subr.bf16.mxu1 %v11841_v37 }
 0x39c   :  { %3262 = vmatpush1.bf16.msra.mxu0 %v11842_v40  ;;  %3303 = vmatpush1.bf16.msra.mxu1 %v11843_v41 }
 0x39d   :  { %3263 = vmatprep.subr.bf16.mxu0 %v11844_v43  ;;  %3304 = vmatprep.subr.bf16.mxu1 %v11845_v32 }
 0x3a0   :  { %3264 = vmatpush1.bf16.msra.mxu0 %v11846_v44  ;;  %3305 = vmatpush1.bf16.msra.mxu1 %v11847_v42 }
 0x3a1   :  { %3491 = vmatprep.subr.bf16.mxu0 %v11848_v36  ;;  %3532 = vmatprep.subr.bf16.mxu1 %v11849_v3 }
 0x403   :  { %v2400_v38 = vpop.f32.mrf.mxu0  ;;  %v2441_v45 = vpop.f32.mrf.mxu1 }
 0x405   :  { %v2402_v46 = vpop.f32.mrf.mxu0  ;;  %v2443_v48 = vpop.f32.mrf.mxu1 }
 0x407   :  { %v2404_v49 = vpop.f32.mrf.mxu0  ;;  %v2445_v50 = vpop.f32.mrf.mxu1 }
 0x409   :  { %v2405_v51 = vpop.f32.mrf.mxu0  ;;  %v2446_v52 = vpop.f32.mrf.mxu1 }
 0x40a   :  { %v7522_v51 = vld [vmem:[%s11630_s0 + $0x78] sm:$0xff] }
 0x423   :  { %v2642_v53 = vpop.f32.mrf.mxu0  ;;  %v2683_v54 = vpop.f32.mrf.mxu1 }
 0x424   :  { %v2643_v55 = vadd.f32 %v2642_v53, %v2400_v38  ;;  %v2684_v39 = vadd.f32 %v2683_v54, %v2441_v45  ;;  %v7521_v53 = vld [vmem:[%s11630_s0 + $0x70] sm:$0xff] }
 0x425   :  { %v2644_v56 = vpop.f32.mrf.mxu0  ;;  %v2685_v8 = vpop.f32.mrf.mxu1 }
 0x426   :  { %v7515_v60 = vmul.f32 -1.442695, %v2643_v55  ;;  %v2645_v12 = vadd.f32 %v2644_v56, %v2402_v46  ;;  %v2686_v28 = vadd.f32 %v2685_v8, %v2443_v48 }
 0x427   :  { %v2646_v9 = vpop.f32.mrf.mxu0  ;;  %v2687_v19 = vpop.f32.mrf.mxu1 }
 0x428   :  { %8718 = vpow2.f32 %v7515_v60  ;;  %v7516_v20 = vmul.f32 -1.442695, %v2645_v12  ;;  %v7517_v29 = vmul.f32 -1.442695, %v2686_v28 }
 0x429   :  { %v2647_v25 = vpop.f32.mrf.mxu0  ;;  %v2688_v26 = vpop.f32.mrf.mxu1 }
 0x42a   :  { %8720 = vpow2.f32 %v7516_v20 }
 0x42b   :  { %8722 = vpow2.f32 %v7517_v29 }
 0x435   :  { %v8719_v30 = vpop.eup %8718 }
 0x436   :  { %v2696_v1 = vadd.f32 1.0, %v8719_v30  ;;  %v11858_v30 = vld [vmem:[#allocation54_spill] sm:$0xff] }
 0x437   :  { %v8721_v4 = vpop.eup %8720 }
 0x438   :  { %8724 = vrcp.f32 %v2696_v1  ;;  %v2697_v5 = vadd.f32 1.0, %v8721_v4  ;;  %v8723_v33 = vpop.eup %8722  ;;  %v10338_v4 = vld [vmem:[%s11631_s1 + $0xe4] ss:$16 sps:$4 sm:$0xff]  }
 0x439   :  { %8726 = vtanh.f32 %v2684_v39  ;;  %v2706_v42 = vadd.f32 1.0, %v8723_v33  ;;  %v11861_v39 = vld [vmem:[#allocation57_spill] sm:$0xff] }
 0x43a   :  { %8728 = vrcp.f32 %v2697_v5  ;;  %v10343_v5 = vld [vmem:[%s11631_s1 + $0xec] ss:$16 sps:$4 sm:$0xff]   ;;  %v10390_v33 = vld [vmem:[%s11631_s1 + $0xa4] ss:$16 sps:$4 sm:$0xff]  }
 0x443   :  { %v2948_v7 = vpop.f32.mrf.mxu0  ;;  %v2989_v0 = vpop.f32.mrf.mxu1 }
 0x444   :  { %v2996_v34 = vadd.f32 %v7519_v6, %v2948_v7  ;;  %v2998_v55 = vadd.f32 %v7521_v53, %v2989_v0  ;;  %v10378_v0 = vld [vmem:[%s11631_s1 + $0xc0] ss:$16 sps:$4 sm:$0xff]   ;;  %v10505_v53 = vld [vmem:[%s11631_s1 + $0x28] ss:$16 sps:$4 sm:$0xff]  }
 0x445   :  { %v8725_v35 = vpop.eup %8724  ;;  %v2950_v37 = vpop.f32.mrf.mxu0 }
 0x446   :  { %v2991_v40 = vpop.f32.mrf.mxu1  ;;  %v8727_v41 = vpop.eup %8726  ;;  %v7555_v43 = vmul.f32 -1.442695, %v2996_v34  ;;  %v2997_v32 = vadd.f32 %v7520_v31, %v2950_v37  ;;  %v10383_v31 = vld [vmem:[%s11631_s1 + $0xc8] ss:$16 sps:$4 sm:$0xff]   ;;  %v10395_v34 = vld [vmem:[%s11631_s1 + $0xac] ss:$16 sps:$4 sm:$0xff]  }
 0x447   :  { %v8729_v44 = vpop.eup %8728  ;;  %v2952_v36 = vpop.f32.mrf.mxu0  ;;  %v2710_v38 = vmul.f32 %v8727_v41, %v8725_v35  ;;  %v2999_v52 = vadd.f32 %v7522_v51, %v2991_v40  ;;  %v10404_v35 = vld [vmem:[%s11631_s1 + $0xa0] ss:$16 sps:$4 sm:$0xff]   ;;  %v10409_v37 = vld [vmem:[%s11631_s1 + $0xa8] ss:$16 sps:$4 sm:$0xff]   ;;  %v10416_v40 = vld [vmem:[%s11631_s1 + $0x84] ss:$16 sps:$4 sm:$0xff]  }
 0x448   :  { %v2993_v3 = vpop.f32.mrf.mxu1  ;;  %v2709_v45 = vmul.f32 %v8729_v44, %v10014_v13  ;;  %8730 = vpow2.f32 %v7555_v43  ;;  %v7556_v46 = vmul.f32 -1.442695, %v2997_v32  ;;  %v10421_v41 = vld [vmem:[%s11631_s1 + $0x8c] ss:$16 sps:$4 sm:$0xff]   ;;  %v10428_v43 = vld [vmem:[%s11631_s1 + $0x80] ss:$16 sps:$4 sm:$0xff]  }
 0x449   :  { %v2953_v48 = vpop.f32.mrf.mxu0  ;;  %v7557_v13 = vmul.f32 -1.442695, %v2999_v52  ;;  %v10433_v32 = vld [vmem:[%s11631_s1 + $0x88] ss:$16 sps:$4 sm:$0xff]   ;;  %v10440_v44 = vld [vmem:[%s11631_s1 + $0x64] ss:$16 sps:$4 sm:$0xff]  }
 0x44a   :  { %v2994_v49 = vpop.f32.mrf.mxu1  ;;  %v10289_v50 = vadd.f32 %v2710_v38, %v2709_v45  ;;  %8732 = vpow2.f32 %v7556_v46  ;;  %v10452_v36 = vld [vmem:[%s11631_s1 + $0x60] ss:$16 sps:$4 sm:$0xff]   ;;  %v10457_v3 = vld [vmem:[%s11631_s1 + $0x68] ss:$16 sps:$4 sm:$0xff]   ;;  %v10464_v38 = vld [vmem:[%s11631_s1 + $0x44] ss:$16 sps:$4 sm:$0xff]  }
 0x44b   :  { %8734 = vrcp.f32 %v2706_v42  ;;  %v10445_v42 = vld [vmem:[%s11631_s1 + $0x6c] ss:$16 sps:$4 sm:$0xff]   ;;  %v10476_v46 = vld [vmem:[%s11631_s1 + $0x40] ss:$16 sps:$4 sm:$0xff]   ;;  %v10481_v48 = vld [vmem:[%s11631_s1 + $0x48] ss:$16 sps:$4 sm:$0xff]  }
 0x44c   :  { %8736 = vtanh.f32 %v10289_v50  ;;  %v10469_v45 = vld [vmem:[%s11631_s1 + $0x4c] ss:$16 sps:$4 sm:$0xff]   ;;  %v10488_v49 = vld [vmem:[%s11631_s1 + $0x24] ss:$16 sps:$4 sm:$0xff]   ;;  %v10500_v52 = vld [vmem:[%s11631_s1 + $0x20] ss:$16 sps:$4 sm:$0xff]  }
 0x44d   :  { %8738 = vpow2.f32 %v7557_v13  ;;  %v10493_v51 = vld [vmem:[%s11631_s1 + $0x2c] ss:$16 sps:$4 sm:$0xff]   ;;  %v10512_v13 = vld [vmem:[%s11631_s1 + $0x4] ss:$16 sps:$4 sm:$0xff]  }
 0x455   :  { %v8731_v54 = vpop.eup %8730 }
 0x456   :  { %v3006_v56 = vadd.f32 1.0, %v8731_v54  ;;  %v10517_v54 = vld [vmem:[%s11631_s1 + $0xc] ss:$16 sps:$4 sm:$0xff]  }
 0x457   :  { %v8733_v8 = vpop.eup %8732 }
 0x458   :  { %v8735_v60 = vpop.eup %8734  ;;  %8740 = vrcp.f32 %v3006_v56  ;;  %v3007_v12 = vadd.f32 1.0, %v8733_v8  ;;  %v10529_v56 = vld [vmem:[%s11631_s1 + $0x8] ss:$16 sps:$4 sm:$0xff]   ;;  %v10539_v8 = vld [vmem:[#allocation6 + $0xe4] ss:$16 sps:$4 sm:$0xff]  }
 0x459   :  { %v8737_v9 = vpop.eup %8736  ;;  %8742 = vtanh.f32 %v2998_v55  ;;  %v10524_v55 = vld [vmem:[%s11631_s1] ss:$16 sps:$4 sm:$0xff]  }
 0x45a   :  { %8744 = vrcp.f32 %v3007_v12  ;;  %v2713_v19 = vmul.f32 %v8737_v9, %v8735_v60  ;;  %v8739_v25 = vpop.eup %8738  ;;  %v10541_v60 = vld [vmem:[#allocation6 + $0xec] ss:$16 sps:$4 sm:$0xff]   ;;  %v10543_v12 = vld [vmem:[#allocation6 + $0xe0] ss:$16 sps:$4 sm:$0xff]   ;;  %v10545_v9 = vld [vmem:[#allocation6 + $0xe8] ss:$16 sps:$4 sm:$0xff]  }
 0x45b   :  { %v3016_v28 = vadd.f32 1.0, %v8739_v25  ;;  %v10555_v25 = vld [vmem:[#allocation6 + $0xc0] ss:$16 sps:$4 sm:$0xff]  }
 0x45c   :  { %v2714_v20 = vpack.c.bf16 %v2713_v19, %v2713_v19  ;;  %v10551_v19 = vld [vmem:[#allocation6 + $0xc4] ss:$16 sps:$4 sm:$0xff]  }
 0x45d   :  { %8746 = vrcp.f32 %v3016_v28  ;;  %v10567_v28 = vld [vmem:[#allocation6 + $0xa8] ss:$16 sps:$4 sm:$0xff]  }
 0x45e   :  { %7518 = vst [vmem:[%s11638_s8 + $0x8] sm:$0xf] %v2714_v20  ;;  %3282 = vmatmul.mubr.bf16.vlgmr.msra.gmra.mxu0 %v2714_v20  ;;  %3323 = vmatmul.mubr.bf16.vlgmr.msra.gmra.mxu1 %v2714_v20  ;;  %v10553_v20 = vld [vmem:[#allocation6 + $0xcc] ss:$16 sps:$4 sm:$0xff]   ;;  %11865 = vst [vmem:[#allocation21_spill] sm:$0xff] %v10567_v28 }
 0x45f   :  { %3492 = vmatpush1.bf16.msra.mxu0 %v10026_v10  ;;  %3533 = vmatpush1.bf16.msra.mxu1 %v10031_v22 }
 0x460   :  { %3493 = vmatprep.subr.bf16.mxu0 %v10036_v23  ;;  %3534 = vmatprep.subr.bf16.mxu1 %v10041_v24  ;;  %v11850_v23 = vld [vmem:[#allocation46_spill] sm:$0xff] }
 0x461   :  { %3523 = vmatprep.mubr.bf16.mxu0 %v11776_v2  ;;  %3564 = vmatprep.mubr.bf16.mxu1 %v11776_v2 }
 0x463   :  { %3494 = vmatpush1.bf16.msra.mxu0 %v10051_v27  ;;  %3535 = vmatpush1.bf16.msra.mxu1 %v10056_v21  ;;  %v11851_v21 = vld [vmem:[#allocation47_spill] sm:$0xff] }
 0x464   :  { %3495 = vmatprep.subr.bf16.mxu0 %v10063_v16  ;;  %3536 = vmatprep.subr.bf16.mxu1 %v10068_v15  ;;  %v11852_v16 = vld [vmem:[#allocation48_spill] sm:$0xff]  ;;  %v11853_v15 = vld [vmem:[#allocation49_spill] sm:$0xff] }
 0x465   :  { %v8741_v10 = vpop.eup %8740 }
 0x466   :  { %v8743_v26 = vpop.eup %8742 }
 0x467   :  { %v8745_v22 = vpop.eup %8744  ;;  %3496 = vmatpush1.bf16.msra.mxu0 %v10077_v14  ;;  %3537 = vmatpush1.bf16.msra.mxu1 %v11850_v23  ;;  %v3020_v24 = vmul.f32 %v8743_v26, %v8741_v10  ;;  %v11854_v14 = vld [vmem:[#allocation50_spill] sm:$0xff]  ;;  %v10563_v26 = vld [vmem:[#allocation6 + $0xa4] ss:$16 sps:$4 sm:$0xff]  }
 0x468   :  { %v3019_v29 = vmul.f32 %v8745_v22, %v10121_v59  ;;  %3497 = vmatprep.subr.bf16.mxu0 %v10089_v61  ;;  %3538 = vmatprep.subr.bf16.mxu1 %v10094_v47  ;;  %v11855_v59 = vld [vmem:[#allocation51_spill] sm:$0xff]  ;;  %v11856_v61 = vld [vmem:[#allocation52_spill] sm:$0xff]  ;;  %v11857_v47 = vld [vmem:[#allocation53_spill] sm:$0xff]  ;;  %11863 = vst [vmem:[#allocation19_spill] sm:$0xff] %v10563_v26 }
 0x469   :  { %v10557_v10 = vld [vmem:[#allocation6 + $0xc8] ss:$16 sps:$4 sm:$0xff]   ;;  %v10565_v22 = vld [vmem:[#allocation6 + $0xa0] ss:$16 sps:$4 sm:$0xff]   ;;  %v10569_v23 = vld [vmem:[#allocation6 + $0xac] ss:$16 sps:$4 sm:$0xff]  }
 0x46a   :  { %v10316_v27 = vadd.f32 %v3020_v24, %v3019_v29  ;;  %v8747_v1 = vpop.eup %8746  ;;  %11862 = vst [vmem:[#allocation20_spill] sm:$0xff] %v10557_v10  ;;  %11864 = vst [vmem:[#allocation23_spill] sm:$0xff] %v10565_v22  ;;  %v10575_v24 = vld [vmem:[#allocation6 + $0x84] ss:$16 sps:$4 sm:$0xff]   ;;  %v10577_v29 = vld [vmem:[#allocation6 + $0x8c] ss:$16 sps:$4 sm:$0xff]  }
 0x46b   :  { %3498 = vmatpush1.bf16.msra.mxu0 %v10101_v57  ;;  %3539 = vmatpush1.bf16.msra.mxu1 %v10106_v11  ;;  %v11859_v57 = vld [vmem:[#allocation55_spill] sm:$0xff]  ;;  %v11860_v11 = vld [vmem:[#allocation56_spill] sm:$0xff]  ;;  %11866 = vst [vmem:[#allocation22_spill] sm:$0xff] %v10569_v23  ;;  %11867 = vst [vmem:[#allocation24_spill] sm:$0xff] %v10575_v24 }
 0x46c   :  { %3499 = vmatprep.subr.bf16.mxu0 %v11851_v21  ;;  %3540 = vmatprep.subr.bf16.mxu1 %v11852_v16  ;;  %8748 = vtanh.f32 %v10316_v27  ;;  %11868 = vst [vmem:[#allocation25_spill] sm:$0xff] %v10577_v29  ;;  %v10579_v21 = vld [vmem:[#allocation6 + $0x80] ss:$16 sps:$4 sm:$0xff]   ;;  %v10581_v16 = vld [vmem:[#allocation6 + $0x88] ss:$16 sps:$4 sm:$0xff]  }
 0x46d   :  { %11869 = vst [vmem:[#allocation26_spill] sm:$0xff] %v10579_v21  ;;  %11870 = vst [vmem:[#allocation27_spill] sm:$0xff] %v10581_v16 }
 0x46f   :  { %3500 = vmatpush1.bf16.msra.mxu0 %v11853_v15  ;;  %3541 = vmatpush1.bf16.msra.mxu1 %v11854_v14  ;;  %v10587_v15 = vld [vmem:[#allocation6 + $0x64] ss:$16 sps:$4 sm:$0xff]   ;;  %v10589_v14 = vld [vmem:[#allocation6 + $0x6c] ss:$16 sps:$4 sm:$0xff]  }
 0x470   :  { %3501 = vmatprep.subr.bf16.mxu0 %v11855_v59  ;;  %3542 = vmatprep.subr.bf16.mxu1 %v11856_v61  ;;  %11871 = vst [vmem:[#allocation28_spill] sm:$0xff] %v10587_v15  ;;  %11872 = vst [vmem:[#allocation29_spill] sm:$0xff] %v10589_v14  ;;  %v10591_v59 = vld [vmem:[#allocation6 + $0x60] ss:$16 sps:$4 sm:$0xff]   ;;  %v10593_v61 = vld [vmem:[#allocation6 + $0x68] ss:$16 sps:$4 sm:$0xff]  }
 0x471   :  { %11873 = vst [vmem:[#allocation30_spill] sm:$0xff] %v10591_v59  ;;  %11874 = vst [vmem:[#allocation31_spill] sm:$0xff] %v10593_v61 }
 0x473   :  { %3502 = vmatpush1.bf16.msra.mxu0 %v11857_v47  ;;  %3543 = vmatpush1.bf16.msra.mxu1 %v11858_v30  ;;  %v10599_v47 = vld [vmem:[#allocation6 + $0x44] ss:$16 sps:$4 sm:$0xff]   ;;  %v10601_v30 = vld [vmem:[#allocation6 + $0x4c] ss:$16 sps:$4 sm:$0xff]  }
 0x474   :  { %3503 = vmatprep.subr.bf16.mxu0 %v11859_v57  ;;  %3544 = vmatprep.subr.bf16.mxu1 %v11860_v11  ;;  %11875 = vst [vmem:[#allocation32_spill] sm:$0xff] %v10599_v47  ;;  %11876 = vst [vmem:[#allocation33_spill] sm:$0xff] %v10601_v30  ;;  %v10603_v57 = vld [vmem:[#allocation6 + $0x40] ss:$16 sps:$4 sm:$0xff]   ;;  %v10605_v11 = vld [vmem:[#allocation6 + $0x48] ss:$16 sps:$4 sm:$0xff]  }
 0x475   :  { %11877 = vst [vmem:[#allocation34_spill] sm:$0xff] %v10603_v57  ;;  %11878 = vst [vmem:[#allocation35_spill] sm:$0xff] %v10605_v11 }
 0x477   :  { %3504 = vmatpush1.bf16.msra.mxu0 %v10177_v62  ;;  %3545 = vmatpush1.bf16.msra.mxu1 %v11861_v39  ;;  %v10350_v62 = vld [vmem:[%s11631_s1 + $0xe0] ss:$16 sps:$4 sm:$0xff]   ;;  %v10611_v39 = vld [vmem:[#allocation6 + $0x24] ss:$16 sps:$4 sm:$0xff]  }
 0x478   :  { %3505 = vmatprep.subr.bf16.mxu0 %v10189_v63  ;;  %3546 = vmatprep.subr.bf16.mxu1 %v10194_v17  ;;  %v10355_v63 = vld [vmem:[%s11631_s1 + $0xe8] ss:$16 sps:$4 sm:$0xff]   ;;  %11879 = vst [vmem:[#allocation36_spill] sm:$0xff] %v10611_v39 }
 0x479   :  { %v8749_v6 = vpop.eup %8748 }
 0x47a   :  { %v3023_v7 = vmul.f32 %v8749_v6, %v8747_v1  ;;  %v10613_v1 = vld [vmem:[#allocation6 + $0x2c] ss:$16 sps:$4 sm:$0xff]   ;;  %v10615_v6 = vld [vmem:[#allocation6 + $0x20] ss:$16 sps:$4 sm:$0xff]  }
 0x47b   :  { %3506 = vmatpush1.bf16.msra.mxu0 %v10201_v18  ;;  %3547 = vmatpush1.bf16.msra.mxu1 %v10206_v58  ;;  %v10364_v58 = vld [vmem:[%s11631_s1 + $0xc4] ss:$16 sps:$4 sm:$0xff]   ;;  %v10369_v18 = vld [vmem:[%s11631_s1 + $0xcc] ss:$16 sps:$4 sm:$0xff]   ;;  %11880 = vst [vmem:[#allocation37_spill] sm:$0xff] %v10613_v1  ;;  %11881 = vst [vmem:[#allocation38_spill] sm:$0xff] %v10615_v6 }
 0x47c   :  { %v10357_v17 = vpack.c.bf16 %v3023_v7, %v3023_v7  ;;  %3797 = vmatprep.subr.bf16.mxu0 %v10338_v4  ;;  %3838 = vmatprep.subr.bf16.mxu1 %v10343_v5  ;;  %v10617_v7 = vld [vmem:[#allocation6 + $0x28] ss:$16 sps:$4 sm:$0xff]  }
 0x47d   :  { %11882 = vst [vmem:[#allocation39_spill] sm:$0xff] %v10617_v7 }
 0x47e   :  { %3524 = vmatmul.mubr.bf16.vlgmr.msra.gmra.mxu0 %v10357_v17  ;;  %3565 = vmatmul.mubr.bf16.vlgmr.msra.gmra.mxu1 %v10357_v17 }
 0x47f   :  { %3798 = vmatpush1.bf16.msra.mxu0 %v10350_v62  ;;  %3839 = vmatpush1.bf16.msra.mxu1 %v10355_v63 }
 0x480   :  { %3799 = vmatprep.subr.bf16.mxu0 %v10364_v58  ;;  %3840 = vmatprep.subr.bf16.mxu1 %v10369_v18 }
 0x481   :  { %3829 = vmatprep.mubr.bf16.mxu0 %v11776_v2  ;;  %3870 = vmatprep.mubr.bf16.mxu1 %v11776_v2 }
 0x483   :  { %3800 = vmatpush1.bf16.msra.mxu0 %v10378_v0  ;;  %3841 = vmatpush1.bf16.msra.mxu1 %v10383_v31 }
 0x484   :  { %3801 = vmatprep.subr.bf16.mxu0 %v10390_v33  ;;  %3842 = vmatprep.subr.bf16.mxu1 %v10395_v34 }
 0x487   :  { %3802 = vmatpush1.bf16.msra.mxu0 %v10404_v35  ;;  %3843 = vmatpush1.bf16.msra.mxu1 %v10409_v37 }
 0x488   :  { %3803 = vmatprep.subr.bf16.mxu0 %v10416_v40  ;;  %3844 = vmatprep.subr.bf16.mxu1 %v10421_v41 }
 0x48b   :  { %3804 = vmatpush1.bf16.msra.mxu0 %v10428_v43  ;;  %3845 = vmatpush1.bf16.msra.mxu1 %v10433_v32 }
 0x48c   :  { %3805 = vmatprep.subr.bf16.mxu0 %v10440_v44  ;;  %3846 = vmatprep.subr.bf16.mxu1 %v10445_v42 }
 0x48f   :  { %3806 = vmatpush1.bf16.msra.mxu0 %v10452_v36  ;;  %3847 = vmatpush1.bf16.msra.mxu1 %v10457_v3 }
 0x490   :  { %3807 = vmatprep.subr.bf16.mxu0 %v10464_v38  ;;  %3848 = vmatprep.subr.bf16.mxu1 %v10469_v45 }
 0x493   :  { %3808 = vmatpush1.bf16.msra.mxu0 %v10476_v46  ;;  %3849 = vmatpush1.bf16.msra.mxu1 %v10481_v48 }
 0x494   :  { %3809 = vmatprep.subr.bf16.mxu0 %v10488_v49  ;;  %3850 = vmatprep.subr.bf16.mxu1 %v10493_v51 }
 0x497   :  { %3810 = vmatpush1.bf16.msra.mxu0 %v10500_v52  ;;  %3851 = vmatpush1.bf16.msra.mxu1 %v10505_v53 }
 0x498   :  { %3811 = vmatprep.subr.bf16.mxu0 %v10512_v13  ;;  %3852 = vmatprep.subr.bf16.mxu1 %v10517_v54 }
 0x49b   :  { %3812 = vmatpush1.bf16.msra.mxu0 %v10524_v55  ;;  %3853 = vmatpush1.bf16.msra.mxu1 %v10529_v56 }
 0x49c   :  { %4132 = vmatprep.subr.bf16.mxu0 %v10539_v8  ;;  %4173 = vmatprep.subr.bf16.mxu1 %v10541_v60 }
 0x49e   :  { %3830 = vmatmul.mubr.bf16.vlgmr.msra.gmra.mxu0 %v10357_v17  ;;  %3871 = vmatmul.mubr.bf16.vlgmr.msra.gmra.mxu1 %v10357_v17  ;;  %v10623_v17 = vld [vmem:[#allocation6 + $0x4] ss:$16 sps:$4 sm:$0xff]  }
 0x49f   :  { %4164 = vmatprep.mubr.bf16.mxu0 %v11776_v2  ;;  %4205 = vmatprep.mubr.bf16.mxu1 %v11776_v2  ;;  %11883 = vst [vmem:[#allocation40_spill] sm:$0xff] %v10623_v17 }
 0x4a0   :  { %4133 = vmatpush1.bf16.msra.mxu0 %v10543_v12  ;;  %4174 = vmatpush1.bf16.msra.mxu1 %v10545_v9 }
 0x4a1   :  { %4134 = vmatprep.subr.bf16.mxu0 %v10551_v19  ;;  %4175 = vmatprep.subr.bf16.mxu1 %v10553_v20 }
 0x4a4   :  { %4135 = vmatpush1.bf16.msra.mxu0 %v10555_v25  ;;  %4176 = vmatpush1.bf16.msra.mxu1 %v10557_v10 }
 0x4a5   :  { %4136 = vmatprep.subr.bf16.mxu0 %v10563_v26  ;;  %4177 = vmatprep.subr.bf16.mxu1 %v10569_v23 }
 0x4a8   :  { %4137 = vmatpush1.bf16.msra.mxu0 %v10565_v22  ;;  %4178 = vmatpush1.bf16.msra.mxu1 %v10567_v28 }
 0x4a9   :  { %4138 = vmatprep.subr.bf16.mxu0 %v10575_v24  ;;  %4179 = vmatprep.subr.bf16.mxu1 %v10577_v29 }
 0x4ac   :  { %4139 = vmatpush1.bf16.msra.mxu0 %v10579_v21  ;;  %4180 = vmatpush1.bf16.msra.mxu1 %v10581_v16 }
 0x4ad   :  { %4140 = vmatprep.subr.bf16.mxu0 %v10587_v15  ;;  %4181 = vmatprep.subr.bf16.mxu1 %v10589_v14 }
 0x4b0   :  { %4141 = vmatpush1.bf16.msra.mxu0 %v10591_v59  ;;  %4182 = vmatpush1.bf16.msra.mxu1 %v10593_v61 }
 0x4b1   :  { %4142 = vmatprep.subr.bf16.mxu0 %v10599_v47  ;;  %4183 = vmatprep.subr.bf16.mxu1 %v10601_v30  ;;  %v10629_v30 = vld [vmem:[#allocation6 + $0x8] ss:$16 sps:$4 sm:$0xff]  }
 0x4b2   :  { %11886 = vst [vmem:[#allocation43_spill] sm:$0xff] %v10629_v30 }
 0x4b4   :  { %4143 = vmatpush1.bf16.msra.mxu0 %v10603_v57  ;;  %4184 = vmatpush1.bf16.msra.mxu1 %v10605_v11  ;;  %v10625_v57 = vld [vmem:[#allocation6 + $0xc] ss:$16 sps:$4 sm:$0xff]   ;;  %v10627_v11 = vld [vmem:[#allocation6] ss:$16 sps:$4 sm:$0xff]  }
 0x4b5   :  { %4144 = vmatprep.subr.bf16.mxu0 %v10611_v39  ;;  %4185 = vmatprep.subr.bf16.mxu1 %v10613_v1  ;;  %11884 = vst [vmem:[#allocation41_spill] sm:$0xff] %v10625_v57  ;;  %11885 = vst [vmem:[#allocation42_spill] sm:$0xff] %v10627_v11 }
 0x4b8   :  { %4145 = vmatpush1.bf16.msra.mxu0 %v10615_v6  ;;  %4186 = vmatpush1.bf16.msra.mxu1 %v10617_v7  ;;  %v10638_v7 = vld [vmem:[%s11632_s2 + $0xe4] ss:$16 sps:$4 sm:$0xff]   ;;  %v10643_v6 = vld [vmem:[%s11632_s2 + $0xec] ss:$16 sps:$4 sm:$0xff]  }
 0x4b9   :  { %4146 = vmatprep.subr.bf16.mxu0 %v10623_v17  ;;  %4187 = vmatprep.subr.bf16.mxu1 %v10625_v57  ;;  %11887 = vst [vmem:[#allocation44_spill] sm:$0xff] %v10638_v7  ;;  %11888 = vst [vmem:[#allocation45_spill] sm:$0xff] %v10643_v6 }
 0x4bc   :  { %4147 = vmatpush1.bf16.msra.mxu0 %v10627_v11  ;;  %4188 = vmatpush1.bf16.msra.mxu1 %v10629_v30 }
 0x4bd   :  { %4374 = vmatprep.subr.bf16.mxu0 %v10638_v7  ;;  %4415 = vmatprep.subr.bf16.mxu1 %v10643_v6 }
 0x51e   :  { %v3283_v17 = vpop.f32.mrf.mxu0  ;;  %v3324_v57 = vpop.f32.mrf.mxu1 }
 0x520   :  { %v3285_v1 = vpop.f32.mrf.mxu0  ;;  %v3326_v11 = vpop.f32.mrf.mxu1 }
 0x522   :  { %v3287_v39 = vpop.f32.mrf.mxu0  ;;  %v3328_v30 = vpop.f32.mrf.mxu1 }
 0x524   :  { %v3288_v47 = vpop.f32.mrf.mxu0  ;;  %v3329_v61 = vpop.f32.mrf.mxu1 }
 0x53e   :  { %v3525_v59 = vpop.f32.mrf.mxu0  ;;  %v3566_v14 = vpop.f32.mrf.mxu1 }
 0x53f   :  { %v3526_v15 = vadd.f32 %v3525_v59, %v3283_v17  ;;  %v3567_v30 = vadd.f32 %v3566_v14, %v3324_v57 }
 0x540   :  { %v3527_v16 = vpop.f32.mrf.mxu0  ;;  %v3568_v21 = vpop.f32.mrf.mxu1 }
 0x541   :  { %v7622_v29 = vmul.f32 -1.442695, %v3526_v15  ;;  %v3528_v24 = vadd.f32 %v3527_v16, %v3285_v1  ;;  %v3569_v26 = vadd.f32 %v3568_v21, %v3326_v11 }
 0x542   :  { %v3529_v28 = vpop.f32.mrf.mxu0  ;;  %v3570_v22 = vpop.f32.mrf.mxu1 }
 0x543   :  { %8750 = vpow2.f32 %v7622_v29  ;;  %v7623_v7 = vmul.f32 -1.442695, %v3528_v24  ;;  %v7624_v10 = vmul.f32 -1.442695, %v3569_v26  ;;  %v7626_v22 = vld [vmem:[%s11630_s0 + $0x80] sm:$0xff] }
 0x544   :  { %v3530_v6 = vpop.f32.mrf.mxu0  ;;  %v3571_v23 = vpop.f32.mrf.mxu1 }
 0x545   :  { %8752 = vpow2.f32 %v7623_v7  ;;  %v7627_v23 = vld [vmem:[%s11630_s0 + $0x88] sm:$0xff] }
 0x546   :  { %8754 = vpow2.f32 %v7624_v10 }
 0x550   :  { %v8751_v39 = vpop.eup %8750 }
 0x551   :  { %v3579_v47 = vadd.f32 1.0, %v8751_v39 }
 0x552   :  { %v8753_v61 = vpop.eup %8752 }
 0x553   :  { %8756 = vrcp.f32 %v3579_v47  ;;  %v3580_v59 = vadd.f32 1.0, %v8753_v61  ;;  %v8755_v26 = vpop.eup %8754 }
 0x554   :  { %8758 = vtanh.f32 %v3567_v30  ;;  %v3589_v1 = vadd.f32 1.0, %v8755_v26 }
 0x555   :  { %8760 = vrcp.f32 %v3580_v59 }
 0x55e   :  { %v3831_v28 = vpop.f32.mrf.mxu0  ;;  %v3872_v24 = vpop.f32.mrf.mxu1 }
 0x55f   :  { %v3879_v29 = vadd.f32 %v7626_v22, %v3831_v28  ;;  %v7629_v22 = vld [vmem:[%s11630_s0 + $0x98] sm:$0xff] }
 0x560   :  { %v8757_v21 = vpop.eup %8756  ;;  %v3833_v16 = vpop.f32.mrf.mxu0 }
 0x561   :  { %v3874_v15 = vpop.f32.mrf.mxu1  ;;  %v8759_v10 = vpop.eup %8758  ;;  %v7662_v14 = vmul.f32 -1.442695, %v3879_v29  ;;  %v3880_v57 = vadd.f32 %v7627_v23, %v3833_v16  ;;  %v7628_v23 = vld [vmem:[%s11630_s0 + $0x90] sm:$0xff] }
 0x562   :  { %v8761_v11 = vpop.eup %8760  ;;  %v3835_v6 = vpop.f32.mrf.mxu0  ;;  %v3593_v17 = vmul.f32 %v8759_v10, %v8757_v21  ;;  %v3882_v28 = vadd.f32 %v7629_v22, %v3874_v15  ;;  %v3881_v29 = vadd.f32 %v7628_v23, %v3872_v24  ;;  %v10666_v15 = vld [vmem:[%s11632_s2 + $0xe0] ss:$16 sps:$4 sm:$0xff]   ;;  %v10722_v22 = vld [vmem:[%s11632_s2 + $0xa8] ss:$16 sps:$4 sm:$0xff]   ;;  %v10729_v23 = vld [vmem:[%s11632_s2 + $0x84] ss:$16 sps:$4 sm:$0xff]  }
 0x563   :  { %v3876_v7 = vpop.f32.mrf.mxu1  ;;  %v3592_v39 = vmul.f32 %v8761_v11, %v10289_v50  ;;  %8762 = vpow2.f32 %v7662_v14  ;;  %v7663_v30 = vmul.f32 -1.442695, %v3880_v57  ;;  %v10676_v6 = vld [vmem:[%s11632_s2 + $0xc4] ss:$16 sps:$4 sm:$0xff]   ;;  %11889 = vst [vmem:[#allocation46_spill] sm:$0xff] %v10722_v22 }
 0x564   :  { %v3836_v47 = vpop.f32.mrf.mxu0  ;;  %v7664_v50 = vmul.f32 -1.442695, %v3882_v28  ;;  %v10681_v7 = vld [vmem:[%s11632_s2 + $0xcc] ss:$16 sps:$4 sm:$0xff]  }
 0x565   :  { %v3877_v61 = vpop.f32.mrf.mxu1  ;;  %v10654_v59 = vadd.f32 %v3593_v17, %v3592_v39  ;;  %8764 = vpow2.f32 %v7663_v30  ;;  %v10691_v17 = vld [vmem:[%s11632_s2 + $0xc0] ss:$16 sps:$4 sm:$0xff]   ;;  %v10696_v39 = vld [vmem:[%s11632_s2 + $0xc8] ss:$16 sps:$4 sm:$0xff]   ;;  %v10703_v30 = vld [vmem:[%s11632_s2 + $0xa4] ss:$16 sps:$4 sm:$0xff]  }
 0x566   :  { %8766 = vrcp.f32 %v3589_v1  ;;  %v10671_v1 = vld [vmem:[%s11632_s2 + $0xe8] ss:$16 sps:$4 sm:$0xff]   ;;  %v10708_v47 = vld [vmem:[%s11632_s2 + $0xac] ss:$16 sps:$4 sm:$0xff]   ;;  %v10717_v61 = vld [vmem:[%s11632_s2 + $0xa0] ss:$16 sps:$4 sm:$0xff]  }
 0x567   :  { %8768 = vtanh.f32 %v10654_v59 }
 0x568   :  { %8770 = vpow2.f32 %v7664_v50  ;;  %v10734_v50 = vld [vmem:[%s11632_s2 + $0x8c] ss:$16 sps:$4 sm:$0xff]  }
 0x570   :  { %v8763_v26 = vpop.eup %8762 }
 0x571   :  { %v3889_v21 = vadd.f32 1.0, %v8763_v26 }
 0x572   :  { %v8765_v16 = vpop.eup %8764 }
 0x573   :  { %v8767_v10 = vpop.eup %8766  ;;  %8772 = vrcp.f32 %v3889_v21  ;;  %v3890_v14 = vadd.f32 1.0, %v8765_v16 }
 0x574   :  { %v8769_v57 = vpop.eup %8768  ;;  %8774 = vtanh.f32 %v3881_v29 }
 0x575   :  { %8776 = vrcp.f32 %v3890_v14  ;;  %v3596_v11 = vmul.f32 %v8769_v57, %v8767_v10  ;;  %v8771_v28 = vpop.eup %8770  ;;  %v10741_v10 = vld [vmem:[%s11632_s2 + $0x80] ss:$16 sps:$4 sm:$0xff]   ;;  %v10746_v14 = vld [vmem:[%s11632_s2 + $0x88] ss:$16 sps:$4 sm:$0xff]  }
 0x576   :  { %v3899_v16 = vadd.f32 1.0, %v8771_v28  ;;  %v10759_v28 = vld [vmem:[%s11632_s2 + $0x6c] ss:$16 sps:$4 sm:$0xff]  }
 0x577   :  { %v3597_v24 = vpack.c.bf16 %v3596_v11, %v3596_v11  ;;  %11891 = vst [vmem:[#allocation48_spill] sm:$0xff] %v10759_v28 }
 0x578   :  { %8778 = vrcp.f32 %v3899_v16  ;;  %v10793_v16 = vld [vmem:[%s11632_s2 + $0x40] ss:$16 sps:$4 sm:$0xff]  }
 0x579   :  { %7625 = vst [vmem:[%s11638_s8 + $0xc] sm:$0xf] %v3597_v24  ;;  %4165 = vmatmul.mubr.bf16.vlgmr.msra.gmra.mxu0 %v3597_v24  ;;  %4206 = vmatmul.mubr.bf16.vlgmr.msra.gmra.mxu1 %v3597_v24  ;;  %v10754_v24 = vld [vmem:[%s11632_s2 + $0x64] ss:$16 sps:$4 sm:$0xff]   ;;  %11896 = vst [vmem:[#allocation53_spill] sm:$0xff] %v10793_v16 }
 0x57a   :  { %4375 = vmatpush1.bf16.msra.mxu0 %v10666_v15  ;;  %4416 = vmatpush1.bf16.msra.mxu1 %v10671_v1  ;;  %11890 = vst [vmem:[#allocation47_spill] sm:$0xff] %v10754_v24 }
 0x57b   :  { %4376 = vmatprep.subr.bf16.mxu0 %v10676_v6  ;;  %4417 = vmatprep.subr.bf16.mxu1 %v10681_v7 }
 0x57c   :  { %4406 = vmatprep.mubr.bf16.mxu0 %v11776_v2  ;;  %4447 = vmatprep.mubr.bf16.mxu1 %v11776_v2 }
 0x57e   :  { %4377 = vmatpush1.bf16.msra.mxu0 %v10691_v17  ;;  %4418 = vmatpush1.bf16.msra.mxu1 %v10696_v39 }
 0x57f   :  { %4378 = vmatprep.subr.bf16.mxu0 %v10703_v30  ;;  %4419 = vmatprep.subr.bf16.mxu1 %v10708_v47 }
 0x580   :  { %v8773_v26 = vpop.eup %8772 }
 0x581   :  { %v8775_v29 = vpop.eup %8774 }
 0x582   :  { %v8777_v21 = vpop.eup %8776  ;;  %4379 = vmatpush1.bf16.msra.mxu0 %v10717_v61  ;;  %4420 = vmatpush1.bf16.msra.mxu1 %v10722_v22  ;;  %v3903_v57 = vmul.f32 %v8775_v29, %v8773_v26  ;;  %v10773_v26 = vld [vmem:[%s11632_s2 + $0x68] ss:$16 sps:$4 sm:$0xff]   ;;  %v10780_v29 = vld [vmem:[%s11632_s2 + $0x44] ss:$16 sps:$4 sm:$0xff]  }
 0x583   :  { %v3902_v11 = vmul.f32 %v8777_v21, %v10316_v27  ;;  %4380 = vmatprep.subr.bf16.mxu0 %v10729_v23  ;;  %4421 = vmatprep.subr.bf16.mxu1 %v10734_v50  ;;  %v10768_v27 = vld [vmem:[%s11632_s2 + $0x60] ss:$16 sps:$4 sm:$0xff]   ;;  %11893 = vst [vmem:[#allocation50_spill] sm:$0xff] %v10773_v26  ;;  %11894 = vst [vmem:[#allocation51_spill] sm:$0xff] %v10780_v29  ;;  %v10785_v21 = vld [vmem:[%s11632_s2 + $0x4c] ss:$16 sps:$4 sm:$0xff]  }
 0x584   :  { %11892 = vst [vmem:[#allocation49_spill] sm:$0xff] %v10768_v27  ;;  %11895 = vst [vmem:[#allocation52_spill] sm:$0xff] %v10785_v21 }
 0x585   :  { %v10761_v22 = vadd.f32 %v3903_v57, %v3902_v11  ;;  %v10798_v57 = vld [vmem:[%s11632_s2 + $0x48] ss:$16 sps:$4 sm:$0xff]   ;;  %v10805_v11 = vld [vmem:[%s11632_s2 + $0x24] ss:$16 sps:$4 sm:$0xff]  }
 0x586   :  { %4381 = vmatpush1.bf16.msra.mxu0 %v10741_v10  ;;  %4422 = vmatpush1.bf16.msra.mxu1 %v10746_v14  ;;  %11897 = vst [vmem:[#allocation54_spill] sm:$0xff] %v10798_v57  ;;  %11898 = vst [vmem:[#allocation55_spill] sm:$0xff] %v10805_v11 }
 0x587   :  { %4382 = vmatprep.subr.bf16.mxu0 %v10754_v24  ;;  %4423 = vmatprep.subr.bf16.mxu1 %v10759_v28  ;;  %8780 = vtanh.f32 %v10761_v22 }
 0x58a   :  { %4383 = vmatpush1.bf16.msra.mxu0 %v10768_v27  ;;  %4424 = vmatpush1.bf16.msra.mxu1 %v10773_v26  ;;  %v10810_v26 = vld [vmem:[%s11632_s2 + $0x2c] ss:$16 sps:$4 sm:$0xff]   ;;  %v8779_v27 = vpop.eup %8778 }
 0x58b   :  { %4384 = vmatprep.subr.bf16.mxu0 %v10780_v29  ;;  %4425 = vmatprep.subr.bf16.mxu1 %v10785_v21  ;;  %11899 = vst [vmem:[#allocation56_spill] sm:$0xff] %v10810_v26  ;;  %v10817_v29 = vld [vmem:[%s11632_s2 + $0x20] ss:$16 sps:$4 sm:$0xff]   ;;  %v10822_v21 = vld [vmem:[%s11632_s2 + $0x28] ss:$16 sps:$4 sm:$0xff]  }
 0x58c   :  { %11900 = vst [vmem:[#allocation57_spill] sm:$0xff] %v10822_v21 }
 0x58e   :  { %4385 = vmatpush1.bf16.msra.mxu0 %v10793_v16  ;;  %4426 = vmatpush1.bf16.msra.mxu1 %v10798_v57  ;;  %v10829_v16 = vld [vmem:[%s11632_s2 + $0x4] ss:$16 sps:$4 sm:$0xff]   ;;  %v10834_v57 = vld [vmem:[%s11632_s2 + $0xc] ss:$16 sps:$4 sm:$0xff]  }
 0x58f   :  { %4386 = vmatprep.subr.bf16.mxu0 %v10805_v11  ;;  %4427 = vmatprep.subr.bf16.mxu1 %v10810_v26  ;;  %v10841_v11 = vld [vmem:[%s11632_s2] ss:$16 sps:$4 sm:$0xff]   ;;  %v10846_v26 = vld [vmem:[%s11632_s2 + $0x8] ss:$16 sps:$4 sm:$0xff]  }
 0x592   :  { %4387 = vmatpush1.bf16.msra.mxu0 %v10817_v29  ;;  %4428 = vmatpush1.bf16.msra.mxu1 %v10822_v21 }
 0x593   :  { %4388 = vmatprep.subr.bf16.mxu0 %v10829_v16  ;;  %4429 = vmatprep.subr.bf16.mxu1 %v10834_v57 }
 0x594   :  { %v8781_v28 = vpop.eup %8780 }
 0x595   :  { %v3906_v24 = vmul.f32 %v8781_v28, %v8779_v27 }
 0x596   :  { %4389 = vmatpush1.bf16.msra.mxu0 %v10841_v11  ;;  %4430 = vmatpush1.bf16.msra.mxu1 %v10846_v26 }
 0x597   :  { %4680 = vmatprep.subr.bf16.mxu0 %v10338_v4  ;;  %4721 = vmatprep.subr.bf16.mxu1 %v10343_v5  ;;  %v3907_v21 = vpack.c.bf16 %v3906_v24, %v3906_v24  ;;  %v11901_v4 = vld [vmem:[#allocation20_spill] sm:$0xff]  ;;  %v11902_v5 = vld [vmem:[#allocation19_spill] sm:$0xff] }
 0x599   :  { %4407 = vmatmul.mubr.bf16.vlgmr.msra.gmra.mxu0 %v3907_v21  ;;  %4448 = vmatmul.mubr.bf16.vlgmr.msra.gmra.mxu1 %v3907_v21 }
 0x59a   :  { %4681 = vmatpush1.bf16.msra.mxu0 %v10350_v62  ;;  %4722 = vmatpush1.bf16.msra.mxu1 %v10355_v63  ;;  %v11903_v62 = vld [vmem:[#allocation22_spill] sm:$0xff]  ;;  %v11904_v63 = vld [vmem:[#allocation23_spill] sm:$0xff] }
 0x59b   :  { %4682 = vmatprep.subr.bf16.mxu0 %v10364_v58  ;;  %4723 = vmatprep.subr.bf16.mxu1 %v10369_v18  ;;  %v11905_v58 = vld [vmem:[#allocation21_spill] sm:$0xff]  ;;  %v11906_v18 = vld [vmem:[#allocation24_spill] sm:$0xff] }
 0x59c   :  { %4712 = vmatprep.mubr.bf16.mxu0 %v11776_v2  ;;  %4753 = vmatprep.mubr.bf16.mxu1 %v11776_v2 }
 0x59e   :  { %4683 = vmatpush1.bf16.msra.mxu0 %v10378_v0  ;;  %4724 = vmatpush1.bf16.msra.mxu1 %v10383_v31  ;;  %v11907_v0 = vld [vmem:[#allocation25_spill] sm:$0xff]  ;;  %v11908_v31 = vld [vmem:[#allocation26_spill] sm:$0xff] }
 0x59f   :  { %4684 = vmatprep.subr.bf16.mxu0 %v10390_v33  ;;  %4725 = vmatprep.subr.bf16.mxu1 %v10395_v34  ;;  %v11909_v33 = vld [vmem:[#allocation27_spill] sm:$0xff]  ;;  %v11910_v34 = vld [vmem:[#allocation28_spill] sm:$0xff] }
 0x5a2   :  { %4685 = vmatpush1.bf16.msra.mxu0 %v10404_v35  ;;  %4726 = vmatpush1.bf16.msra.mxu1 %v10409_v37  ;;  %v11911_v35 = vld [vmem:[#allocation29_spill] sm:$0xff]  ;;  %v11912_v37 = vld [vmem:[#allocation30_spill] sm:$0xff] }
 0x5a3   :  { %4686 = vmatprep.subr.bf16.mxu0 %v10416_v40  ;;  %4727 = vmatprep.subr.bf16.mxu1 %v10421_v41  ;;  %v11913_v40 = vld [vmem:[#allocation31_spill] sm:$0xff]  ;;  %v11914_v41 = vld [vmem:[#allocation32_spill] sm:$0xff] }
 0x5a6   :  { %4687 = vmatpush1.bf16.msra.mxu0 %v10428_v43  ;;  %4728 = vmatpush1.bf16.msra.mxu1 %v10433_v32  ;;  %v11915_v43 = vld [vmem:[#allocation33_spill] sm:$0xff]  ;;  %v11916_v32 = vld [vmem:[#allocation34_spill] sm:$0xff] }
 0x5a7   :  { %4688 = vmatprep.subr.bf16.mxu0 %v10440_v44  ;;  %4729 = vmatprep.subr.bf16.mxu1 %v10445_v42  ;;  %v11917_v44 = vld [vmem:[#allocation35_spill] sm:$0xff]  ;;  %v11918_v42 = vld [vmem:[#allocation36_spill] sm:$0xff] }
 0x5aa   :  { %4689 = vmatpush1.bf16.msra.mxu0 %v10452_v36  ;;  %4730 = vmatpush1.bf16.msra.mxu1 %v10457_v3  ;;  %v11919_v36 = vld [vmem:[#allocation37_spill] sm:$0xff]  ;;  %v11920_v3 = vld [vmem:[#allocation38_spill] sm:$0xff] }
 0x5ab   :  { %4690 = vmatprep.subr.bf16.mxu0 %v10464_v38  ;;  %4731 = vmatprep.subr.bf16.mxu1 %v10469_v45  ;;  %v11921_v38 = vld [vmem:[#allocation39_spill] sm:$0xff]  ;;  %v11922_v45 = vld [vmem:[#allocation40_spill] sm:$0xff] }
 0x5ae   :  { %4691 = vmatpush1.bf16.msra.mxu0 %v10476_v46  ;;  %4732 = vmatpush1.bf16.msra.mxu1 %v10481_v48  ;;  %v11923_v46 = vld [vmem:[#allocation41_spill] sm:$0xff]  ;;  %v11924_v48 = vld [vmem:[#allocation42_spill] sm:$0xff] }
 0x5af   :  { %4692 = vmatprep.subr.bf16.mxu0 %v10488_v49  ;;  %4733 = vmatprep.subr.bf16.mxu1 %v10493_v51  ;;  %v11925_v49 = vld [vmem:[#allocation43_spill] sm:$0xff]  ;;  %v11926_v51 = vld [vmem:[#allocation44_spill] sm:$0xff] }
 0x5b2   :  { %4693 = vmatpush1.bf16.msra.mxu0 %v10500_v52  ;;  %4734 = vmatpush1.bf16.msra.mxu1 %v10505_v53  ;;  %v11927_v52 = vld [vmem:[#allocation45_spill] sm:$0xff] }
 0x5b3   :  { %4694 = vmatprep.subr.bf16.mxu0 %v10512_v13  ;;  %4735 = vmatprep.subr.bf16.mxu1 %v10517_v54 }
 0x5b6   :  { %4695 = vmatpush1.bf16.msra.mxu0 %v10524_v55  ;;  %4736 = vmatpush1.bf16.msra.mxu1 %v10529_v56 }
 0x5b7   :  { %5015 = vmatprep.subr.bf16.mxu0 %v10539_v8  ;;  %5056 = vmatprep.subr.bf16.mxu1 %v10541_v60 }
 0x5b9   :  { %4713 = vmatmul.mubr.bf16.vlgmr.msra.gmra.mxu0 %v3907_v21  ;;  %4754 = vmatmul.mubr.bf16.vlgmr.msra.gmra.mxu1 %v3907_v21 }
 0x5ba   :  { %5016 = vmatpush1.bf16.msra.mxu0 %v10543_v12  ;;  %5057 = vmatpush1.bf16.msra.mxu1 %v10545_v9 }
 0x5bb   :  { %5017 = vmatprep.subr.bf16.mxu0 %v10551_v19  ;;  %5058 = vmatprep.subr.bf16.mxu1 %v10553_v20 }
 0x5bc   :  { %5047 = vmatprep.mubr.bf16.mxu0 %v11776_v2  ;;  %5088 = vmatprep.mubr.bf16.mxu1 %v11776_v2 }
 0x5be   :  { %5018 = vmatpush1.bf16.msra.mxu0 %v10555_v25  ;;  %5059 = vmatpush1.bf16.msra.mxu1 %v11901_v4 }
 0x5bf   :  { %5019 = vmatprep.subr.bf16.mxu0 %v11902_v5  ;;  %5060 = vmatprep.subr.bf16.mxu1 %v11903_v62 }
 0x5c2   :  { %5020 = vmatpush1.bf16.msra.mxu0 %v11904_v63  ;;  %5061 = vmatpush1.bf16.msra.mxu1 %v11905_v58 }
 0x5c3   :  { %5021 = vmatprep.subr.bf16.mxu0 %v11906_v18  ;;  %5062 = vmatprep.subr.bf16.mxu1 %v11907_v0 }
 0x5c6   :  { %5022 = vmatpush1.bf16.msra.mxu0 %v11908_v31  ;;  %5063 = vmatpush1.bf16.msra.mxu1 %v11909_v33 }
 0x5c7   :  { %5023 = vmatprep.subr.bf16.mxu0 %v11910_v34  ;;  %5064 = vmatprep.subr.bf16.mxu1 %v11911_v35 }
 0x5ca   :  { %5024 = vmatpush1.bf16.msra.mxu0 %v11912_v37  ;;  %5065 = vmatpush1.bf16.msra.mxu1 %v11913_v40  ;;  %v7733_v37 = vld [vmem:[%s11630_s0 + $0xa0] sm:$0xff] }
 0x5cb   :  { %5025 = vmatprep.subr.bf16.mxu0 %v11914_v41  ;;  %5066 = vmatprep.subr.bf16.mxu1 %v11915_v43  ;;  %v7734_v43 = vld [vmem:[%s11630_s0 + $0xa8] sm:$0xff] }
 0x5ce   :  { %5026 = vmatpush1.bf16.msra.mxu0 %v11916_v32  ;;  %5067 = vmatpush1.bf16.msra.mxu1 %v11917_v44 }
 0x5cf   :  { %5027 = vmatprep.subr.bf16.mxu0 %v11918_v42  ;;  %5068 = vmatprep.subr.bf16.mxu1 %v11919_v36 }
 0x5d2   :  { %5028 = vmatpush1.bf16.msra.mxu0 %v11920_v3  ;;  %5069 = vmatpush1.bf16.msra.mxu1 %v11921_v38 }
 0x5d3   :  { %5029 = vmatprep.subr.bf16.mxu0 %v11922_v45  ;;  %5070 = vmatprep.subr.bf16.mxu1 %v11923_v46 }
 0x5d6   :  { %5030 = vmatpush1.bf16.msra.mxu0 %v11924_v48  ;;  %5071 = vmatpush1.bf16.msra.mxu1 %v11925_v49 }
 0x5d7   :  { %5257 = vmatprep.subr.bf16.mxu0 %v11926_v51  ;;  %5298 = vmatprep.subr.bf16.mxu1 %v11927_v52 }
 0x639   :  { %v4166_v53 = vpop.f32.mrf.mxu0  ;;  %v4207_v13 = vpop.f32.mrf.mxu1 }
 0x63b   :  { %v4168_v54 = vpop.f32.mrf.mxu0  ;;  %v4209_v55 = vpop.f32.mrf.mxu1 }
 0x63d   :  { %v4170_v56 = vpop.f32.mrf.mxu0  ;;  %v4211_v8 = vpop.f32.mrf.mxu1 }
 0x63f   :  { %v4171_v60 = vpop.f32.mrf.mxu0  ;;  %v4212_v12 = vpop.f32.mrf.mxu1 }
 0x640   :  { %v7736_v60 = vld [vmem:[%s11630_s0 + $0xb8] sm:$0xff] }
 0x659   :  { %v4408_v9 = vpop.f32.mrf.mxu0  ;;  %v4449_v19 = vpop.f32.mrf.mxu1 }
 0x65a   :  { %v4409_v20 = vadd.f32 %v4408_v9, %v4166_v53  ;;  %v4450_v31 = vadd.f32 %v4449_v19, %v4207_v13  ;;  %v7735_v9 = vld [vmem:[%s11630_s0 + $0xb0] sm:$0xff] }
 0x65b   :  { %v4410_v25 = vpop.f32.mrf.mxu0  ;;  %v4451_v24 = vpop.f32.mrf.mxu1 }
 0x65c   :  { %v7729_v28 = vmul.f32 -1.442695, %v4409_v20  ;;  %v4411_v27 = vadd.f32 %v4410_v25, %v4168_v54  ;;  %v4452_v58 = vadd.f32 %v4451_v24, %v4209_v55 }
 0x65d   :  { %v4412_v21 = vpop.f32.mrf.mxu0  ;;  %v4453_v4 = vpop.f32.mrf.mxu1 }
 0x65e   :  { %8782 = vpow2.f32 %v7729_v28  ;;  %v7730_v5 = vmul.f32 -1.442695, %v4411_v27  ;;  %v7731_v18 = vmul.f32 -1.442695, %v4452_v58 }
 0x65f   :  { %v4413_v62 = vpop.f32.mrf.mxu0  ;;  %v4454_v63 = vpop.f32.mrf.mxu1 }
 0x660   :  { %8784 = vpow2.f32 %v7730_v5 }
 0x661   :  { %8786 = vpow2.f32 %v7731_v18 }
 0x66b   :  { %v8783_v0 = vpop.eup %8782 }
 0x66c   :  { %v4462_v33 = vadd.f32 1.0, %v8783_v0  ;;  %v11936_v0 = vld [vmem:[#allocation54_spill] sm:$0xff] }
 0x66d   :  { %v8785_v34 = vpop.eup %8784 }
 0x66e   :  { %8788 = vrcp.f32 %v4462_v33  ;;  %v4463_v35 = vadd.f32 1.0, %v8785_v34  ;;  %v8787_v32 = vpop.eup %8786  ;;  %v10978_v34 = vld [vmem:[%s11631_s1 + $0xe4] ss:$16 sps:$4 sm:$0xff]  }
 0x66f   :  { %8790 = vtanh.f32 %v4450_v31  ;;  %v4472_v49 = vadd.f32 1.0, %v8787_v32  ;;  %v11939_v31 = vld [vmem:[#allocation57_spill] sm:$0xff] }
 0x670   :  { %8792 = vrcp.f32 %v4463_v35  ;;  %v10983_v35 = vld [vmem:[%s11631_s1 + $0xec] ss:$16 sps:$4 sm:$0xff]   ;;  %v11030_v32 = vld [vmem:[%s11631_s1 + $0xa4] ss:$16 sps:$4 sm:$0xff]  }
 0x679   :  { %v4714_v40 = vpop.f32.mrf.mxu0  ;;  %v4755_v41 = vpop.f32.mrf.mxu1 }
 0x67a   :  { %v4762_v44 = vadd.f32 %v7733_v37, %v4714_v40  ;;  %v4764_v20 = vadd.f32 %v7735_v9, %v4755_v41  ;;  %v11018_v41 = vld [vmem:[%s11631_s1 + $0xc0] ss:$16 sps:$4 sm:$0xff]   ;;  %v11145_v9 = vld [vmem:[%s11631_s1 + $0x28] ss:$16 sps:$4 sm:$0xff]  }
 0x67b   :  { %v8789_v42 = vpop.eup %8788  ;;  %v4716_v36 = vpop.f32.mrf.mxu0 }
 0x67c   :  { %v4757_v3 = vpop.f32.mrf.mxu1  ;;  %v8791_v38 = vpop.eup %8790  ;;  %v7769_v45 = vmul.f32 -1.442695, %v4762_v44  ;;  %v4763_v46 = vadd.f32 %v7734_v43, %v4716_v36  ;;  %v11023_v43 = vld [vmem:[%s11631_s1 + $0xc8] ss:$16 sps:$4 sm:$0xff]   ;;  %v11035_v44 = vld [vmem:[%s11631_s1 + $0xac] ss:$16 sps:$4 sm:$0xff]  }
 0x67d   :  { %v8793_v48 = vpop.eup %8792  ;;  %v4718_v51 = vpop.f32.mrf.mxu0  ;;  %v4476_v53 = vmul.f32 %v8791_v38, %v8789_v42  ;;  %v4765_v12 = vadd.f32 %v7736_v60, %v4757_v3  ;;  %v11044_v42 = vld [vmem:[%s11631_s1 + $0xa0] ss:$16 sps:$4 sm:$0xff]   ;;  %v11049_v36 = vld [vmem:[%s11631_s1 + $0xa8] ss:$16 sps:$4 sm:$0xff]   ;;  %v11056_v3 = vld [vmem:[%s11631_s1 + $0x84] ss:$16 sps:$4 sm:$0xff]  }
 0x67e   :  { %v4759_v52 = vpop.f32.mrf.mxu1  ;;  %v4475_v13 = vmul.f32 %v8793_v48, %v10654_v59  ;;  %8794 = vpow2.f32 %v7769_v45  ;;  %v7770_v54 = vmul.f32 -1.442695, %v4763_v46  ;;  %v11061_v38 = vld [vmem:[%s11631_s1 + $0x8c] ss:$16 sps:$4 sm:$0xff]   ;;  %v11068_v45 = vld [vmem:[%s11631_s1 + $0x80] ss:$16 sps:$4 sm:$0xff]  }
 0x67f   :  { %v4719_v55 = vpop.f32.mrf.mxu0  ;;  %v7771_v59 = vmul.f32 -1.442695, %v4765_v12  ;;  %v11073_v46 = vld [vmem:[%s11631_s1 + $0x88] ss:$16 sps:$4 sm:$0xff]   ;;  %v11080_v48 = vld [vmem:[%s11631_s1 + $0x64] ss:$16 sps:$4 sm:$0xff]  }
 0x680   :  { %v4760_v56 = vpop.f32.mrf.mxu1  ;;  %v10929_v8 = vadd.f32 %v4476_v53, %v4475_v13  ;;  %8796 = vpow2.f32 %v7770_v54  ;;  %v11092_v51 = vld [vmem:[%s11631_s1 + $0x60] ss:$16 sps:$4 sm:$0xff]   ;;  %v11097_v52 = vld [vmem:[%s11631_s1 + $0x68] ss:$16 sps:$4 sm:$0xff]   ;;  %v11104_v53 = vld [vmem:[%s11631_s1 + $0x44] ss:$16 sps:$4 sm:$0xff]  }
 0x681   :  { %8798 = vrcp.f32 %v4472_v49  ;;  %v11085_v49 = vld [vmem:[%s11631_s1 + $0x6c] ss:$16 sps:$4 sm:$0xff]   ;;  %v11116_v54 = vld [vmem:[%s11631_s1 + $0x40] ss:$16 sps:$4 sm:$0xff]   ;;  %v11121_v55 = vld [vmem:[%s11631_s1 + $0x48] ss:$16 sps:$4 sm:$0xff]  }
 0x682   :  { %8800 = vtanh.f32 %v10929_v8  ;;  %v11109_v13 = vld [vmem:[%s11631_s1 + $0x4c] ss:$16 sps:$4 sm:$0xff]   ;;  %v11128_v56 = vld [vmem:[%s11631_s1 + $0x24] ss:$16 sps:$4 sm:$0xff]   ;;  %v11140_v12 = vld [vmem:[%s11631_s1 + $0x20] ss:$16 sps:$4 sm:$0xff]  }
 0x683   :  { %8802 = vpow2.f32 %v7771_v59  ;;  %v11133_v60 = vld [vmem:[%s11631_s1 + $0x2c] ss:$16 sps:$4 sm:$0xff]   ;;  %v11152_v59 = vld [vmem:[%s11631_s1 + $0x4] ss:$16 sps:$4 sm:$0xff]  }
 0x68b   :  { %v8795_v19 = vpop.eup %8794 }
 0x68c   :  { %v4772_v25 = vadd.f32 1.0, %v8795_v19  ;;  %v11157_v19 = vld [vmem:[%s11631_s1 + $0xc] ss:$16 sps:$4 sm:$0xff]  }
 0x68d   :  { %v8797_v24 = vpop.eup %8796 }
 0x68e   :  { %v8799_v28 = vpop.eup %8798  ;;  %8804 = vrcp.f32 %v4772_v25  ;;  %v4773_v27 = vadd.f32 1.0, %v8797_v24  ;;  %v11169_v25 = vld [vmem:[%s11631_s1 + $0x8] ss:$16 sps:$4 sm:$0xff]   ;;  %v11179_v24 = vld [vmem:[#allocation6 + $0xe4] ss:$16 sps:$4 sm:$0xff]  }
 0x68f   :  { %v8801_v21 = vpop.eup %8800  ;;  %8806 = vtanh.f32 %v4764_v20  ;;  %v11164_v20 = vld [vmem:[%s11631_s1] ss:$16 sps:$4 sm:$0xff]  }
 0x690   :  { %8808 = vrcp.f32 %v4773_v27  ;;  %v4479_v4 = vmul.f32 %v8801_v21, %v8799_v28  ;;  %v8803_v62 = vpop.eup %8802  ;;  %v11181_v28 = vld [vmem:[#allocation6 + $0xec] ss:$16 sps:$4 sm:$0xff]   ;;  %v11183_v27 = vld [vmem:[#allocation6 + $0xe0] ss:$16 sps:$4 sm:$0xff]   ;;  %v11185_v21 = vld [vmem:[#allocation6 + $0xe8] ss:$16 sps:$4 sm:$0xff]  }
 0x691   :  { %v4782_v58 = vadd.f32 1.0, %v8803_v62  ;;  %v11195_v62 = vld [vmem:[#allocation6 + $0xc0] ss:$16 sps:$4 sm:$0xff]  }
 0x692   :  { %v4480_v5 = vpack.c.bf16 %v4479_v4, %v4479_v4  ;;  %v11191_v4 = vld [vmem:[#allocation6 + $0xc4] ss:$16 sps:$4 sm:$0xff]  }
 0x693   :  { %8810 = vrcp.f32 %v4782_v58  ;;  %v11207_v58 = vld [vmem:[#allocation6 + $0xa8] ss:$16 sps:$4 sm:$0xff]  }
 0x694   :  { %7732 = vst [vmem:[%s11638_s8 + $0x10] sm:$0xf] %v4480_v5  ;;  %5048 = vmatmul.mubr.bf16.vlgmr.msra.gmra.mxu0 %v4480_v5  ;;  %5089 = vmatmul.mubr.bf16.vlgmr.msra.gmra.mxu1 %v4480_v5  ;;  %v11193_v5 = vld [vmem:[#allocation6 + $0xcc] ss:$16 sps:$4 sm:$0xff]   ;;  %11943 = vst [vmem:[#allocation23_spill] sm:$0xff] %v11207_v58 }
 0x695   :  { %5258 = vmatpush1.bf16.msra.mxu0 %v10666_v15  ;;  %5299 = vmatpush1.bf16.msra.mxu1 %v10671_v1 }
 0x696   :  { %5259 = vmatprep.subr.bf16.mxu0 %v10676_v6  ;;  %5300 = vmatprep.subr.bf16.mxu1 %v10681_v7  ;;  %v11928_v6 = vld [vmem:[#allocation46_spill] sm:$0xff] }
 0x697   :  { %5289 = vmatprep.mubr.bf16.mxu0 %v11776_v2  ;;  %5330 = vmatprep.mubr.bf16.mxu1 %v11776_v2 }
 0x699   :  { %5260 = vmatpush1.bf16.msra.mxu0 %v10691_v17  ;;  %5301 = vmatpush1.bf16.msra.mxu1 %v10696_v39  ;;  %v11929_v39 = vld [vmem:[#allocation47_spill] sm:$0xff] }
 0x69a   :  { %5261 = vmatprep.subr.bf16.mxu0 %v10703_v30  ;;  %5302 = vmatprep.subr.bf16.mxu1 %v10708_v47  ;;  %v11930_v30 = vld [vmem:[#allocation48_spill] sm:$0xff]  ;;  %v11931_v47 = vld [vmem:[#allocation49_spill] sm:$0xff] }
 0x69b   :  { %v8805_v15 = vpop.eup %8804 }
 0x69c   :  { %v8807_v63 = vpop.eup %8806 }
 0x69d   :  { %v8809_v1 = vpop.eup %8808  ;;  %5262 = vmatpush1.bf16.msra.mxu0 %v10717_v61  ;;  %5303 = vmatpush1.bf16.msra.mxu1 %v11928_v6  ;;  %v4786_v7 = vmul.f32 %v8807_v63, %v8805_v15  ;;  %v11932_v61 = vld [vmem:[#allocation50_spill] sm:$0xff]  ;;  %v11203_v63 = vld [vmem:[#allocation6 + $0xa4] ss:$16 sps:$4 sm:$0xff]  }
 0x69e   :  { %v4785_v18 = vmul.f32 %v8809_v1, %v10761_v22  ;;  %5263 = vmatprep.subr.bf16.mxu0 %v10729_v23  ;;  %5304 = vmatprep.subr.bf16.mxu1 %v10734_v50  ;;  %v11933_v22 = vld [vmem:[#allocation51_spill] sm:$0xff]  ;;  %v11934_v23 = vld [vmem:[#allocation52_spill] sm:$0xff]  ;;  %v11935_v50 = vld [vmem:[#allocation53_spill] sm:$0xff]  ;;  %11941 = vst [vmem:[#allocation19_spill] sm:$0xff] %v11203_v63 }
 0x69f   :  { %v11197_v15 = vld [vmem:[#allocation6 + $0xc8] ss:$16 sps:$4 sm:$0xff]   ;;  %v11205_v1 = vld [vmem:[#allocation6 + $0xa0] ss:$16 sps:$4 sm:$0xff]   ;;  %v11209_v6 = vld [vmem:[#allocation6 + $0xac] ss:$16 sps:$4 sm:$0xff]  }
 0x6a0   :  { %v10956_v17 = vadd.f32 %v4786_v7, %v4785_v18  ;;  %v8811_v33 = vpop.eup %8810  ;;  %11940 = vst [vmem:[#allocation20_spill] sm:$0xff] %v11197_v15  ;;  %11942 = vst [vmem:[#allocation22_spill] sm:$0xff] %v11205_v1  ;;  %v11215_v7 = vld [vmem:[#allocation6 + $0x84] ss:$16 sps:$4 sm:$0xff]   ;;  %v11217_v18 = vld [vmem:[#allocation6 + $0x8c] ss:$16 sps:$4 sm:$0xff]  }
 0x6a1   :  { %5264 = vmatpush1.bf16.msra.mxu0 %v10741_v10  ;;  %5305 = vmatpush1.bf16.msra.mxu1 %v10746_v14  ;;  %v11937_v10 = vld [vmem:[#allocation55_spill] sm:$0xff]  ;;  %v11938_v14 = vld [vmem:[#allocation56_spill] sm:$0xff]  ;;  %11944 = vst [vmem:[#allocation21_spill] sm:$0xff] %v11209_v6  ;;  %11945 = vst [vmem:[#allocation24_spill] sm:$0xff] %v11215_v7 }
 0x6a2   :  { %5265 = vmatprep.subr.bf16.mxu0 %v11929_v39  ;;  %5306 = vmatprep.subr.bf16.mxu1 %v11930_v30  ;;  %8812 = vtanh.f32 %v10956_v17  ;;  %11946 = vst [vmem:[#allocation25_spill] sm:$0xff] %v11217_v18  ;;  %v11219_v39 = vld [vmem:[#allocation6 + $0x80] ss:$16 sps:$4 sm:$0xff]   ;;  %v11221_v30 = vld [vmem:[#allocation6 + $0x88] ss:$16 sps:$4 sm:$0xff]  }
 0x6a3   :  { %11947 = vst [vmem:[#allocation26_spill] sm:$0xff] %v11219_v39  ;;  %11948 = vst [vmem:[#allocation27_spill] sm:$0xff] %v11221_v30 }
 0x6a5   :  { %5266 = vmatpush1.bf16.msra.mxu0 %v11931_v47  ;;  %5307 = vmatpush1.bf16.msra.mxu1 %v11932_v61  ;;  %v11227_v47 = vld [vmem:[#allocation6 + $0x64] ss:$16 sps:$4 sm:$0xff]   ;;  %v11229_v61 = vld [vmem:[#allocation6 + $0x6c] ss:$16 sps:$4 sm:$0xff]  }
 0x6a6   :  { %5267 = vmatprep.subr.bf16.mxu0 %v11933_v22  ;;  %5308 = vmatprep.subr.bf16.mxu1 %v11934_v23  ;;  %11949 = vst [vmem:[#allocation28_spill] sm:$0xff] %v11227_v47  ;;  %11950 = vst [vmem:[#allocation29_spill] sm:$0xff] %v11229_v61  ;;  %v11231_v22 = vld [vmem:[#allocation6 + $0x60] ss:$16 sps:$4 sm:$0xff]   ;;  %v11233_v23 = vld [vmem:[#allocation6 + $0x68] ss:$16 sps:$4 sm:$0xff]  }
 0x6a7   :  { %11951 = vst [vmem:[#allocation30_spill] sm:$0xff] %v11231_v22  ;;  %11952 = vst [vmem:[#allocation31_spill] sm:$0xff] %v11233_v23 }
 0x6a9   :  { %5268 = vmatpush1.bf16.msra.mxu0 %v11935_v50  ;;  %5309 = vmatpush1.bf16.msra.mxu1 %v11936_v0  ;;  %v11239_v50 = vld [vmem:[#allocation6 + $0x44] ss:$16 sps:$4 sm:$0xff]   ;;  %v11241_v0 = vld [vmem:[#allocation6 + $0x4c] ss:$16 sps:$4 sm:$0xff]  }
 0x6aa   :  { %5269 = vmatprep.subr.bf16.mxu0 %v11937_v10  ;;  %5310 = vmatprep.subr.bf16.mxu1 %v11938_v14  ;;  %11953 = vst [vmem:[#allocation32_spill] sm:$0xff] %v11239_v50  ;;  %11954 = vst [vmem:[#allocation33_spill] sm:$0xff] %v11241_v0  ;;  %v11243_v10 = vld [vmem:[#allocation6 + $0x40] ss:$16 sps:$4 sm:$0xff]   ;;  %v11245_v14 = vld [vmem:[#allocation6 + $0x48] ss:$16 sps:$4 sm:$0xff]  }
 0x6ab   :  { %11955 = vst [vmem:[#allocation34_spill] sm:$0xff] %v11243_v10  ;;  %11956 = vst [vmem:[#allocation35_spill] sm:$0xff] %v11245_v14 }
 0x6ad   :  { %5270 = vmatpush1.bf16.msra.mxu0 %v10817_v29  ;;  %5311 = vmatpush1.bf16.msra.mxu1 %v11939_v31  ;;  %v10990_v29 = vld [vmem:[%s11631_s1 + $0xe0] ss:$16 sps:$4 sm:$0xff]   ;;  %v11251_v31 = vld [vmem:[#allocation6 + $0x24] ss:$16 sps:$4 sm:$0xff]  }
 0x6ae   :  { %5271 = vmatprep.subr.bf16.mxu0 %v10829_v16  ;;  %5312 = vmatprep.subr.bf16.mxu1 %v10834_v57  ;;  %v10995_v16 = vld [vmem:[%s11631_s1 + $0xe8] ss:$16 sps:$4 sm:$0xff]   ;;  %11957 = vst [vmem:[#allocation36_spill] sm:$0xff] %v11251_v31 }
 0x6af   :  { %v8813_v37 = vpop.eup %8812 }
 0x6b0   :  { %v4789_v40 = vmul.f32 %v8813_v37, %v8811_v33  ;;  %v11253_v33 = vld [vmem:[#allocation6 + $0x2c] ss:$16 sps:$4 sm:$0xff]   ;;  %v11255_v37 = vld [vmem:[#allocation6 + $0x20] ss:$16 sps:$4 sm:$0xff]  }
 0x6b1   :  { %5272 = vmatpush1.bf16.msra.mxu0 %v10841_v11  ;;  %5313 = vmatpush1.bf16.msra.mxu1 %v10846_v26  ;;  %v11004_v26 = vld [vmem:[%s11631_s1 + $0xc4] ss:$16 sps:$4 sm:$0xff]   ;;  %v11009_v11 = vld [vmem:[%s11631_s1 + $0xcc] ss:$16 sps:$4 sm:$0xff]   ;;  %11958 = vst [vmem:[#allocation37_spill] sm:$0xff] %v11253_v33  ;;  %11959 = vst [vmem:[#allocation38_spill] sm:$0xff] %v11255_v37 }
 0x6b2   :  { %v10997_v57 = vpack.c.bf16 %v4789_v40, %v4789_v40  ;;  %5563 = vmatprep.subr.bf16.mxu0 %v10978_v34  ;;  %5604 = vmatprep.subr.bf16.mxu1 %v10983_v35  ;;  %v11257_v40 = vld [vmem:[#allocation6 + $0x28] ss:$16 sps:$4 sm:$0xff]  }
 0x6b3   :  { %11960 = vst [vmem:[#allocation39_spill] sm:$0xff] %v11257_v40 }
 0x6b4   :  { %5290 = vmatmul.mubr.bf16.vlgmr.msra.gmra.mxu0 %v10997_v57  ;;  %5331 = vmatmul.mubr.bf16.vlgmr.msra.gmra.mxu1 %v10997_v57 }
 0x6b5   :  { %5564 = vmatpush1.bf16.msra.mxu0 %v10990_v29  ;;  %5605 = vmatpush1.bf16.msra.mxu1 %v10995_v16 }
 0x6b6   :  { %5565 = vmatprep.subr.bf16.mxu0 %v11004_v26  ;;  %5606 = vmatprep.subr.bf16.mxu1 %v11009_v11 }
 0x6b7   :  { %5595 = vmatprep.mubr.bf16.mxu0 %v11776_v2  ;;  %5636 = vmatprep.mubr.bf16.mxu1 %v11776_v2 }
 0x6b9   :  { %5566 = vmatpush1.bf16.msra.mxu0 %v11018_v41  ;;  %5607 = vmatpush1.bf16.msra.mxu1 %v11023_v43 }
 0x6ba   :  { %5567 = vmatprep.subr.bf16.mxu0 %v11030_v32  ;;  %5608 = vmatprep.subr.bf16.mxu1 %v11035_v44 }
 0x6bd   :  { %5568 = vmatpush1.bf16.msra.mxu0 %v11044_v42  ;;  %5609 = vmatpush1.bf16.msra.mxu1 %v11049_v36 }
 0x6be   :  { %5569 = vmatprep.subr.bf16.mxu0 %v11056_v3  ;;  %5610 = vmatprep.subr.bf16.mxu1 %v11061_v38 }
 0x6c1   :  { %5570 = vmatpush1.bf16.msra.mxu0 %v11068_v45  ;;  %5611 = vmatpush1.bf16.msra.mxu1 %v11073_v46 }
 0x6c2   :  { %5571 = vmatprep.subr.bf16.mxu0 %v11080_v48  ;;  %5612 = vmatprep.subr.bf16.mxu1 %v11085_v49 }
 0x6c5   :  { %5572 = vmatpush1.bf16.msra.mxu0 %v11092_v51  ;;  %5613 = vmatpush1.bf16.msra.mxu1 %v11097_v52 }
 0x6c6   :  { %5573 = vmatprep.subr.bf16.mxu0 %v11104_v53  ;;  %5614 = vmatprep.subr.bf16.mxu1 %v11109_v13 }
 0x6c9   :  { %5574 = vmatpush1.bf16.msra.mxu0 %v11116_v54  ;;  %5615 = vmatpush1.bf16.msra.mxu1 %v11121_v55 }
 0x6ca   :  { %5575 = vmatprep.subr.bf16.mxu0 %v11128_v56  ;;  %5616 = vmatprep.subr.bf16.mxu1 %v11133_v60 }
 0x6cd   :  { %5576 = vmatpush1.bf16.msra.mxu0 %v11140_v12  ;;  %5617 = vmatpush1.bf16.msra.mxu1 %v11145_v9 }
 0x6ce   :  { %5577 = vmatprep.subr.bf16.mxu0 %v11152_v59  ;;  %5618 = vmatprep.subr.bf16.mxu1 %v11157_v19 }
 0x6d1   :  { %5578 = vmatpush1.bf16.msra.mxu0 %v11164_v20  ;;  %5619 = vmatpush1.bf16.msra.mxu1 %v11169_v25 }
 0x6d2   :  { %5898 = vmatprep.subr.bf16.mxu0 %v11179_v24  ;;  %5939 = vmatprep.subr.bf16.mxu1 %v11181_v28 }
 0x6d4   :  { %5596 = vmatmul.mubr.bf16.vlgmr.msra.gmra.mxu0 %v10997_v57  ;;  %5637 = vmatmul.mubr.bf16.vlgmr.msra.gmra.mxu1 %v10997_v57  ;;  %v11263_v57 = vld [vmem:[#allocation6 + $0x4] ss:$16 sps:$4 sm:$0xff]  }
 0x6d5   :  { %5930 = vmatprep.mubr.bf16.mxu0 %v11776_v2  ;;  %5971 = vmatprep.mubr.bf16.mxu1 %v11776_v2  ;;  %11961 = vst [vmem:[#allocation40_spill] sm:$0xff] %v11263_v57 }
 0x6d6   :  { %5899 = vmatpush1.bf16.msra.mxu0 %v11183_v27  ;;  %5940 = vmatpush1.bf16.msra.mxu1 %v11185_v21 }
 0x6d7   :  { %5900 = vmatprep.subr.bf16.mxu0 %v11191_v4  ;;  %5941 = vmatprep.subr.bf16.mxu1 %v11193_v5 }
 0x6da   :  { %5901 = vmatpush1.bf16.msra.mxu0 %v11195_v62  ;;  %5942 = vmatpush1.bf16.msra.mxu1 %v11197_v15 }
 0x6db   :  { %5902 = vmatprep.subr.bf16.mxu0 %v11203_v63  ;;  %5943 = vmatprep.subr.bf16.mxu1 %v11209_v6 }
 0x6de   :  { %5903 = vmatpush1.bf16.msra.mxu0 %v11205_v1  ;;  %5944 = vmatpush1.bf16.msra.mxu1 %v11207_v58 }
 0x6df   :  { %5904 = vmatprep.subr.bf16.mxu0 %v11215_v7  ;;  %5945 = vmatprep.subr.bf16.mxu1 %v11217_v18 }
 0x6e2   :  { %5905 = vmatpush1.bf16.msra.mxu0 %v11219_v39  ;;  %5946 = vmatpush1.bf16.msra.mxu1 %v11221_v30 }
 0x6e3   :  { %5906 = vmatprep.subr.bf16.mxu0 %v11227_v47  ;;  %5947 = vmatprep.subr.bf16.mxu1 %v11229_v61 }
 0x6e6   :  { %5907 = vmatpush1.bf16.msra.mxu0 %v11231_v22  ;;  %5948 = vmatpush1.bf16.msra.mxu1 %v11233_v23 }
 0x6e7   :  { %5908 = vmatprep.subr.bf16.mxu0 %v11239_v50  ;;  %5949 = vmatprep.subr.bf16.mxu1 %v11241_v0  ;;  %v11269_v0 = vld [vmem:[#allocation6 + $0x8] ss:$16 sps:$4 sm:$0xff]  }
 0x6e8   :  { %11964 = vst [vmem:[#allocation43_spill] sm:$0xff] %v11269_v0 }
 0x6ea   :  { %5909 = vmatpush1.bf16.msra.mxu0 %v11243_v10  ;;  %5950 = vmatpush1.bf16.msra.mxu1 %v11245_v14  ;;  %v11265_v10 = vld [vmem:[#allocation6 + $0xc] ss:$16 sps:$4 sm:$0xff]   ;;  %v11267_v14 = vld [vmem:[#allocation6] ss:$16 sps:$4 sm:$0xff]  }
 0x6eb   :  { %5910 = vmatprep.subr.bf16.mxu0 %v11251_v31  ;;  %5951 = vmatprep.subr.bf16.mxu1 %v11253_v33  ;;  %11962 = vst [vmem:[#allocation41_spill] sm:$0xff] %v11265_v10  ;;  %11963 = vst [vmem:[#allocation42_spill] sm:$0xff] %v11267_v14 }
 0x6ee   :  { %5911 = vmatpush1.bf16.msra.mxu0 %v11255_v37  ;;  %5952 = vmatpush1.bf16.msra.mxu1 %v11257_v40  ;;  %v11278_v40 = vld [vmem:[%s11632_s2 + $0xe4] ss:$16 sps:$4 sm:$0xff]   ;;  %v11283_v37 = vld [vmem:[%s11632_s2 + $0xec] ss:$16 sps:$4 sm:$0xff]  }
 0x6ef   :  { %5912 = vmatprep.subr.bf16.mxu0 %v11263_v57  ;;  %5953 = vmatprep.subr.bf16.mxu1 %v11265_v10  ;;  %11965 = vst [vmem:[#allocation44_spill] sm:$0xff] %v11278_v40  ;;  %11966 = vst [vmem:[#allocation45_spill] sm:$0xff] %v11283_v37 }
 0x6f2   :  { %5913 = vmatpush1.bf16.msra.mxu0 %v11267_v14  ;;  %5954 = vmatpush1.bf16.msra.mxu1 %v11269_v0 }
 0x6f3   :  { %6140 = vmatprep.subr.bf16.mxu0 %v11278_v40  ;;  %6181 = vmatprep.subr.bf16.mxu1 %v11283_v37 }
 0x754   :  { %v5049_v57 = vpop.f32.mrf.mxu0  ;;  %v5090_v10 = vpop.f32.mrf.mxu1 }
 0x756   :  { %v5051_v33 = vpop.f32.mrf.mxu0  ;;  %v5092_v14 = vpop.f32.mrf.mxu1 }
 0x758   :  { %v5053_v31 = vpop.f32.mrf.mxu0  ;;  %v5094_v0 = vpop.f32.mrf.mxu1 }
 0x75a   :  { %v5054_v50 = vpop.f32.mrf.mxu0  ;;  %v5095_v23 = vpop.f32.mrf.mxu1 }
 0x774   :  { %v5291_v22 = vpop.f32.mrf.mxu0  ;;  %v5332_v61 = vpop.f32.mrf.mxu1 }
 0x775   :  { %v5292_v47 = vadd.f32 %v5291_v22, %v5049_v57  ;;  %v5333_v0 = vadd.f32 %v5332_v61, %v5090_v10 }
 0x776   :  { %v5293_v30 = vpop.f32.mrf.mxu0  ;;  %v5334_v39 = vpop.f32.mrf.mxu1 }
 0x777   :  { %v7836_v18 = vmul.f32 -1.442695, %v5292_v47  ;;  %v5294_v7 = vadd.f32 %v5293_v30, %v5051_v33  ;;  %v5335_v63 = vadd.f32 %v5334_v39, %v5092_v14 }
 0x778   :  { %v5295_v58 = vpop.f32.mrf.mxu0  ;;  %v5336_v1 = vpop.f32.mrf.mxu1 }
 0x779   :  { %8814 = vpow2.f32 %v7836_v18  ;;  %v7837_v40 = vmul.f32 -1.442695, %v5294_v7  ;;  %v7838_v15 = vmul.f32 -1.442695, %v5335_v63  ;;  %v7840_v1 = vld [vmem:[%s11630_s0 + $0xc0] sm:$0xff] }
 0x77a   :  { %v5296_v37 = vpop.f32.mrf.mxu0  ;;  %v5337_v6 = vpop.f32.mrf.mxu1 }
 0x77b   :  { %8816 = vpow2.f32 %v7837_v40  ;;  %v7841_v6 = vld [vmem:[%s11630_s0 + $0xc8] sm:$0xff] }
 0x77c   :  { %8818 = vpow2.f32 %v7838_v15 }
 0x786   :  { %v8815_v31 = vpop.eup %8814 }
 0x787   :  { %v5345_v50 = vadd.f32 1.0, %v8815_v31 }
 0x788   :  { %v8817_v23 = vpop.eup %8816 }
 0x789   :  { %8820 = vrcp.f32 %v5345_v50  ;;  %v5346_v22 = vadd.f32 1.0, %v8817_v23  ;;  %v8819_v63 = vpop.eup %8818 }
 0x78a   :  { %8822 = vtanh.f32 %v5333_v0  ;;  %v5355_v33 = vadd.f32 1.0, %v8819_v63 }
 0x78b   :  { %8824 = vrcp.f32 %v5346_v22 }
 0x794   :  { %v5597_v58 = vpop.f32.mrf.mxu0  ;;  %v5638_v7 = vpop.f32.mrf.mxu1 }
 0x795   :  { %v5645_v18 = vadd.f32 %v7840_v1, %v5597_v58  ;;  %v7843_v1 = vld [vmem:[%s11630_s0 + $0xd8] sm:$0xff] }
 0x796   :  { %v8821_v39 = vpop.eup %8820  ;;  %v5599_v30 = vpop.f32.mrf.mxu0 }
 0x797   :  { %v5640_v47 = vpop.f32.mrf.mxu1  ;;  %v8823_v15 = vpop.eup %8822  ;;  %v7876_v61 = vmul.f32 -1.442695, %v5645_v18  ;;  %v5646_v10 = vadd.f32 %v7841_v6, %v5599_v30  ;;  %v7842_v6 = vld [vmem:[%s11630_s0 + $0xd0] sm:$0xff] }
 0x798   :  { %v8825_v14 = vpop.eup %8824  ;;  %v5601_v37 = vpop.f32.mrf.mxu0  ;;  %v5359_v57 = vmul.f32 %v8823_v15, %v8821_v39  ;;  %v5648_v58 = vadd.f32 %v7843_v1, %v5640_v47  ;;  %v5647_v18 = vadd.f32 %v7842_v6, %v5638_v7  ;;  %v11306_v47 = vld [vmem:[%s11632_s2 + $0xe0] ss:$16 sps:$4 sm:$0xff]   ;;  %v11362_v1 = vld [vmem:[%s11632_s2 + $0xa8] ss:$16 sps:$4 sm:$0xff]   ;;  %v11369_v6 = vld [vmem:[%s11632_s2 + $0x84] ss:$16 sps:$4 sm:$0xff]  }
 0x799   :  { %v5642_v40 = vpop.f32.mrf.mxu1  ;;  %v5358_v31 = vmul.f32 %v8825_v14, %v10929_v8  ;;  %8826 = vpow2.f32 %v7876_v61  ;;  %v7877_v0 = vmul.f32 -1.442695, %v5646_v10  ;;  %v11316_v37 = vld [vmem:[%s11632_s2 + $0xc4] ss:$16 sps:$4 sm:$0xff]   ;;  %11967 = vst [vmem:[#allocation46_spill] sm:$0xff] %v11362_v1 }
 0x79a   :  { %v5602_v50 = vpop.f32.mrf.mxu0  ;;  %v7878_v8 = vmul.f32 -1.442695, %v5648_v58  ;;  %v11321_v40 = vld [vmem:[%s11632_s2 + $0xcc] ss:$16 sps:$4 sm:$0xff]  }
 0x79b   :  { %v5643_v23 = vpop.f32.mrf.mxu1  ;;  %v11294_v22 = vadd.f32 %v5359_v57, %v5358_v31  ;;  %8828 = vpow2.f32 %v7877_v0  ;;  %v11331_v57 = vld [vmem:[%s11632_s2 + $0xc0] ss:$16 sps:$4 sm:$0xff]   ;;  %v11336_v31 = vld [vmem:[%s11632_s2 + $0xc8] ss:$16 sps:$4 sm:$0xff]   ;;  %v11343_v0 = vld [vmem:[%s11632_s2 + $0xa4] ss:$16 sps:$4 sm:$0xff]  }
 0x79c   :  { %8830 = vrcp.f32 %v5355_v33  ;;  %v11311_v33 = vld [vmem:[%s11632_s2 + $0xe8] ss:$16 sps:$4 sm:$0xff]   ;;  %v11348_v50 = vld [vmem:[%s11632_s2 + $0xac] ss:$16 sps:$4 sm:$0xff]   ;;  %v11357_v23 = vld [vmem:[%s11632_s2 + $0xa0] ss:$16 sps:$4 sm:$0xff]  }
 0x79d   :  { %8832 = vtanh.f32 %v11294_v22 }
 0x79e   :  { %8834 = vpow2.f32 %v7878_v8  ;;  %v11374_v8 = vld [vmem:[%s11632_s2 + $0x8c] ss:$16 sps:$4 sm:$0xff]  }
 0x7a6   :  { %v8827_v63 = vpop.eup %8826 }
 0x7a7   :  { %v5655_v39 = vadd.f32 1.0, %v8827_v63 }
 0x7a8   :  { %v8829_v30 = vpop.eup %8828 }
 0x7a9   :  { %v8831_v15 = vpop.eup %8830  ;;  %8836 = vrcp.f32 %v5655_v39  ;;  %v5656_v61 = vadd.f32 1.0, %v8829_v30 }
 0x7aa   :  { %v8833_v10 = vpop.eup %8832  ;;  %8838 = vtanh.f32 %v5647_v18 }
 0x7ab   :  { %8840 = vrcp.f32 %v5656_v61  ;;  %v5362_v14 = vmul.f32 %v8833_v10, %v8831_v15  ;;  %v8835_v58 = vpop.eup %8834  ;;  %v11381_v15 = vld [vmem:[%s11632_s2 + $0x80] ss:$16 sps:$4 sm:$0xff]   ;;  %v11386_v61 = vld [vmem:[%s11632_s2 + $0x88] ss:$16 sps:$4 sm:$0xff]  }
 0x7ac   :  { %v5665_v30 = vadd.f32 1.0, %v8835_v58  ;;  %v11399_v58 = vld [vmem:[%s11632_s2 + $0x6c] ss:$16 sps:$4 sm:$0xff]  }
 0x7ad   :  { %v5363_v7 = vpack.c.bf16 %v5362_v14, %v5362_v14  ;;  %11969 = vst [vmem:[#allocation48_spill] sm:$0xff] %v11399_v58 }
 0x7ae   :  { %8842 = vrcp.f32 %v5665_v30  ;;  %v11433_v30 = vld [vmem:[%s11632_s2 + $0x40] ss:$16 sps:$4 sm:$0xff]  }
 0x7af   :  { %7839 = vst [vmem:[%s11638_s8 + $0x14] sm:$0xf] %v5363_v7  ;;  %5931 = vmatmul.mubr.bf16.vlgmr.msra.gmra.mxu0 %v5363_v7  ;;  %5972 = vmatmul.mubr.bf16.vlgmr.msra.gmra.mxu1 %v5363_v7  ;;  %v11394_v7 = vld [vmem:[%s11632_s2 + $0x64] ss:$16 sps:$4 sm:$0xff]   ;;  %11974 = vst [vmem:[#allocation53_spill] sm:$0xff] %v11433_v30 }
 0x7b0   :  { %6141 = vmatpush1.bf16.msra.mxu0 %v11306_v47  ;;  %6182 = vmatpush1.bf16.msra.mxu1 %v11311_v33  ;;  %11968 = vst [vmem:[#allocation47_spill] sm:$0xff] %v11394_v7 }
 0x7b1   :  { %6142 = vmatprep.subr.bf16.mxu0 %v11316_v37  ;;  %6183 = vmatprep.subr.bf16.mxu1 %v11321_v40 }
 0x7b2   :  { %6172 = vmatprep.mubr.bf16.mxu0 %v11776_v2  ;;  %6213 = vmatprep.mubr.bf16.mxu1 %v11776_v2 }
 0x7b4   :  { %6143 = vmatpush1.bf16.msra.mxu0 %v11331_v57  ;;  %6184 = vmatpush1.bf16.msra.mxu1 %v11336_v31 }
 0x7b5   :  { %6144 = vmatprep.subr.bf16.mxu0 %v11343_v0  ;;  %6185 = vmatprep.subr.bf16.mxu1 %v11348_v50 }
 0x7b6   :  { %v8837_v63 = vpop.eup %8836 }
 0x7b7   :  { %v8839_v18 = vpop.eup %8838 }
 0x7b8   :  { %v8841_v39 = vpop.eup %8840  ;;  %6145 = vmatpush1.bf16.msra.mxu0 %v11357_v23  ;;  %6186 = vmatpush1.bf16.msra.mxu1 %v11362_v1  ;;  %v5669_v10 = vmul.f32 %v8839_v18, %v8837_v63  ;;  %v11413_v63 = vld [vmem:[%s11632_s2 + $0x68] ss:$16 sps:$4 sm:$0xff]   ;;  %v11420_v18 = vld [vmem:[%s11632_s2 + $0x44] ss:$16 sps:$4 sm:$0xff]  }
 0x7b9   :  { %v5668_v14 = vmul.f32 %v8841_v39, %v10956_v17  ;;  %6146 = vmatprep.subr.bf16.mxu0 %v11369_v6  ;;  %6187 = vmatprep.subr.bf16.mxu1 %v11374_v8  ;;  %v11408_v17 = vld [vmem:[%s11632_s2 + $0x60] ss:$16 sps:$4 sm:$0xff]   ;;  %11971 = vst [vmem:[#allocation50_spill] sm:$0xff] %v11413_v63  ;;  %11972 = vst [vmem:[#allocation51_spill] sm:$0xff] %v11420_v18  ;;  %v11425_v39 = vld [vmem:[%s11632_s2 + $0x4c] ss:$16 sps:$4 sm:$0xff]  }
 0x7ba   :  { %11970 = vst [vmem:[#allocation49_spill] sm:$0xff] %v11408_v17  ;;  %11973 = vst [vmem:[#allocation52_spill] sm:$0xff] %v11425_v39 }
 0x7bb   :  { %v11401_v1 = vadd.f32 %v5669_v10, %v5668_v14  ;;  %v11438_v10 = vld [vmem:[%s11632_s2 + $0x48] ss:$16 sps:$4 sm:$0xff]   ;;  %v11445_v14 = vld [vmem:[%s11632_s2 + $0x24] ss:$16 sps:$4 sm:$0xff]  }
 0x7bc   :  { %6147 = vmatpush1.bf16.msra.mxu0 %v11381_v15  ;;  %6188 = vmatpush1.bf16.msra.mxu1 %v11386_v61  ;;  %11975 = vst [vmem:[#allocation54_spill] sm:$0xff] %v11438_v10  ;;  %11976 = vst [vmem:[#allocation55_spill] sm:$0xff] %v11445_v14 }
 0x7bd   :  { %6148 = vmatprep.subr.bf16.mxu0 %v11394_v7  ;;  %6189 = vmatprep.subr.bf16.mxu1 %v11399_v58  ;;  %8844 = vtanh.f32 %v11401_v1 }
 0x7c0   :  { %6149 = vmatpush1.bf16.msra.mxu0 %v11408_v17  ;;  %6190 = vmatpush1.bf16.msra.mxu1 %v11413_v63  ;;  %v11450_v63 = vld [vmem:[%s11632_s2 + $0x2c] ss:$16 sps:$4 sm:$0xff]   ;;  %v8843_v17 = vpop.eup %8842 }
 0x7c1   :  { %6150 = vmatprep.subr.bf16.mxu0 %v11420_v18  ;;  %6191 = vmatprep.subr.bf16.mxu1 %v11425_v39  ;;  %11977 = vst [vmem:[#allocation56_spill] sm:$0xff] %v11450_v63  ;;  %v11457_v18 = vld [vmem:[%s11632_s2 + $0x20] ss:$16 sps:$4 sm:$0xff]   ;;  %v11462_v39 = vld [vmem:[%s11632_s2 + $0x28] ss:$16 sps:$4 sm:$0xff]  }
 0x7c2   :  { %11978 = vst [vmem:[#allocation57_spill] sm:$0xff] %v11462_v39 }
 0x7c4   :  { %6151 = vmatpush1.bf16.msra.mxu0 %v11433_v30  ;;  %6192 = vmatpush1.bf16.msra.mxu1 %v11438_v10  ;;  %v11469_v30 = vld [vmem:[%s11632_s2 + $0x4] ss:$16 sps:$4 sm:$0xff]   ;;  %v11474_v10 = vld [vmem:[%s11632_s2 + $0xc] ss:$16 sps:$4 sm:$0xff]  }
 0x7c5   :  { %6152 = vmatprep.subr.bf16.mxu0 %v11445_v14  ;;  %6193 = vmatprep.subr.bf16.mxu1 %v11450_v63  ;;  %v11481_v14 = vld [vmem:[%s11632_s2] ss:$16 sps:$4 sm:$0xff]   ;;  %v11486_v63 = vld [vmem:[%s11632_s2 + $0x8] ss:$16 sps:$4 sm:$0xff]  }
 0x7c8   :  { %6153 = vmatpush1.bf16.msra.mxu0 %v11457_v18  ;;  %6194 = vmatpush1.bf16.msra.mxu1 %v11462_v39 }
 0x7c9   :  { %6154 = vmatprep.subr.bf16.mxu0 %v11469_v30  ;;  %6195 = vmatprep.subr.bf16.mxu1 %v11474_v10 }
 0x7ca   :  { %v8845_v58 = vpop.eup %8844 }
 0x7cb   :  { %v5672_v7 = vmul.f32 %v8845_v58, %v8843_v17 }
 0x7cc   :  { %6155 = vmatpush1.bf16.msra.mxu0 %v11481_v14  ;;  %6196 = vmatpush1.bf16.msra.mxu1 %v11486_v63 }
 0x7cd   :  { %6446 = vmatprep.subr.bf16.mxu0 %v10978_v34  ;;  %6487 = vmatprep.subr.bf16.mxu1 %v10983_v35  ;;  %v5673_v39 = vpack.c.bf16 %v5672_v7, %v5672_v7  ;;  %v11979_v34 = vld [vmem:[#allocation20_spill] sm:$0xff]  ;;  %v11980_v35 = vld [vmem:[#allocation19_spill] sm:$0xff] }
 0x7cf   :  { %6173 = vmatmul.mubr.bf16.vlgmr.msra.gmra.mxu0 %v5673_v39  ;;  %6214 = vmatmul.mubr.bf16.vlgmr.msra.gmra.mxu1 %v5673_v39 }
 0x7d0   :  { %6447 = vmatpush1.bf16.msra.mxu0 %v10990_v29  ;;  %6488 = vmatpush1.bf16.msra.mxu1 %v10995_v16  ;;  %v11981_v29 = vld [vmem:[#allocation21_spill] sm:$0xff]  ;;  %v11982_v16 = vld [vmem:[#allocation22_spill] sm:$0xff] }
 0x7d1   :  { %6448 = vmatprep.subr.bf16.mxu0 %v11004_v26  ;;  %6489 = vmatprep.subr.bf16.mxu1 %v11009_v11  ;;  %v11983_v26 = vld [vmem:[#allocation23_spill] sm:$0xff]  ;;  %v11984_v11 = vld [vmem:[#allocation24_spill] sm:$0xff] }
 0x7d2   :  { %6478 = vmatprep.mubr.bf16.mxu0 %v11776_v2  ;;  %6519 = vmatprep.mubr.bf16.mxu1 %v11776_v2 }
 0x7d4   :  { %6449 = vmatpush1.bf16.msra.mxu0 %v11018_v41  ;;  %6490 = vmatpush1.bf16.msra.mxu1 %v11023_v43  ;;  %v11985_v41 = vld [vmem:[#allocation25_spill] sm:$0xff]  ;;  %v11986_v43 = vld [vmem:[#allocation26_spill] sm:$0xff] }
 0x7d5   :  { %6450 = vmatprep.subr.bf16.mxu0 %v11030_v32  ;;  %6491 = vmatprep.subr.bf16.mxu1 %v11035_v44  ;;  %v11987_v32 = vld [vmem:[#allocation27_spill] sm:$0xff]  ;;  %v11988_v44 = vld [vmem:[#allocation28_spill] sm:$0xff] }
 0x7d8   :  { %6451 = vmatpush1.bf16.msra.mxu0 %v11044_v42  ;;  %6492 = vmatpush1.bf16.msra.mxu1 %v11049_v36  ;;  %v11989_v42 = vld [vmem:[#allocation29_spill] sm:$0xff]  ;;  %v11990_v36 = vld [vmem:[#allocation30_spill] sm:$0xff] }
 0x7d9   :  { %6452 = vmatprep.subr.bf16.mxu0 %v11056_v3  ;;  %6493 = vmatprep.subr.bf16.mxu1 %v11061_v38  ;;  %v11991_v3 = vld [vmem:[#allocation31_spill] sm:$0xff]  ;;  %v11992_v38 = vld [vmem:[#allocation32_spill] sm:$0xff] }
 0x7dc   :  { %6453 = vmatpush1.bf16.msra.mxu0 %v11068_v45  ;;  %6494 = vmatpush1.bf16.msra.mxu1 %v11073_v46  ;;  %v11993_v45 = vld [vmem:[#allocation33_spill] sm:$0xff]  ;;  %v11994_v46 = vld [vmem:[#allocation34_spill] sm:$0xff] }
 0x7dd   :  { %6454 = vmatprep.subr.bf16.mxu0 %v11080_v48  ;;  %6495 = vmatprep.subr.bf16.mxu1 %v11085_v49  ;;  %v11995_v48 = vld [vmem:[#allocation35_spill] sm:$0xff]  ;;  %v11996_v49 = vld [vmem:[#allocation36_spill] sm:$0xff] }
 0x7e0   :  { %6455 = vmatpush1.bf16.msra.mxu0 %v11092_v51  ;;  %6496 = vmatpush1.bf16.msra.mxu1 %v11097_v52  ;;  %v11997_v51 = vld [vmem:[#allocation37_spill] sm:$0xff]  ;;  %v11998_v52 = vld [vmem:[#allocation38_spill] sm:$0xff] }
 0x7e1   :  { %6456 = vmatprep.subr.bf16.mxu0 %v11104_v53  ;;  %6497 = vmatprep.subr.bf16.mxu1 %v11109_v13  ;;  %v11999_v53 = vld [vmem:[#allocation39_spill] sm:$0xff]  ;;  %v12000_v13 = vld [vmem:[#allocation40_spill] sm:$0xff] }
 0x7e4   :  { %6457 = vmatpush1.bf16.msra.mxu0 %v11116_v54  ;;  %6498 = vmatpush1.bf16.msra.mxu1 %v11121_v55  ;;  %v12001_v54 = vld [vmem:[#allocation41_spill] sm:$0xff]  ;;  %v12002_v55 = vld [vmem:[#allocation42_spill] sm:$0xff] }
 0x7e5   :  { %6458 = vmatprep.subr.bf16.mxu0 %v11128_v56  ;;  %6499 = vmatprep.subr.bf16.mxu1 %v11133_v60  ;;  %v12003_v56 = vld [vmem:[#allocation43_spill] sm:$0xff]  ;;  %v12004_v60 = vld [vmem:[#allocation44_spill] sm:$0xff] }
 0x7e8   :  { %6459 = vmatpush1.bf16.msra.mxu0 %v11140_v12  ;;  %6500 = vmatpush1.bf16.msra.mxu1 %v11145_v9  ;;  %v12005_v12 = vld [vmem:[#allocation45_spill] sm:$0xff] }
 0x7e9   :  { %6460 = vmatprep.subr.bf16.mxu0 %v11152_v59  ;;  %6501 = vmatprep.subr.bf16.mxu1 %v11157_v19 }
 0x7ec   :  { %6461 = vmatpush1.bf16.msra.mxu0 %v11164_v20  ;;  %6502 = vmatpush1.bf16.msra.mxu1 %v11169_v25 }
 0x7ed   :  { %6781 = vmatprep.subr.bf16.mxu0 %v11179_v24  ;;  %6822 = vmatprep.subr.bf16.mxu1 %v11181_v28 }
 0x7ef   :  { %6479 = vmatmul.mubr.bf16.vlgmr.msra.gmra.mxu0 %v5673_v39  ;;  %6520 = vmatmul.mubr.bf16.vlgmr.msra.gmra.mxu1 %v5673_v39 }
 0x7f0   :  { %6782 = vmatpush1.bf16.msra.mxu0 %v11183_v27  ;;  %6823 = vmatpush1.bf16.msra.mxu1 %v11185_v21 }
 0x7f1   :  { %6783 = vmatprep.subr.bf16.mxu0 %v11191_v4  ;;  %6824 = vmatprep.subr.bf16.mxu1 %v11193_v5 }
 0x7f2   :  { %6813 = vmatprep.mubr.bf16.mxu0 %v11776_v2  ;;  %6854 = vmatprep.mubr.bf16.mxu1 %v11776_v2 }
 0x7f4   :  { %6784 = vmatpush1.bf16.msra.mxu0 %v11195_v62  ;;  %6825 = vmatpush1.bf16.msra.mxu1 %v11979_v34 }
 0x7f5   :  { %6785 = vmatprep.subr.bf16.mxu0 %v11980_v35  ;;  %6826 = vmatprep.subr.bf16.mxu1 %v11981_v29 }
 0x7f8   :  { %6786 = vmatpush1.bf16.msra.mxu0 %v11982_v16  ;;  %6827 = vmatpush1.bf16.msra.mxu1 %v11983_v26 }
 0x7f9   :  { %6787 = vmatprep.subr.bf16.mxu0 %v11984_v11  ;;  %6828 = vmatprep.subr.bf16.mxu1 %v11985_v41 }
 0x7fc   :  { %6788 = vmatpush1.bf16.msra.mxu0 %v11986_v43  ;;  %6829 = vmatpush1.bf16.msra.mxu1 %v11987_v32 }
 0x7fd   :  { %6789 = vmatprep.subr.bf16.mxu0 %v11988_v44  ;;  %6830 = vmatprep.subr.bf16.mxu1 %v11989_v42 }
 0x800   :  { %6790 = vmatpush1.bf16.msra.mxu0 %v11990_v36  ;;  %6831 = vmatpush1.bf16.msra.mxu1 %v11991_v3  ;;  %v7947_v36 = vld [vmem:[%s11630_s0 + $0xe0] sm:$0xff] }
 0x801   :  { %6791 = vmatprep.subr.bf16.mxu0 %v11992_v38  ;;  %6832 = vmatprep.subr.bf16.mxu1 %v11993_v45  ;;  %v7948_v45 = vld [vmem:[%s11630_s0 + $0xe8] sm:$0xff] }
 0x804   :  { %6792 = vmatpush1.bf16.msra.mxu0 %v11994_v46  ;;  %6833 = vmatpush1.bf16.msra.mxu1 %v11995_v48 }
 0x805   :  { %6793 = vmatprep.subr.bf16.mxu0 %v11996_v49  ;;  %6834 = vmatprep.subr.bf16.mxu1 %v11997_v51 }
 0x808   :  { %6794 = vmatpush1.bf16.msra.mxu0 %v11998_v52  ;;  %6835 = vmatpush1.bf16.msra.mxu1 %v11999_v53 }
 0x809   :  { %6795 = vmatprep.subr.bf16.mxu0 %v12000_v13  ;;  %6836 = vmatprep.subr.bf16.mxu1 %v12001_v54 }
 0x80c   :  { %6796 = vmatpush1.bf16.msra.mxu0 %v12002_v55  ;;  %6837 = vmatpush1.bf16.msra.mxu1 %v12003_v56 }
 0x80d   :  { %7023 = vmatprep.subr.bf16.mxu0 %v12004_v60  ;;  %7064 = vmatprep.subr.bf16.mxu1 %v12005_v12 }
 0x86f   :  { %v5932_v9 = vpop.f32.mrf.mxu0  ;;  %v5973_v59 = vpop.f32.mrf.mxu1 }
 0x871   :  { %v5934_v19 = vpop.f32.mrf.mxu0  ;;  %v5975_v20 = vpop.f32.mrf.mxu1 }
 0x873   :  { %v5936_v25 = vpop.f32.mrf.mxu0  ;;  %v5977_v24 = vpop.f32.mrf.mxu1 }
 0x875   :  { %v5937_v28 = vpop.f32.mrf.mxu0  ;;  %v5978_v27 = vpop.f32.mrf.mxu1 }
 0x876   :  { %v7950_v28 = vld [vmem:[%s11630_s0 + $0xf8] sm:$0xff] }
 0x88f   :  { %v6174_v21 = vpop.f32.mrf.mxu0  ;;  %v6215_v4 = vpop.f32.mrf.mxu1 }
 0x890   :  { %v6175_v5 = vadd.f32 %v6174_v21, %v5932_v9  ;;  %v6216_v43 = vadd.f32 %v6215_v4, %v5973_v59  ;;  %v7949_v21 = vld [vmem:[%s11630_s0 + $0xf0] sm:$0xff]  ;;  %s9048_s0 = smov [#allocation10]  }
 0x891   :  { %v6176_v62 = vpop.f32.mrf.mxu0  ;;  %v6217_v7 = vpop.f32.mrf.mxu1  ;;  %s7161_s19 = sshll.u32 %s9048_s0, 4  ;;  %s7162_s19 = int_to_ptr.vmem [resolvable:$true] %s7161_s19 }
 0x892   :  { %v7943_v58 = vmul.f32 -1.442695, %v6175_v5  ;;  %v6177_v17 = vadd.f32 %v6176_v62, %v5934_v19  ;;  %v6218_v26 = vadd.f32 %v6217_v7, %v5975_v20  ;;  %s8956_s21 = scalar_lea.vmem %s7162_s19, 128  ;;  %p8961_p6 = scmp.lt.s32.totalorder %s7162_s19, %s7162_s19 }
 0x893   :  { %v6178_v39 = vpop.f32.mrf.mxu0  ;;  %v6219_v34 = vpop.f32.mrf.mxu1  ;;  %p8957_p5 = scmp.ne.s32.totalorder %s7162_s19, %s8956_s21  ;;  %p8962_p7 = scmp.lt.s32.totalorder %s8956_s21, %s8956_s21 }
 0x894   :  { %8846 = vpow2.f32 %v7943_v58  ;;  %v7944_v35 = vmul.f32 -1.442695, %v6177_v17  ;;  %v7945_v11 = vmul.f32 -1.442695, %v6218_v26 }
 0x895   :  { %v6179_v29 = vpop.f32.mrf.mxu0  ;;  %v6220_v16 = vpop.f32.mrf.mxu1  ;;  %p8963_p8 = por %p8962_p7, %p8961_p6 }
 0x896   :  { %8848 = vpow2.f32 %v7944_v35 }
 0x897   :  { %8850 = vpow2.f32 %v7945_v11  ;;  %v12014_v11 = vld [vmem:[#allocation54_spill] sm:$0xff]  ;;  %p8964_p9 = pnand %p8963_p8, %p8957_p5 }
 0x8a1   :  { %v8847_v41 = vpop.eup %8846 }
 0x8a2   :  { %v6228_v32 = vadd.f32 1.0, %v8847_v41  ;;  %v12017_v41 = vld [vmem:[#allocation57_spill] sm:$0xff] }
 0x8a3   :  { %v8849_v44 = vpop.eup %8848 }
 0x8a4   :  { %8852 = vrcp.f32 %v6228_v32  ;;  %v6229_v42 = vadd.f32 1.0, %v8849_v44  ;;  %v8851_v46 = vpop.eup %8850 }
 0x8a5   :  { %8854 = vtanh.f32 %v6216_v43  ;;  %v6238_v56 = vadd.f32 1.0, %v8851_v46 }
 0x8a6   :  { %8856 = vrcp.f32 %v6229_v42 }
 0x8af   :  { %v6480_v3 = vpop.f32.mrf.mxu0  ;;  %v6521_v38 = vpop.f32.mrf.mxu1 }
 0x8b0   :  { %v6528_v48 = vadd.f32 %v7947_v36, %v6480_v3  ;;  %v6530_v5 = vadd.f32 %v7949_v21, %v6521_v38 }
 0x8b1   :  { %v8853_v49 = vpop.eup %8852  ;;  %v6482_v51 = vpop.f32.mrf.mxu0 }
 0x8b2   :  { %v6523_v52 = vpop.f32.mrf.mxu1  ;;  %v8855_v53 = vpop.eup %8854  ;;  %v7983_v13 = vmul.f32 -1.442695, %v6528_v48  ;;  %v6529_v54 = vadd.f32 %v7948_v45, %v6482_v51 }
 0x8b3   :  { %v8857_v55 = vpop.eup %8856  ;;  %v6484_v60 = vpop.f32.mrf.mxu0  ;;  %v6242_v9 = vmul.f32 %v8855_v53, %v8853_v49  ;;  %v6531_v27 = vadd.f32 %v7950_v28, %v6523_v52 }
 0x8b4   :  { %v6525_v12 = vpop.f32.mrf.mxu1  ;;  %v6241_v59 = vmul.f32 %v8857_v55, %v11294_v22  ;;  %8858 = vpow2.f32 %v7983_v13  ;;  %v7984_v19 = vmul.f32 -1.442695, %v6529_v54 }
 0x8b5   :  { %v6485_v20 = vpop.f32.mrf.mxu0  ;;  %v7985_v22 = vmul.f32 -1.442695, %v6531_v27 }
 0x8b6   :  { %v6526_v25 = vpop.f32.mrf.mxu1  ;;  %v11569_v24 = vadd.f32 %v6242_v9, %v6241_v59  ;;  %8860 = vpow2.f32 %v7984_v19 }
 0x8b7   :  { %8862 = vrcp.f32 %v6238_v56 }
 0x8b8   :  { %8864 = vtanh.f32 %v11569_v24 }
 0x8b9   :  { %8866 = vpow2.f32 %v7985_v22 }
 0x8c1   :  { %v8859_v4 = vpop.eup %8858 }
 0x8c2   :  { %v6538_v62 = vadd.f32 1.0, %v8859_v4 }
 0x8c3   :  { %v8861_v7 = vpop.eup %8860 }
 0x8c4   :  { %v8863_v58 = vpop.eup %8862  ;;  %8868 = vrcp.f32 %v6538_v62  ;;  %v6539_v17 = vadd.f32 1.0, %v8861_v7 }
 0x8c5   :  { %v8865_v39 = vpop.eup %8864  ;;  %8870 = vtanh.f32 %v6530_v5 }
 0x8c6   :  { %8872 = vrcp.f32 %v6539_v17  ;;  %v6245_v34 = vmul.f32 %v8865_v39, %v8863_v58  ;;  %v8867_v29 = vpop.eup %8866 }
 0x8c7   :  { %v6548_v26 = vadd.f32 1.0, %v8867_v29 }
 0x8c8   :  { %v6246_v35 = vpack.c.bf16 %v6245_v34, %v6245_v34 }
 0x8c9   :  { %8874 = vrcp.f32 %v6548_v26 }
 0x8ca   :  { %7946 = vst [vmem:[%s11638_s8 + $0x18] sm:$0xf] %v6246_v35  ;;  %6814 = vmatmul.mubr.bf16.vlgmr.msra.gmra.mxu0 %v6246_v35  ;;  %6855 = vmatmul.mubr.bf16.vlgmr.msra.gmra.mxu1 %v6246_v35 }
 0x8cb   :  { %7024 = vmatpush1.bf16.msra.mxu0 %v11306_v47  ;;  %7065 = vmatpush1.bf16.msra.mxu1 %v11311_v33 }
 0x8cc   :  { %7025 = vmatprep.subr.bf16.mxu0 %v11316_v37  ;;  %7066 = vmatprep.subr.bf16.mxu1 %v11321_v40  ;;  %v12006_v37 = vld [vmem:[#allocation46_spill] sm:$0xff] }
 0x8cd   :  { %7055 = vmatprep.mubr.bf16.mxu0 %v11776_v2  ;;  %7096 = vmatprep.mubr.bf16.mxu1 %v11776_v2 }
 0x8cf   :  { %7026 = vmatpush1.bf16.msra.mxu0 %v11331_v57  ;;  %7067 = vmatpush1.bf16.msra.mxu1 %v11336_v31  ;;  %v12007_v31 = vld [vmem:[#allocation47_spill] sm:$0xff] }
 0x8d0   :  { %7027 = vmatprep.subr.bf16.mxu0 %v11343_v0  ;;  %7068 = vmatprep.subr.bf16.mxu1 %v11348_v50  ;;  %v12008_v0 = vld [vmem:[#allocation48_spill] sm:$0xff]  ;;  %v12009_v50 = vld [vmem:[#allocation49_spill] sm:$0xff] }
 0x8d1   :  { %v8869_v47 = vpop.eup %8868 }
 0x8d2   :  { %v8871_v16 = vpop.eup %8870 }
 0x8d3   :  { %v8873_v33 = vpop.eup %8872  ;;  %7028 = vmatpush1.bf16.msra.mxu0 %v11357_v23  ;;  %7069 = vmatpush1.bf16.msra.mxu1 %v12006_v37  ;;  %v6552_v40 = vmul.f32 %v8871_v16, %v8869_v47  ;;  %v12010_v23 = vld [vmem:[#allocation50_spill] sm:$0xff] }
 0x8d4   :  { %v6551_v2 = vmul.f32 %v8873_v33, %v11401_v1  ;;  %7029 = vmatprep.subr.bf16.mxu0 %v11369_v6  ;;  %7070 = vmatprep.subr.bf16.mxu1 %v11374_v8  ;;  %v12011_v1 = vld [vmem:[#allocation51_spill] sm:$0xff]  ;;  %v12012_v6 = vld [vmem:[#allocation52_spill] sm:$0xff]  ;;  %v12013_v8 = vld [vmem:[#allocation53_spill] sm:$0xff] }
 0x8d6   :  { %v6553_v57 = vadd.f32 %v6552_v40, %v6551_v2  ;;  %v8875_v43 = vpop.eup %8874 }
 0x8d7   :  { %7030 = vmatpush1.bf16.msra.mxu0 %v11381_v15  ;;  %7071 = vmatpush1.bf16.msra.mxu1 %v11386_v61  ;;  %v12015_v15 = vld [vmem:[#allocation55_spill] sm:$0xff]  ;;  %v12016_v61 = vld [vmem:[#allocation56_spill] sm:$0xff] }
 0x8d8   :  { %7140 = vst [vmem:[#allocation10] sm:$0xff] %v6553_v57  ;;  %7031 = vmatprep.subr.bf16.mxu0 %v12007_v31  ;;  %7072 = vmatprep.subr.bf16.mxu1 %v12008_v0  ;;  %8876 = vtanh.f32 %v6553_v57 }
 0x8db   :  { %7032 = vmatpush1.bf16.msra.mxu0 %v12009_v50  ;;  %7073 = vmatpush1.bf16.msra.mxu1 %v12010_v23 }
 0x8dc   :  { %7033 = vmatprep.subr.bf16.mxu0 %v12011_v1  ;;  %7074 = vmatprep.subr.bf16.mxu1 %v12012_v6 }
 0x8df   :  { %7034 = vmatpush1.bf16.msra.mxu0 %v12013_v8  ;;  %7075 = vmatpush1.bf16.msra.mxu1 %v12014_v11 }
 0x8e0   :  { %7035 = vmatprep.subr.bf16.mxu0 %v12015_v15  ;;  %7076 = vmatprep.subr.bf16.mxu1 %v12016_v61 }
 0x8e3   :  { %7036 = vmatpush1.bf16.msra.mxu0 %v11457_v18  ;;  %7077 = vmatpush1.bf16.msra.mxu1 %v12017_v41 }
 0x8e4   :  { %7037 = vmatprep.subr.bf16.mxu0 %v11469_v30  ;;  %7078 = vmatprep.subr.bf16.mxu1 %v11474_v10 }
 0x8e5   :  { %v8877_v32 = vpop.eup %8876 }
 0x8e6   :  { %v6555_v44 = vmul.f32 %v8877_v32, %v8875_v43 }
 0x8e7   :  { %7038 = vmatpush1.bf16.msra.mxu0 %v11481_v14  ;;  %7079 = vmatpush1.bf16.msra.mxu1 %v11486_v63 }
 0x8e8   :  { %v6556_v42 = vpack.c.bf16 %v6555_v44, %v6555_v44  ;;  %7139 = vst [vmem:[#allocation9] sm:$0xff] %v6555_v44 }
 0x8ea   :  { %7056 = vmatmul.mubr.bf16.vlgmr.msra.gmra.mxu0 %v6556_v42  ;;  %7097 = vmatmul.mubr.bf16.vlgmr.msra.gmra.mxu1 %v6556_v42 }
 0x8eb   :  { %8967 = shalt.err (!%p8964_p9)
}
 0x8ec   :  { %7164 = dma.vmem_to_hbm [thread:$0]  %s7162_s19, 128, %s11640_s10, [#allocation11]  }
 0x8ed   :  { %s8976_s24 = scalar_lea.vmem %s7152_s6, 128  ;;  %p8981_p11 = scmp.lt.s32.totalorder %s7152_s6, %s7152_s6 }
 0x8ee   :  { %p8977_p10 = scmp.ne.s32.totalorder %s7152_s6, %s8976_s24  ;;  %p8982_p12 = scmp.lt.s32.totalorder %s8976_s24, %s8976_s24 }
 0x8f0   :  { %p8983_p13 = por %p8982_p12, %p8981_p11 }
 0x8f2   :  { %p8984_p0 = pnand %p8983_p13, %p8977_p10 }
 0x8f4   :  { %8987 = shalt.err (!%p8984_p0)
}
 0x8f5   :  { %7154 = dma.vmem_to_hbm [thread:$0]  %s7152_s6, 128, %s11639_s9, [#allocation8]  }
 0x8f6   :  { %s9050_s9 = smov [#allocation13]  }
 0x8f7   :  { %s7181_s10 = sshll.u32 %s9050_s9, 4  ;;  %s7182_s10 = int_to_ptr.vmem [resolvable:$true] %s7181_s10 }
 0x8f8   :  { %s8996_s27 = scalar_lea.vmem %s7182_s10, 128  ;;  %p9001_p2 = scmp.lt.s32.totalorder %s7182_s10, %s7182_s10 }
 0x8f9   :  { %p8997_p1 = scmp.ne.s32.totalorder %s7182_s10, %s8996_s27  ;;  %p9002_p3 = scmp.lt.s32.totalorder %s8996_s27, %s8996_s27 }
 0x8fb   :  { %p9003_p4 = por %p9002_p3, %p9001_p2 }
 0x8fd   :  { %p9004_p5 = pnand %p9003_p4, %p8997_p1 }
 0x98a   :  { %v6815_v63 = vpop.f32.mrf.mxu0  ;;  %v6856_v18 = vpop.f32.mrf.mxu1 }
 0x98c   :  { %v6817_v30 = vpop.f32.mrf.mxu0  ;;  %v6858_v10 = vpop.f32.mrf.mxu1 }
 0x98e   :  { %v6819_v14 = vpop.f32.mrf.mxu0  ;;  %v6860_v36 = vpop.f32.mrf.mxu1 }
 0x990   :  { %v6820_v3 = vpop.f32.mrf.mxu0  ;;  %v6861_v38 = vpop.f32.mrf.mxu1 }
 0x9aa   :  { %v7057_v45 = vpop.f32.mrf.mxu0  ;;  %v7098_v46 = vpop.f32.mrf.mxu1 }
 0x9ab   :  { %v7058_v48 = vadd.f32 %v7057_v45, %v6815_v63  ;;  %v7099_v19 = vadd.f32 %v7098_v46, %v6856_v18 }
 0x9ac   :  { %v7059_v49 = vpop.f32.mrf.mxu0  ;;  %v7100_v51 = vpop.f32.mrf.mxu1 }
 0x9ad   :  { %v8050_v52 = vmul.f32 -1.442695, %v7058_v48  ;;  %v7060_v53 = vadd.f32 %v7059_v49, %v6817_v30  ;;  %v7101_v12 = vadd.f32 %v7100_v51, %v6858_v10 }
 0x9ae   :  { %v7061_v13 = vpop.f32.mrf.mxu0  ;;  %v7102_v54 = vpop.f32.mrf.mxu1 }
 0x9af   :  { %8878 = vpow2.f32 %v8050_v52  ;;  %v8051_v55 = vmul.f32 -1.442695, %v7060_v53  ;;  %v8052_v9 = vmul.f32 -1.442695, %v7101_v12 }
 0x9b0   :  { %v7062_v56 = vpop.f32.mrf.mxu0  ;;  %v7103_v60 = vpop.f32.mrf.mxu1 }
 0x9b1   :  { %8880 = vpow2.f32 %v8051_v55 }
 0x9b2   :  { %8882 = vpow2.f32 %v8052_v9 }
 0x9bc   :  { %v8879_v59 = vpop.eup %8878 }
 0x9bd   :  { %v7111_v20 = vadd.f32 1.0, %v8879_v59 }
 0x9be   :  { %v8881_v25 = vpop.eup %8880 }
 0x9bf   :  { %8884 = vrcp.f32 %v7111_v20  ;;  %v7112_v28 = vadd.f32 1.0, %v8881_v25  ;;  %v8883_v27 = vpop.eup %8882 }
 0x9c0   :  { %8886 = vtanh.f32 %v7099_v19  ;;  %v7121_v5 = vadd.f32 1.0, %v8883_v27 }
 0x9c1   :  { %8888 = vrcp.f32 %v7112_v28 }
 0x9c2   :  { %8890 = vrcp.f32 %v7121_v5 }
 0x9cc   :  { %v8885_v21 = vpop.eup %8884 }
 0x9cd   :  { %v8887_v22 = vpop.eup %8886 }
 0x9ce   :  { %v8889_v4 = vpop.eup %8888  ;;  %v7125_v62 = vmul.f32 %v8887_v22, %v8885_v21 }
 0x9cf   :  { %v7124_v7 = vmul.f32 %v8889_v4, %v11569_v24 }
 0x9d1   :  { %v7126_v58 = vadd.f32 %v7125_v62, %v7124_v7 }
 0x9d3   :  { %8892 = vtanh.f32 %v7126_v58  ;;  %7142 = vst [vmem:[#allocation13] sm:$0xff] %v7126_v58 }
 0x9d4   :  { %9007 = shalt.err (!%p9004_p5)
}
 0x9d5   :  { %7184 = dma.vmem_to_hbm [thread:$0]  %s7182_s10, 128, %s11642_s12, [#allocation14]   ;;  %v8891_v17 = vpop.eup %8890 }
 0x9d6   :  { %s9051_s30 = smov [#allocation12]  }
 0x9d7   :  { %s7171_s1 = sshll.u32 %s9051_s30, 4  ;;  %s7172_s1 = int_to_ptr.vmem [resolvable:$true] %s7171_s1 }
 0x9d8   :  { %s9016_s13 = scalar_lea.vmem %s7172_s1, 128  ;;  %p9021_p7 = scmp.lt.s32.totalorder %s7172_s1, %s7172_s1 }
 0x9d9   :  { %p9017_p6 = scmp.ne.s32.totalorder %s7172_s1, %s9016_s13  ;;  %p9022_p8 = scmp.lt.s32.totalorder %s9016_s13, %s9016_s13 }
 0x9db   :  { %p9023_p9 = por %p9022_p8, %p9021_p7 }
 0x9dd   :  { %p9024_p10 = pnand %p9023_p9, %p9017_p6 }
 0x9e0   :  { %v8893_v24 = vpop.eup %8892 }
 0x9e1   :  { %v7128_v39 = vmul.f32 %v8893_v24, %v8891_v17 }
 0x9e3   :  { %v7129_v34 = vpack.c.bf16 %v7128_v39, %v7128_v39  ;;  %7141 = vst [vmem:[#allocation12] sm:$0xff] %v7128_v39 }
 0x9e4   :  { %9027 = shalt.err (!%p9024_p10)
}
 0x9e5   :  { %7174 = dma.vmem_to_hbm [thread:$0]  %s7172_s1, 128, %s11641_s11, [#allocation11]   ;;  %8053 = vst [vmem:[%s11638_s8 + $0x1c] sm:$0xf] %v7129_v34 }
 0x9e6   :  { %9038 = dma.done.wait [#allocation8], 128  }
 0x9e7   :  { %9039 = vsyncadd [#allocation8], 4294967168 }
 0x9e8   :  { %9040 = dma.done.wait [#allocation11], 256  }
 0x9e9   :  { %9041 = vsyncadd [#allocation11], 4294967040 }
 0x9ea   :  { %9042 = dma.done.wait [#allocation14], 128  }
 0x9eb   :  { %9043 = vsyncadd [#allocation14], 4294967168 }
 0x9ec   :  { %7199 = vsyncpa [#allocation7], 1 }
 0x9ed   :  { %7200 = vsyncpa [#allocation8], 1 }
 0x9ee   :  { %7201 = vsyncpa [#allocation11], 1 }
 0x9ef   :  { %7202 = vsyncpa [#allocation14], 1 }

</bundles_post_ra>
